<compile_context>
chip_gen: v7x
topology: tpu7x:2x2x1
jax: 0.10.0
libtpu: 0.0.40
codegen_flags: <defaults>
</compile_context>

<pallas_src>
import jax
import jax.numpy as jnp
from jax import lax
from jax.experimental import pallas as pl
from jax.experimental.pallas import tpu as pltpu

EPS = 1.001e-05
LANE = 128


def _round_up(n, m=LANE):
    return ((n + m - 1) // m) * m


def _pad_to(a, target_shape):
    pads = [(0, t - s) for s, t in zip(a.shape, target_shape)]
    if all(p == (0, 0) for p in pads):
        return a
    return jnp.pad(a, pads)


def bottleneck_kernel(x_ref, halo_ref,
                      w1_ref, t1_ref,
                      w2_ref, t2_ref,
                      w3_ref, t3_ref,
                      o_ref,
                      pad_ref):
    # x_ref: (1, TH, W, Ci) bf16 -- one row tile of one batch element.
    # halo_ref: (1, 2, W, Ci) bf16 -- row above / row below this tile.
    # pad_ref: flat ((TH+2)*(W+2)+pad, Cw) bf16 scratch holding padded h1.
    _, TH, W, Ci = x_ref.shape
    Cw = w1_ref.shape[1]
    Co = w3_ref.shape[1]
    Wp = W + 2
    rows_img = (TH + 2) * Wp         # flat rows of the padded-h1 image
    R = pad_ref.shape[0]             # allocated rows (>= rows_img + 2)

    hidx = pl.program_id(1)
    n_h = pl.num_programs(1)

    # ---- zero the pad rim of the flat scratch (everything else is rewritten
    # below each step, so this stays correct under "parallel" core sharding).
    # Flat row p*Wp + c  <->  padded pixel (p, c).  Right rim of padded row p
    # and left rim of row p+1 are adjacent flat rows -> zero them as pairs.
    z1 = jnp.zeros((1, Cw), pad_ref.dtype)
    z2 = jnp.zeros((2, Cw), pad_ref.dtype)
    pad_ref[0:1, :] = z1                              # left rim of padded row 0
    for p in range(TH + 1):
        s = p * Wp + W + 1
        pad_ref[s:s + 2, :] = z2                      # right rim p | left rim p+1
    # right rim of the last padded row + OOB-safety tail, one contiguous store.
    pad_ref[rows_img - 1:R, :] = jnp.zeros((R - rows_img + 1, Cw), pad_ref.dtype)

    # ---- conv1 (1x1) + folded BN1 + ReLU on the tile and its halo rows ----
    x_bf = x_ref[...].reshape(TH * W, Ci)             # bf16, reused for residual
    halo_bf = halo_ref[...].reshape(2 * W, Ci)

    h1 = jnp.maximum(
        jnp.dot(x_bf, w1_ref[...], preferred_element_type=jnp.float32)
        + t1_ref[...], 0.0)
    h1h = jnp.maximum(
        jnp.dot(halo_bf, w1_ref[...], preferred_element_type=jnp.float32)
        + t1_ref[...], 0.0)

    # conv2's zero-padding applies to h1, so halo rows that fall outside the
    # image must be exactly zero (not relu(t1)); gate with a 0/1 scalar.
    top_ok = (hidx > 0).astype(jnp.float32)
    bot_ok = (hidx < n_h - 1).astype(jnp.float32)

    bot_base = (TH + 1) * Wp + 1
    pad_ref[1:1 + W, :] = (h1h[0:W] * top_ok).astype(pad_ref.dtype)
    pad_ref[bot_base:bot_base + W, :] = (h1h[W:2 * W] * bot_ok).astype(pad_ref.dtype)
    h1_bf = h1.astype(pad_ref.dtype)
    for r in range(TH):
        s = (r + 1) * Wp + 1
        pad_ref[s:s + W, :] = h1_bf[r * W:(r + 1) * W]

    # ---- conv2 (3x3, stride 1, pad 1): 9 contiguous-window tap matmuls ----
    # Window for tap (ky,kx) starts at flat row ky*Wp+kx; its columns W, W+1
    # are garbage and are dropped once after the accumulation.
    acc = None
    for ky in range(3):
        for kx in range(3):
            s = ky * Wp + kx
            window = pad_ref[s:s + TH * Wp, :]        # (TH*Wp, Cw), no reshape copy
            tap = jnp.dot(window, w2_ref[ky, kx],
                          preferred_element_type=jnp.float32)
            acc = tap if acc is None else acc + tap
    h2_wide = jnp.maximum(acc + t2_ref[...], 0.0)     # (TH*Wp, Cw)

    # Drop the 2 garbage columns (single extraction instead of 9 tap copies).
    h2 = (h2_wide.astype(jnp.bfloat16)
          .reshape(TH, Wp, Cw)[:, :W, :].reshape(TH * W, Cw))

    # ---- conv3 (1x1) + folded BN3 + residual + ReLU ----
    h3 = jnp.dot(h2, w3_ref[...], preferred_element_type=jnp.float32)
    out = jnp.maximum(h3 + t3_ref[...] + x_bf.astype(jnp.float32), 0.0)
    o_ref[...] = out.astype(o_ref.dtype).reshape(1, TH, W, Co)


def bottleneck_pallas(x_nchw, params, tile_rows=8):
    """x_nchw: (N, Cin, H, W) float32. Returns (N, Cout, H, W) float32."""
    (w1, b1, g1, be1, m1, v1,
     w2, b2, g2, be2, m2, v2,
     w3, b3, g3, be3, m3, v3) = params

    N, Cin, H, W = x_nchw.shape
    width = w1.shape[1]
    Cout = w3.shape[1]
    assert Cin == Cout, "downsample=None requires inplanes == 4*planes"

    Ci = _round_up(Cin)
    Cw = _round_up(width)
    Co = _round_up(Cout)
    assert Ci == Co

    # Row tile: largest divisor of H that is <= tile_rows.
    TH = min(tile_rows, H)
    while H % TH:
        TH -= 1
    nH = H // TH

    # Fold eval-mode BN into each conv: bn(conv(x)+b) = conv'(x) + t with
    #   s = gamma / sqrt(var + eps),  w' = w*s,  t = b*s + beta - mean*s.
    def fold(w, b, g, be, m, v):
        s = g / jnp.sqrt(v + EPS)
        return w * s, b * s + be - m * s

    w1f, t1 = fold(w1, b1, g1, be1, m1, v1)
    w2f, t2 = fold(w2, b2, g2, be2, m2, v2)
    w3f, t3 = fold(w3, b3, g3, be3, m3, v3)

    # Lane-dense channel padding (zeros), bf16 matmul operands, f32 shifts.
    w1p = _pad_to(w1f, (Ci, Cw)).astype(jnp.bfloat16)
    w2p = _pad_to(w2f, (3, 3, Cw, Cw)).astype(jnp.bfloat16)
    w3p = _pad_to(w3f, (Cw, Co)).astype(jnp.bfloat16)
    t1p = _pad_to(t1.reshape(1, -1), (1, Cw)).astype(jnp.float32)
    t2p = _pad_to(t2.reshape(1, -1), (1, Cw)).astype(jnp.float32)
    t3p = _pad_to(t3.reshape(1, -1), (1, Co)).astype(jnp.float32)

    x_nhwc = jnp.transpose(x_nchw, (0, 2, 3, 1))
    xp = _pad_to(x_nhwc, (N, H, W, Ci)).astype(jnp.bfloat16)

    # Per-tile halo rows (row above / below each TH-row tile; the zero rows at
    # the image edge are additionally gated to exact zeros inside the kernel).
    xpadH = jnp.pad(xp, ((0, 0), (1, 1), (0, 0), (0, 0)))          # (N, H+2, W, Ci)
    top = xpadH[:, 0:nH * TH:TH]                                   # (N, nH, W, Ci)
    bot = xpadH[:, TH + 1:TH + 1 + nH * TH:TH]                     # (N, nH, W, Ci)
    halo = jnp.stack([top, bot], axis=2).reshape(N * nH, 2, W, Ci)

    Wp = W + 2
    rows_alloc = ((((TH + 2) * Wp + 2) + 7) // 8) * 8   # +2 safety for last tap window

    def full(shp):
        return pl.BlockSpec(shp, lambda n, h, _s=shp: (0,) * len(_s))

    out = pl.pallas_call(
        bottleneck_kernel,
        out_shape=jax.ShapeDtypeStruct((N, H, W, Co), jnp.bfloat16),
        grid=(N, nH),
        in_specs=[
            pl.BlockSpec((1, TH, W, Ci), lambda n, h: (n, h, 0, 0)),
            pl.BlockSpec((1, 2, W, Ci), lambda n, h: (n * nH + h, 0, 0, 0)),
            full((Ci, Cw)), full((1, Cw)),
            full((3, 3, Cw, Cw)), full((1, Cw)),
            full((Cw, Co)), full((1, Co)),
        ],
        out_specs=pl.BlockSpec((1, TH, W, Co), lambda n, h: (n, h, 0, 0)),
        scratch_shapes=[pltpu.VMEM((rows_alloc, Cw), jnp.bfloat16)],
        compiler_params=pltpu.CompilerParams(
            dimension_semantics=("parallel", "parallel"),
            vmem_limit_bytes=32 * 1024 * 1024),
    )(xp, halo, w1p, t1p, w2p, t2p, w3p, t3p)

    out = out[..., :Cout].astype(jnp.float32)
    return jnp.transpose(out, (0, 3, 1, 2))


def bottleneck_ref(x_nchw, params):
    """Pure-JAX f32 reference (eval-mode BN), matches the PyTorch forward."""
    (w1, b1, g1, be1, m1, v1,
     w2, b2, g2, be2, m2, v2,
     w3, b3, g3, be3, m3, v3) = params
    x = jnp.transpose(x_nchw, (0, 2, 3, 1)).astype(jnp.float32)
    hp = lax.Precision.HIGHEST

    def bn(y, g, be, m, v):
        return (y - m) / jnp.sqrt(v + EPS) * g + be

    h = jnp.einsum('nhwc,cd->nhwd', x, w1, precision=hp) + b1
    h = jax.nn.relu(bn(h, g1, be1, m1, v1))
    h = lax.conv_general_dilated(
        h, w2, (1, 1), 'SAME',
        dimension_numbers=('NHWC', 'HWIO', 'NHWC'), precision=hp) + b2
    h = jax.nn.relu(bn(h, g2, be2, m2, v2))
    h = jnp.einsum('nhwc,cd->nhwd', h, w3, precision=hp) + b3
    h = bn(h, g3, be3, m3, v3)
    out = jax.nn.relu(h + x)
    return jnp.transpose(out, (0, 3, 1, 2))


def make_params(key, inplanes, planes):
    width = planes
    cout = planes * 4  # expansion
    keys = jax.random.split(key, 9)
    f32 = jnp.float32

    w1 = 0.1 * jax.random.normal(keys[0], (inplanes, width), f32)     # 1x1 conv as (Cin, Cout)
    b1 = 0.5 * jax.random.normal(keys[1], (width,), f32)
    w2 = 0.1 * jax.random.normal(keys[2], (3, 3, width, width), f32)  # 3x3 conv, HWIO
    b2 = 0.5 * jax.random.normal(keys[3], (width,), f32)
    w3 = 0.1 * jax.random.normal(keys[4], (width, cout), f32)         # 1x1 conv as (Cin, Cout)
    b3 = 0.5 * jax.random.normal(keys[5], (cout,), f32)

    def bn_params(k, c):
        ks = jax.random.split(k, 4)
        gamma = 1.0 + 0.1 * jax.random.normal(ks[0], (c,), f32)
        beta = 0.5 * jax.random.normal(ks[1], (c,), f32)
        mean = 0.5 * jax.random.normal(ks[2], (c,), f32)
        var = 1.0 + 0.1 * jnp.abs(jax.random.normal(ks[3], (c,), f32))
        return gamma, beta, mean, var

    g1, be1, m1, v1 = bn_params(keys[6], width)
    g2, be2, m2, v2 = bn_params(keys[7], width)
    g3, be3, m3, v3 = bn_params(keys[8], cout)

    return (w1, b1, g1, be1, m1, v1,
            w2, b2, g2, be2, m2, v2,
            w3, b3, g3, be3, m3, v3)


if __name__ == "__main__":
    key = jax.random.PRNGKey(0)
    k_x, k_p = jax.random.split(key)

    # H=16 with tile_rows=8 exercises the multi-tile path (halo handoff between
    # row tiles and both image-edge halo gates).
    N, planes, H, W = 2, 16, 16, 16
    inplanes = planes * 4  # identity add (downsample=None) needs inplanes == 4*planes

    x = jax.random.normal(k_x, (N, inplanes, H, W), jnp.float32)
    params = make_params(k_p, inplanes, planes)

    out = jax.block_until_ready(bottleneck_pallas(x, params, tile_rows=8))
    ref = bottleneck_ref(x, params)

    assert out.shape == (N, inplanes, H, W)
    # bf16 MXU inputs + bf16 output give ~1e-2 relative deviation from the
    # pure-f32 reference; structural bugs (wrong tap / halo / BN fold) >= 0.1.
    assert jnp.allclose(out, ref, atol=3e-2, rtol=3e-2), \
        f"max abs err {jnp.max(jnp.abs(out - ref))}"

    print("KERNEL_OK")
</pallas_src>

<mosaic_0001>
module attributes {stable_mosaic.version = 11 : i64} {
  func.func @bottleneck_kernel(%arg0: i32, %arg1: i32, %arg2: memref<1x8x16x128xbf16, #tpu.memory_space<vmem>>, %arg3: memref<1x2x16x128xbf16, #tpu.memory_space<vmem>>, %arg4: memref<128x128xbf16, #tpu.memory_space<vmem>>, %arg5: memref<1x128xf32, #tpu.memory_space<vmem>>, %arg6: memref<3x3x128x128xbf16, #tpu.memory_space<vmem>>, %arg7: memref<1x128xf32, #tpu.memory_space<vmem>>, %arg8: memref<128x128xbf16, #tpu.memory_space<vmem>>, %arg9: memref<1x128xf32, #tpu.memory_space<vmem>>, %arg10: memref<1x8x16x128xbf16, #tpu.memory_space<vmem>>, %arg11: memref<184x128xbf16, #tpu.memory_space<vmem>>) attributes {dimension_semantics = [#tpu.dimension_semantics<parallel>, #tpu.dimension_semantics<parallel>], iteration_bounds = array<i64: 2, 2>, scalar_prefetch = 0 : i64, scratch_operands = 1 : i64, tpu.core_type = #tpu.core_type<tc>, window_params = [{transform_indices = @transform_0, window_bounds = array<i64: 1, 8, 16, 128>}, {transform_indices = @transform_1, window_bounds = array<i64: 1, 2, 16, 128>}, {pipeline_mode = #tpu.pipeline_mode<synchronous>, transform_indices = @transform_2, window_bounds = array<i64: 128, 128>}, {pipeline_mode = #tpu.pipeline_mode<synchronous>, transform_indices = @transform_3, window_bounds = array<i64: 1, 128>}, {pipeline_mode = #tpu.pipeline_mode<synchronous>, transform_indices = @transform_4, window_bounds = array<i64: 3, 3, 128, 128>}, {pipeline_mode = #tpu.pipeline_mode<synchronous>, transform_indices = @transform_5, window_bounds = array<i64: 1, 128>}, {pipeline_mode = #tpu.pipeline_mode<synchronous>, transform_indices = @transform_6, window_bounds = array<i64: 128, 128>}, {pipeline_mode = #tpu.pipeline_mode<synchronous>, transform_indices = @transform_7, window_bounds = array<i64: 1, 128>}, {transform_indices = @transform_8, window_bounds = array<i64: 1, 8, 16, 128>}]} {
    %cst = arith.constant 0.000000e+00 : bf16
    %0 = vector.broadcast %cst : bf16 to vector<1x128xbf16>
    %cst_0 = arith.constant 0.000000e+00 : bf16
    %1 = vector.broadcast %cst_0 : bf16 to vector<2x128xbf16>
    %c0 = arith.constant 0 : index
    %c0_1 = arith.constant 0 : index
    %2 = vector.load %arg11[%c0, %c0_1] : memref<184x128xbf16, #tpu.memory_space<vmem>>, vector<1x128xbf16>
    tpu.vector_store %arg11[%c0, %c0_1], %0 {strides = array<i32>} : memref<184x128xbf16, #tpu.memory_space<vmem>>, vector<1x128xbf16>,
    %c17 = arith.constant 17 : index
    %c0_2 = arith.constant 0 : index
    %3 = vector.load %arg11[%c17, %c0_2] : memref<184x128xbf16, #tpu.memory_space<vmem>>, vector<2x128xbf16>
    tpu.vector_store %arg11[%c17, %c0_2], %1 {strides = array<i32>} : memref<184x128xbf16, #tpu.memory_space<vmem>>, vector<2x128xbf16>,
    %c35 = arith.constant 35 : index
    %c0_3 = arith.constant 0 : index
    %4 = vector.load %arg11[%c35, %c0_3] : memref<184x128xbf16, #tpu.memory_space<vmem>>, vector<2x128xbf16>
    tpu.vector_store %arg11[%c35, %c0_3], %1 {strides = array<i32>} : memref<184x128xbf16, #tpu.memory_space<vmem>>, vector<2x128xbf16>,
    %c53 = arith.constant 53 : index
    %c0_4 = arith.constant 0 : index
    %5 = vector.load %arg11[%c53, %c0_4] : memref<184x128xbf16, #tpu.memory_space<vmem>>, vector<2x128xbf16>
    tpu.vector_store %arg11[%c53, %c0_4], %1 {strides = array<i32>} : memref<184x128xbf16, #tpu.memory_space<vmem>>, vector<2x128xbf16>,
    %c71 = arith.constant 71 : index
    %c0_5 = arith.constant 0 : index
    %6 = vector.load %arg11[%c71, %c0_5] : memref<184x128xbf16, #tpu.memory_space<vmem>>, vector<2x128xbf16>
    tpu.vector_store %arg11[%c71, %c0_5], %1 {strides = array<i32>} : memref<184x128xbf16, #tpu.memory_space<vmem>>, vector<2x128xbf16>,
    %c89 = arith.constant 89 : index
    %c0_6 = arith.constant 0 : index
    %7 = vector.load %arg11[%c89, %c0_6] : memref<184x128xbf16, #tpu.memory_space<vmem>>, vector<2x128xbf16>
    tpu.vector_store %arg11[%c89, %c0_6], %1 {strides = array<i32>} : memref<184x128xbf16, #tpu.memory_space<vmem>>, vector<2x128xbf16>,
    %c107 = arith.constant 107 : index
    %c0_7 = arith.constant 0 : index
    %8 = vector.load %arg11[%c107, %c0_7] : memref<184x128xbf16, #tpu.memory_space<vmem>>, vector<2x128xbf16>
    tpu.vector_store %arg11[%c107, %c0_7], %1 {strides = array<i32>} : memref<184x128xbf16, #tpu.memory_space<vmem>>, vector<2x128xbf16>,
    %c125 = arith.constant 125 : index
    %c0_8 = arith.constant 0 : index
    %9 = vector.load %arg11[%c125, %c0_8] : memref<184x128xbf16, #tpu.memory_space<vmem>>, vector<2x128xbf16>
    tpu.vector_store %arg11[%c125, %c0_8], %1 {strides = array<i32>} : memref<184x128xbf16, #tpu.memory_space<vmem>>, vector<2x128xbf16>,
    %c143 = arith.constant 143 : index
    %c0_9 = arith.constant 0 : index
    %10 = vector.load %arg11[%c143, %c0_9] : memref<184x128xbf16, #tpu.memory_space<vmem>>, vector<2x128xbf16>
    tpu.vector_store %arg11[%c143, %c0_9], %1 {strides = array<i32>} : memref<184x128xbf16, #tpu.memory_space<vmem>>, vector<2x128xbf16>,
    %c161 = arith.constant 161 : index
    %c0_10 = arith.constant 0 : index
    %11 = vector.load %arg11[%c161, %c0_10] : memref<184x128xbf16, #tpu.memory_space<vmem>>, vector<2x128xbf16>
    tpu.vector_store %arg11[%c161, %c0_10], %1 {strides = array<i32>} : memref<184x128xbf16, #tpu.memory_space<vmem>>, vector<2x128xbf16>,
    %cst_11 = arith.constant 0.000000e+00 : bf16
    %12 = vector.broadcast %cst_11 : bf16 to vector<5x128xbf16>
    %c179 = arith.constant 179 : index
    %c0_12 = arith.constant 0 : index
    %13 = vector.load %arg11[%c179, %c0_12] : memref<184x128xbf16, #tpu.memory_space<vmem>>, vector<5x128xbf16>
    tpu.vector_store %arg11[%c179, %c0_12], %12 {strides = array<i32>} : memref<184x128xbf16, #tpu.memory_space<vmem>>, vector<5x128xbf16>,
    %c0_13 = arith.constant 0 : index
    %c0_14 = arith.constant 0 : index
    %c0_15 = arith.constant 0 : index
    %c0_16 = arith.constant 0 : index
    %14 = vector.load %arg2[%c0_13, %c0_14, %c0_15, %c0_16] : memref<1x8x16x128xbf16, #tpu.memory_space<vmem>>, vector<1x8x16x128xbf16>
    %15 = vector.shape_cast %14 : vector<1x8x16x128xbf16> to vector<128x128xbf16>
    %c0_17 = arith.constant 0 : index
    %c0_18 = arith.constant 0 : index
    %c0_19 = arith.constant 0 : index
    %c0_20 = arith.constant 0 : index
    %16 = vector.load %arg3[%c0_17, %c0_18, %c0_19, %c0_20] : memref<1x2x16x128xbf16, #tpu.memory_space<vmem>>, vector<1x2x16x128xbf16>
    %17 = vector.shape_cast %16 : vector<1x2x16x128xbf16> to vector<32x128xbf16>
    %c0_21 = arith.constant 0 : index
    %c0_22 = arith.constant 0 : index
    %18 = vector.load %arg4[%c0_21, %c0_22] : memref<128x128xbf16, #tpu.memory_space<vmem>>, vector<128x128xbf16>
    %cst_23 = arith.constant dense<0.000000e+00> : vector<128x128xf32>
    %19 = tpu.matmul %15, %18, %cst_23 {dimension_numbers = #tpu.dot_dimension_numbers<[1], [0], [0], [1], [0, 0, 1, 1], [], []>} : vector<128x128xbf16>, vector<128x128xbf16>, vector<128x128xf32> -> vector<128x128xf32>
    %c0_24 = arith.constant 0 : index
    %c0_25 = arith.constant 0 : index
    %20 = vector.load %arg5[%c0_24, %c0_25] : memref<1x128xf32, #tpu.memory_space<vmem>>, vector<1x128xf32>
    %21 = vector.broadcast %20 : vector<1x128xf32> to vector<128x128xf32>
    %22 = arith.addf %19, %21 : vector<128x128xf32>
    %cst_26 = arith.constant 0.000000e+00 : f32
    %23 = vector.broadcast %cst_26 : f32 to vector<128x128xf32>
    %24 = arith.maximumf %22, %23 : vector<128x128xf32>
    %c0_27 = arith.constant 0 : index
    %c0_28 = arith.constant 0 : index
    %25 = vector.load %arg4[%c0_27, %c0_28] : memref<128x128xbf16, #tpu.memory_space<vmem>>, vector<128x128xbf16>
    %cst_29 = arith.constant dense<0.000000e+00> : vector<32x128xf32>
    %26 = tpu.matmul %17, %25, %cst_29 {dimension_numbers = #tpu.dot_dimension_numbers<[1], [0], [0], [1], [0, 0, 1, 1], [], []>} : vector<32x128xbf16>, vector<128x128xbf16>, vector<32x128xf32> -> vector<32x128xf32>
    %c0_30 = arith.constant 0 : index
    %c0_31 = arith.constant 0 : index
    %27 = vector.load %arg5[%c0_30, %c0_31] : memref<1x128xf32, #tpu.memory_space<vmem>>, vector<1x128xf32>
    %28 = vector.broadcast %27 : vector<1x128xf32> to vector<32x128xf32>
    %29 = arith.addf %26, %28 : vector<32x128xf32>
    %cst_32 = arith.constant 0.000000e+00 : f32
    %30 = vector.broadcast %cst_32 : f32 to vector<32x128xf32>
    %31 = arith.maximumf %29, %30 : vector<32x128xf32>
    %c0_i32 = arith.constant 0 : i32
    %32 = arith.cmpi sgt, %arg1, %c0_i32 : i32
    %33 = arith.extui %32 : i1 to i32
    %34 = arith.sitofp %33 : i32 to f32
    %c1_i32 = arith.constant 1 : i32
    %35 = arith.cmpi slt, %arg1, %c1_i32 : i32
    %36 = arith.extui %35 : i1 to i32
    %37 = arith.sitofp %36 : i32 to f32
    %38 = vector.extract_strided_slice %31 {offsets = [0, 0], sizes = [16, 128], strides = [1, 1]} : vector<32x128xf32> to vector<16x128xf32>
    %39 = vector.broadcast %34 : f32 to vector<16x128xf32>
    %40 = arith.mulf %38, %39 : vector<16x128xf32>
    %41 = arith.truncf %40 : vector<16x128xf32> to vector<16x128xbf16>
    %c1 = arith.constant 1 : index
    %c0_33 = arith.constant 0 : index
    %42 = vector.load %arg11[%c1, %c0_33] : memref<184x128xbf16, #tpu.memory_space<vmem>>, vector<16x128xbf16>
    tpu.vector_store %arg11[%c1, %c0_33], %41 {strides = array<i32>} : memref<184x128xbf16, #tpu.memory_space<vmem>>, vector<16x128xbf16>,
    %43 = vector.extract_strided_slice %31 {offsets = [16, 0], sizes = [16, 128], strides = [1, 1]} : vector<32x128xf32> to vector<16x128xf32>
    %44 = vector.broadcast %37 : f32 to vector<16x128xf32>
    %45 = arith.mulf %43, %44 : vector<16x128xf32>
    %46 = arith.truncf %45 : vector<16x128xf32> to vector<16x128xbf16>
    %c163 = arith.constant 163 : index
    %c0_34 = arith.constant 0 : index
    %47 = vector.load %arg11[%c163, %c0_34] : memref<184x128xbf16, #tpu.memory_space<vmem>>, vector<16x128xbf16>
    tpu.vector_store %arg11[%c163, %c0_34], %46 {strides = array<i32>} : memref<184x128xbf16, #tpu.memory_space<vmem>>, vector<16x128xbf16>,
    %48 = arith.truncf %24 : vector<128x128xf32> to vector<128x128xbf16>
    %49 = vector.extract_strided_slice %48 {offsets = [0, 0], sizes = [16, 128], strides = [1, 1]} : vector<128x128xbf16> to vector<16x128xbf16>
    %c19 = arith.constant 19 : index
    %c0_35 = arith.constant 0 : index
    %50 = vector.load %arg11[%c19, %c0_35] : memref<184x128xbf16, #tpu.memory_space<vmem>>, vector<16x128xbf16>
    tpu.vector_store %arg11[%c19, %c0_35], %49 {strides = array<i32>} : memref<184x128xbf16, #tpu.memory_space<vmem>>, vector<16x128xbf16>,
    %51 = vector.extract_strided_slice %48 {offsets = [16, 0], sizes = [16, 128], strides = [1, 1]} : vector<128x128xbf16> to vector<16x128xbf16>
    %c37 = arith.constant 37 : index
    %c0_36 = arith.constant 0 : index
    %52 = vector.load %arg11[%c37, %c0_36] : memref<184x128xbf16, #tpu.memory_space<vmem>>, vector<16x128xbf16>
    tpu.vector_store %arg11[%c37, %c0_36], %51 {strides = array<i32>} : memref<184x128xbf16, #tpu.memory_space<vmem>>, vector<16x128xbf16>,
    %53 = vector.extract_strided_slice %48 {offsets = [32, 0], sizes = [16, 128], strides = [1, 1]} : vector<128x128xbf16> to vector<16x128xbf16>
    %c55 = arith.constant 55 : index
    %c0_37 = arith.constant 0 : index
    %54 = vector.load %arg11[%c55, %c0_37] : memref<184x128xbf16, #tpu.memory_space<vmem>>, vector<16x128xbf16>
    tpu.vector_store %arg11[%c55, %c0_37], %53 {strides = array<i32>} : memref<184x128xbf16, #tpu.memory_space<vmem>>, vector<16x128xbf16>,
    %55 = vector.extract_strided_slice %48 {offsets = [48, 0], sizes = [16, 128], strides = [1, 1]} : vector<128x128xbf16> to vector<16x128xbf16>
    %c73 = arith.constant 73 : index
    %c0_38 = arith.constant 0 : index
    %56 = vector.load %arg11[%c73, %c0_38] : memref<184x128xbf16, #tpu.memory_space<vmem>>, vector<16x128xbf16>
    tpu.vector_store %arg11[%c73, %c0_38], %55 {strides = array<i32>} : memref<184x128xbf16, #tpu.memory_space<vmem>>, vector<16x128xbf16>,
    %57 = vector.extract_strided_slice %48 {offsets = [64, 0], sizes = [16, 128], strides = [1, 1]} : vector<128x128xbf16> to vector<16x128xbf16>
    %c91 = arith.constant 91 : index
    %c0_39 = arith.constant 0 : index
    %58 = vector.load %arg11[%c91, %c0_39] : memref<184x128xbf16, #tpu.memory_space<vmem>>, vector<16x128xbf16>
    tpu.vector_store %arg11[%c91, %c0_39], %57 {strides = array<i32>} : memref<184x128xbf16, #tpu.memory_space<vmem>>, vector<16x128xbf16>,
    %59 = vector.extract_strided_slice %48 {offsets = [80, 0], sizes = [16, 128], strides = [1, 1]} : vector<128x128xbf16> to vector<16x128xbf16>
    %c109 = arith.constant 109 : index
    %c0_40 = arith.constant 0 : index
    %60 = vector.load %arg11[%c109, %c0_40] : memref<184x128xbf16, #tpu.memory_space<vmem>>, vector<16x128xbf16>
    tpu.vector_store %arg11[%c109, %c0_40], %59 {strides = array<i32>} : memref<184x128xbf16, #tpu.memory_space<vmem>>, vector<16x128xbf16>,
    %61 = vector.extract_strided_slice %48 {offsets = [96, 0], sizes = [16, 128], strides = [1, 1]} : vector<128x128xbf16> to vector<16x128xbf16>
    %c127 = arith.constant 127 : index
    %c0_41 = arith.constant 0 : index
    %62 = vector.load %arg11[%c127, %c0_41] : memref<184x128xbf16, #tpu.memory_space<vmem>>, vector<16x128xbf16>
    tpu.vector_store %arg11[%c127, %c0_41], %61 {strides = array<i32>} : memref<184x128xbf16, #tpu.memory_space<vmem>>, vector<16x128xbf16>,
    %63 = vector.extract_strided_slice %48 {offsets = [112, 0], sizes = [16, 128], strides = [1, 1]} : vector<128x128xbf16> to vector<16x128xbf16>
    %c145 = arith.constant 145 : index
    %c0_42 = arith.constant 0 : index
    %64 = vector.load %arg11[%c145, %c0_42] : memref<184x128xbf16, #tpu.memory_space<vmem>>, vector<16x128xbf16>
    tpu.vector_store %arg11[%c145, %c0_42], %63 {strides = array<i32>} : memref<184x128xbf16, #tpu.memory_space<vmem>>, vector<16x128xbf16>,
    %c0_43 = arith.constant 0 : index
    %c0_44 = arith.constant 0 : index
    %65 = vector.load %arg11[%c0_43, %c0_44] : memref<184x128xbf16, #tpu.memory_space<vmem>>, vector<144x128xbf16>
    %c0_45 = arith.constant 0 : index
    %c0_46 = arith.constant 0 : index
    %c0_47 = arith.constant 0 : index
    %c0_48 = arith.constant 0 : index
    %66 = vector.load %arg6[%c0_45, %c0_46, %c0_47, %c0_48] : memref<3x3x128x128xbf16, #tpu.memory_space<vmem>>, vector<1x1x128x128xbf16>
    %67 = vector.shape_cast %66 : vector<1x1x128x128xbf16> to vector<128x128xbf16>
    %cst_49 = arith.constant dense<0.000000e+00> : vector<144x128xf32>
    %68 = tpu.matmul %65, %67, %cst_49 {dimension_numbers = #tpu.dot_dimension_numbers<[1], [0], [0], [1], [0, 0, 1, 1], [], []>} : vector<144x128xbf16>, vector<128x128xbf16>, vector<144x128xf32> -> vector<144x128xf32>
    %c1_50 = arith.constant 1 : index
    %c0_51 = arith.constant 0 : index
    %69 = vector.load %arg11[%c1_50, %c0_51] : memref<184x128xbf16, #tpu.memory_space<vmem>>, vector<144x128xbf16>
    %c0_52 = arith.constant 0 : index
    %c1_53 = arith.constant 1 : index
    %c0_54 = arith.constant 0 : index
    %c0_55 = arith.constant 0 : index
    %70 = vector.load %arg6[%c0_52, %c1_53, %c0_54, %c0_55] : memref<3x3x128x128xbf16, #tpu.memory_space<vmem>>, vector<1x1x128x128xbf16>
    %71 = vector.shape_cast %70 : vector<1x1x128x128xbf16> to vector<128x128xbf16>
    %cst_56 = arith.constant dense<0.000000e+00> : vector<144x128xf32>
    %72 = tpu.matmul %69, %71, %cst_56 {dimension_numbers = #tpu.dot_dimension_numbers<[1], [0], [0], [1], [0, 0, 1, 1], [], []>} : vector<144x128xbf16>, vector<128x128xbf16>, vector<144x128xf32> -> vector<144x128xf32>
    %73 = arith.addf %68, %72 : vector<144x128xf32>
    %c2 = arith.constant 2 : index
    %c0_57 = arith.constant 0 : index
    %74 = vector.load %arg11[%c2, %c0_57] : memref<184x128xbf16, #tpu.memory_space<vmem>>, vector<144x128xbf16>
    %c0_58 = arith.constant 0 : index
    %c2_59 = arith.constant 2 : index
    %c0_60 = arith.constant 0 : index
    %c0_61 = arith.constant 0 : index
    %75 = vector.load %arg6[%c0_58, %c2_59, %c0_60, %c0_61] : memref<3x3x128x128xbf16, #tpu.memory_space<vmem>>, vector<1x1x128x128xbf16>
    %76 = vector.shape_cast %75 : vector<1x1x128x128xbf16> to vector<128x128xbf16>
    %cst_62 = arith.constant dense<0.000000e+00> : vector<144x128xf32>
    %77 = tpu.matmul %74, %76, %cst_62 {dimension_numbers = #tpu.dot_dimension_numbers<[1], [0], [0], [1], [0, 0, 1, 1], [], []>} : vector<144x128xbf16>, vector<128x128xbf16>, vector<144x128xf32> -> vector<144x128xf32>
    %78 = arith.addf %73, %77 : vector<144x128xf32>
    %c18 = arith.constant 18 : index
    %c0_63 = arith.constant 0 : index
    %79 = vector.load %arg11[%c18, %c0_63] : memref<184x128xbf16, #tpu.memory_space<vmem>>, vector<144x128xbf16>
    %c1_64 = arith.constant 1 : index
    %c0_65 = arith.constant 0 : index
    %c0_66 = arith.constant 0 : index
    %c0_67 = arith.constant 0 : index
    %80 = vector.load %arg6[%c1_64, %c0_65, %c0_66, %c0_67] : memref<3x3x128x128xbf16, #tpu.memory_space<vmem>>, vector<1x1x128x128xbf16>
    %81 = vector.shape_cast %80 : vector<1x1x128x128xbf16> to vector<128x128xbf16>
    %cst_68 = arith.constant dense<0.000000e+00> : vector<144x128xf32>
    %82 = tpu.matmul %79, %81, %cst_68 {dimension_numbers = #tpu.dot_dimension_numbers<[1], [0], [0], [1], [0, 0, 1, 1], [], []>} : vector<144x128xbf16>, vector<128x128xbf16>, vector<144x128xf32> -> vector<144x128xf32>
    %83 = arith.addf %78, %82 : vector<144x128xf32>
    %c19_69 = arith.constant 19 : index
    %c0_70 = arith.constant 0 : index
    %84 = vector.load %arg11[%c19_69, %c0_70] : memref<184x128xbf16, #tpu.memory_space<vmem>>, vector<144x128xbf16>
    %c1_71 = arith.constant 1 : index
    %c1_72 = arith.constant 1 : index
    %c0_73 = arith.constant 0 : index
    %c0_74 = arith.constant 0 : index
    %85 = vector.load %arg6[%c1_71, %c1_72, %c0_73, %c0_74] : memref<3x3x128x128xbf16, #tpu.memory_space<vmem>>, vector<1x1x128x128xbf16>
    %86 = vector.shape_cast %85 : vector<1x1x128x128xbf16> to vector<128x128xbf16>
    %cst_75 = arith.constant dense<0.000000e+00> : vector<144x128xf32>
    %87 = tpu.matmul %84, %86, %cst_75 {dimension_numbers = #tpu.dot_dimension_numbers<[1], [0], [0], [1], [0, 0, 1, 1], [], []>} : vector<144x128xbf16>, vector<128x128xbf16>, vector<144x128xf32> -> vector<144x128xf32>
    %88 = arith.addf %83, %87 : vector<144x128xf32>
    %c20 = arith.constant 20 : index
    %c0_76 = arith.constant 0 : index
    %89 = vector.load %arg11[%c20, %c0_76] : memref<184x128xbf16, #tpu.memory_space<vmem>>, vector<144x128xbf16>
    %c1_77 = arith.constant 1 : index
    %c2_78 = arith.constant 2 : index
    %c0_79 = arith.constant 0 : index
    %c0_80 = arith.constant 0 : index
    %90 = vector.load %arg6[%c1_77, %c2_78, %c0_79, %c0_80] : memref<3x3x128x128xbf16, #tpu.memory_space<vmem>>, vector<1x1x128x128xbf16>
    %91 = vector.shape_cast %90 : vector<1x1x128x128xbf16> to vector<128x128xbf16>
    %cst_81 = arith.constant dense<0.000000e+00> : vector<144x128xf32>
    %92 = tpu.matmul %89, %91, %cst_81 {dimension_numbers = #tpu.dot_dimension_numbers<[1], [0], [0], [1], [0, 0, 1, 1], [], []>} : vector<144x128xbf16>, vector<128x128xbf16>, vector<144x128xf32> -> vector<144x128xf32>
    %93 = arith.addf %88, %92 : vector<144x128xf32>
    %c36 = arith.constant 36 : index
    %c0_82 = arith.constant 0 : index
    %94 = vector.load %arg11[%c36, %c0_82] : memref<184x128xbf16, #tpu.memory_space<vmem>>, vector<144x128xbf16>
    %c2_83 = arith.constant 2 : index
    %c0_84 = arith.constant 0 : index
    %c0_85 = arith.constant 0 : index
    %c0_86 = arith.constant 0 : index
    %95 = vector.load %arg6[%c2_83, %c0_84, %c0_85, %c0_86] : memref<3x3x128x128xbf16, #tpu.memory_space<vmem>>, vector<1x1x128x128xbf16>
    %96 = vector.shape_cast %95 : vector<1x1x128x128xbf16> to vector<128x128xbf16>
    %cst_87 = arith.constant dense<0.000000e+00> : vector<144x128xf32>
    %97 = tpu.matmul %94, %96, %cst_87 {dimension_numbers = #tpu.dot_dimension_numbers<[1], [0], [0], [1], [0, 0, 1, 1], [], []>} : vector<144x128xbf16>, vector<128x128xbf16>, vector<144x128xf32> -> vector<144x128xf32>
    %98 = arith.addf %93, %97 : vector<144x128xf32>
    %c37_88 = arith.constant 37 : index
    %c0_89 = arith.constant 0 : index
    %99 = vector.load %arg11[%c37_88, %c0_89] : memref<184x128xbf16, #tpu.memory_space<vmem>>, vector<144x128xbf16>
    %c2_90 = arith.constant 2 : index
    %c1_91 = arith.constant 1 : index
    %c0_92 = arith.constant 0 : index
    %c0_93 = arith.constant 0 : index
    %100 = vector.load %arg6[%c2_90, %c1_91, %c0_92, %c0_93] : memref<3x3x128x128xbf16, #tpu.memory_space<vmem>>, vector<1x1x128x128xbf16>
    %101 = vector.shape_cast %100 : vector<1x1x128x128xbf16> to vector<128x128xbf16>
    %cst_94 = arith.constant dense<0.000000e+00> : vector<144x128xf32>
    %102 = tpu.matmul %99, %101, %cst_94 {dimension_numbers = #tpu.dot_dimension_numbers<[1], [0], [0], [1], [0, 0, 1, 1], [], []>} : vector<144x128xbf16>, vector<128x128xbf16>, vector<144x128xf32> -> vector<144x128xf32>
    %103 = arith.addf %98, %102 : vector<144x128xf32>
    %c38 = arith.constant 38 : index
    %c0_95 = arith.constant 0 : index
    %104 = vector.load %arg11[%c38, %c0_95] : memref<184x128xbf16, #tpu.memory_space<vmem>>, vector<144x128xbf16>
    %c2_96 = arith.constant 2 : index
    %c2_97 = arith.constant 2 : index
    %c0_98 = arith.constant 0 : index
    %c0_99 = arith.constant 0 : index
    %105 = vector.load %arg6[%c2_96, %c2_97, %c0_98, %c0_99] : memref<3x3x128x128xbf16, #tpu.memory_space<vmem>>, vector<1x1x128x128xbf16>
    %106 = vector.shape_cast %105 : vector<1x1x128x128xbf16> to vector<128x128xbf16>
    %cst_100 = arith.constant dense<0.000000e+00> : vector<144x128xf32>
    %107 = tpu.matmul %104, %106, %cst_100 {dimension_numbers = #tpu.dot_dimension_numbers<[1], [0], [0], [1], [0, 0, 1, 1], [], []>} : vector<144x128xbf16>, vector<128x128xbf16>, vector<144x128xf32> -> vector<144x128xf32>
    %108 = arith.addf %103, %107 : vector<144x128xf32>
    %c0_101 = arith.constant 0 : index
    %c0_102 = arith.constant 0 : index
    %109 = vector.load %arg7[%c0_101, %c0_102] : memref<1x128xf32, #tpu.memory_space<vmem>>, vector<1x128xf32>
    %110 = vector.broadcast %109 : vector<1x128xf32> to vector<144x128xf32>
    %111 = arith.addf %108, %110 : vector<144x128xf32>
    %cst_103 = arith.constant 0.000000e+00 : f32
    %112 = vector.broadcast %cst_103 : f32 to vector<144x128xf32>
    %113 = arith.maximumf %111, %112 : vector<144x128xf32>
    %114 = arith.truncf %113 : vector<144x128xf32> to vector<144x128xbf16>
    %115 = vector.shape_cast %114 : vector<144x128xbf16> to vector<8x18x128xbf16>
    %116 = vector.extract_strided_slice %115 {offsets = [0, 0, 0], sizes = [8, 16, 128], strides = [1, 1, 1]} : vector<8x18x128xbf16> to vector<8x16x128xbf16>
    %117 = vector.shape_cast %116 : vector<8x16x128xbf16> to vector<128x128xbf16>
    %c0_104 = arith.constant 0 : index
    %c0_105 = arith.constant 0 : index
    %118 = vector.load %arg8[%c0_104, %c0_105] : memref<128x128xbf16, #tpu.memory_space<vmem>>, vector<128x128xbf16>
    %cst_106 = arith.constant dense<0.000000e+00> : vector<128x128xf32>
    %119 = tpu.matmul %117, %118, %cst_106 {dimension_numbers = #tpu.dot_dimension_numbers<[1], [0], [0], [1], [0, 0, 1, 1], [], []>} : vector<128x128xbf16>, vector<128x128xbf16>, vector<128x128xf32> -> vector<128x128xf32>
    %c0_107 = arith.constant 0 : index
    %c0_108 = arith.constant 0 : index
    %120 = vector.load %arg9[%c0_107, %c0_108] : memref<1x128xf32, #tpu.memory_space<vmem>>, vector<1x128xf32>
    %121 = vector.broadcast %120 : vector<1x128xf32> to vector<128x128xf32>
    %122 = arith.addf %119, %121 : vector<128x128xf32>
    %123 = arith.extf %15 : vector<128x128xbf16> to vector<128x128xf32>
    %124 = arith.addf %122, %123 : vector<128x128xf32>
    %cst_109 = arith.constant 0.000000e+00 : f32
    %125 = vector.broadcast %cst_109 : f32 to vector<128x128xf32>
    %126 = arith.maximumf %124, %125 : vector<128x128xf32>
    %127 = arith.truncf %126 : vector<128x128xf32> to vector<128x128xbf16>
    %128 = vector.shape_cast %127 : vector<128x128xbf16> to vector<1x8x16x128xbf16>
    %c0_110 = arith.constant 0 : index
    %c0_111 = arith.constant 0 : index
    %c0_112 = arith.constant 0 : index
    %c0_113 = arith.constant 0 : index
    %129 = vector.load %arg10[%c0_110, %c0_111, %c0_112, %c0_113] : memref<1x8x16x128xbf16, #tpu.memory_space<vmem>>, vector<1x8x16x128xbf16>
    tpu.vector_store %arg10[%c0_110, %c0_111, %c0_112, %c0_113], %128 {strides = array<i32>} : memref<1x8x16x128xbf16, #tpu.memory_space<vmem>>, vector<1x8x16x128xbf16>,
    return
  }
  func.func @transform_0(%arg0: i32, %arg1: i32) -> (i32, i32, i32, i32) {
    %c0_i32 = arith.constant 0 : i32
    %c0_i32_0 = arith.constant 0 : i32
    %c0_i32_1 = arith.constant 0 : i32
    return %arg0, %arg1, %c0_i32, %c0_i32_0 : i32, i32, i32, i32
  }
  func.func @transform_1(%arg0: i32, %arg1: i32) -> (i32, i32, i32, i32) {
    %c2_i32 = arith.constant 2 : i32
    %0 = arith.muli %arg0, %c2_i32 : i32
    %1 = arith.addi %0, %arg1 : i32
    %c0_i32 = arith.constant 0 : i32
    %c0_i32_0 = arith.constant 0 : i32
    %c0_i32_1 = arith.constant 0 : i32
    %c0_i32_2 = arith.constant 0 : i32
    return %1, %c0_i32, %c0_i32_0, %c0_i32_1 : i32, i32, i32, i32
  }
  func.func @transform_2(%arg0: i32, %arg1: i32) -> (i32, i32) {
    %c0_i32 = arith.constant 0 : i32
    %c0_i32_0 = arith.constant 0 : i32
    %c0_i32_1 = arith.constant 0 : i32
    return %c0_i32, %c0_i32_0 : i32, i32
  }
  func.func @transform_3(%arg0: i32, %arg1: i32) -> (i32, i32) {
    %c0_i32 = arith.constant 0 : i32
    %c0_i32_0 = arith.constant 0 : i32
    %c0_i32_1 = arith.constant 0 : i32
    return %c0_i32, %c0_i32_0 : i32, i32
  }
  func.func @transform_4(%arg0: i32, %arg1: i32) -> (i32, i32, i32, i32) {
    %c0_i32 = arith.constant 0 : i32
    %c0_i32_0 = arith.constant 0 : i32
    %c0_i32_1 = arith.constant 0 : i32
    %c0_i32_2 = arith.constant 0 : i32
    %c0_i32_3 = arith.constant 0 : i32
    return %c0_i32, %c0_i32_0, %c0_i32_1, %c0_i32_2 : i32, i32, i32, i32
  }
  func.func @transform_5(%arg0: i32, %arg1: i32) -> (i32, i32) {
    %c0_i32 = arith.constant 0 : i32
    %c0_i32_0 = arith.constant 0 : i32
    %c0_i32_1 = arith.constant 0 : i32
    return %c0_i32, %c0_i32_0 : i32, i32
  }
  func.func @transform_6(%arg0: i32, %arg1: i32) -> (i32, i32) {
    %c0_i32 = arith.constant 0 : i32
    %c0_i32_0 = arith.constant 0 : i32
    %c0_i32_1 = arith.constant 0 : i32
    return %c0_i32, %c0_i32_0 : i32, i32
  }
  func.func @transform_7(%arg0: i32, %arg1: i32) -> (i32, i32) {
    %c0_i32 = arith.constant 0 : i32
    %c0_i32_0 = arith.constant 0 : i32
    %c0_i32_1 = arith.constant 0 : i32
    return %c0_i32, %c0_i32_0 : i32, i32
  }
  func.func @transform_8(%arg0: i32, %arg1: i32) -> (i32, i32, i32, i32) {
    %c0_i32 = arith.constant 0 : i32
    %c0_i32_0 = arith.constant 0 : i32
    %c0_i32_1 = arith.constant 0 : i32
    return %arg0, %arg1, %c0_i32, %c0_i32_0 : i32, i32, i32, i32
  }
}

</mosaic_0001>

<bundles_post_ra>
// kernel: tpu_custom_call.1
= control target key start
LH: loop header
LB: loop body
LE: loop exit
PB: predicated region body
PF: predicated region fallthrough
CT: control target
= control target key end

     0   :  { %s8152_s0 = inlined_call_operand.hbm [shape: bf16[2,16,16,128], index: 0, kind: input, shape index: {}]   ;;  %s8153_s1 = inlined_call_operand.hbm [shape: bf16[4,2,16,128], index: 1, kind: input, shape index: {}]   ;;  %s8154_s2 = inlined_call_operand.hbm [shape: bf16[128,128], index: 2, kind: input, shape index: {}]   ;;  %s8155_s3 = inlined_call_operand.vmem [shape: f32[1,128], index: 3, kind: input, shape index: {}]   ;;  %s8156_s4 = inlined_call_operand.hbm [shape: bf16[3,3,128,128], index: 4, kind: input, shape index: {}]   ;;  %s8157_s5 = inlined_call_operand.vmem [shape: f32[1,128], index: 5, kind: input, shape index: {}]   ;;  %s8158_s6 = inlined_call_operand.hbm [shape: bf16[128,128], index: 6, kind: input, shape index: {}]   ;;  %s8159_s7 = inlined_call_operand.vmem [shape: f32[1,128], index: 7, kind: input, shape index: {}]   ;;  %s8160_s8 = inlined_call_operand.hbm [shape: bf16[2,16,16,128], index: 8, kind: output, shape index: {}]  }
   0x1   :  { %8185 = sst [smem:[#allocation29_spill]] %s8152_s0 }
   0x2   :  { %8186 = sst [smem:[#allocation30_spill]] %s8154_s2 }
   0x3   :  { %8187 = sst [smem:[#allocation31_spill]] %s8155_s3 }
   0x4   :  { %8188 = sst [smem:[#allocation32_spill]] %s8156_s4 }
   0x5   :  { %8189 = sst [smem:[#allocation33_spill]] %s8157_s5 }
   0x6   :  { %8190 = sst [smem:[#allocation34_spill]] %s8158_s6 }
   0x7   :  { %8191 = sst [smem:[#allocation35_spill]] %s8159_s7 }
   0x8   :  { %8192 = sst [smem:[#allocation36_spill]] %s8160_s8 }
   0x9   :  { %13 = vsyncpa [#allocation4], 0 }
   0xa   :  { %15 = vsyncpa [#allocation4 + $0x1], 0 }
   0xb   :  { %16 = vsyncpa [#allocation7], 0 }
   0xc   :  { %18 = vsyncpa [#allocation7 + $0x1], 0 }
   0xd   :  { %19 = vsyncpa [#allocation10], 0 }
   0xe   :  { %20 = vsyncpa [#allocation5], 0 }
   0xf   :  { %22 = vsyncpa [#allocation5 + $0x1], 0  ;;  %s6555_s27 = smov 0   ;;  %s6557_s28 = smov 0  }
  0x10   :  { %s6559_s29 = smov 0   ;;  %s6561_s30 = smov 0  }
  0x11   :  { %s6563_s9 = smov 0   ;;  %s6565_s10 = smov 0  }
  0x12   :  { %s6567_s11 = smov 0   ;;  %s6569_s12 = smov 0  }
  0x13   :  { %s6571_s13 = smov 0   ;;  %s6573_s14 = smov 0  }
  0x14   :  { %s6575_s15 = smov 0  }
  0x15 LB: > { %8193 = sst [smem:[#allocation18_spill]] %s6467_s30  ;;  %s6609_s16 = sadd.s32 4294967295, %s6495_s15   ;;  %s6495_s15 = sphi %s6575_s15, %s28_s15   ;;  %s6491_s14 = sphi %s6573_s14, %s8290_s14   ;;  %s6487_s13 = sphi %s6571_s13, %s8289_s13   ;;  %s6483_s12 = sphi %s6569_s12, %s8288_s12   ;;  %s6479_s11 = sphi %s6567_s11, %s8281_s11   ;;  %s6475_s10 = sphi %s6565_s10, %s8287_s10   ;;  %s6471_s9 = sphi %s6563_s9, %s8286_s9   ;;  %s6467_s30 = sphi %s6561_s30, %s8285_s30   ;;  %s6463_s29 = sphi %s6559_s29, %s8284_s29   ;;  %s6459_s28 = sphi %s6557_s28, %s8283_s28   ;;  %s6455_s27 = sphi %s6555_s27, %s8282_s27  }
  0x16   : > { %8194 = sst [smem:[#allocation19_spill]] %s6479_s11  ;;  %s4854_s17 = sadd.s32 4294967294, %s6495_s15  }
  0x17   : > { %8195 = sst [smem:[#allocation20_spill]] %s6483_s12  ;;  %p62_p0 = scmp.ne.s32.totalorder %s6471_s9, %s6467_s30 }
  0x18   : > { %8196 = sst [smem:[#allocation21_spill]] %s6487_s13  ;;  %p8164_p1 = scmp.eq.s32.totalorder %s6609_s16, 0 }
  0x19   : > { %p92_p2 = scmp.ne.s32.totalorder %s6459_s28, %s6455_s27  ;;  %p250_p5 = scmp.eq.s32.totalorder %s4854_s17, 3 }
  0x1a   : > { %p6619_p4 = por %p8164_p1, %p62_p0  ;;  %p4857_p7 = scmp.ge.s32.totalorder %s6495_s15, 1 }
  0x1b   : > { %p6625_p6 = por %p92_p2, %p8164_p1  ;;  %p6630_p8 = por %p250_p5, %p62_p0 }
  0x1c   : > { %s8197_s18 = scalar_select %p6619_p4, 1, 0 }
  0x1d   : > { %s8198_s19 = scalar_select %p6625_p6, 1, 0 }
  0x1e   : > { %s8200_s20 = scalar_select %p6630_p8, 1, 0 }
  0x1f   : > { %8199 = sst [smem:[#allocation22_spill]] %s8198_s19  ;;  %p257_p9 = scmp.lt.s32.totalorder %s6495_s15, 5 }
  0x20   : > { %8201 = sst [smem:[#allocation23_spill]] %s8200_s20  ;;  %s6497_s22 = smov [#allocation8]  }
  0x21   : > { %p6635_p10 = pnand %p4857_p7, %p257_p9  ;;  %s269_s23 = sshll.u32 %s6497_s22, 4  ;;  %s6639_s23 = int_to_ptr.vmem [resolvable:$true] %s269_s23 }
  0x22   : > { %s6498_s25 = smov [#allocation9]   ;;  %s6499_s27 = smov [#allocation11]  }
  0x23   : > { %s8202_s21 = scalar_select %p6635_p10, 1, 0 }
  0x24   : > { %p5941_p11 = pneg %p6635_p10  ;;  %s285_s26 = sshll.u32 %s6498_s25, 4  ;;  %s6649_s26 = int_to_ptr.vmem [resolvable:$true] %s285_s26 }
  0x25   : > { %s6651_s17 = sshll.u32 %s6499_s27, 4  ;;  %s8204_s2 = sld [smem:[#allocation30_spill]]  ;;  %s302_s17 = int_to_ptr.vmem [resolvable:$true] %s6651_s17 }
  0x26   : > { %p6645_p12 = pnand %p5941_p11, %p8164_p1 }
  0x28   : > { %p6661_p0 = pneg %p6645_p12 }
  0x2b   : > { %s6217_s22 = scalar_lea.hbm %s8204_s2, 1024 }
  0x2c   : > { %p6218_p13 = scmp.ne.s32.totalorder %s8204_s2, %s6217_s22  ;;  %p6224_p7 = scmp.lt.u32.totalorder %s6217_s22, %s8204_s2 }
  0x2e   : > { %p6220_p2 = pnand %p6661_p0, %p6218_p13 }
  0x30   : > { %p6221_p5 = pneg %p6220_p2 }
  0x32   : > { %p6226_p9 = pnand %p6224_p7, %p6221_p5 }
  0x34   : > { %6229 = shalt.err (!%p6226_p9)
}
  0x35   : > { %s6230_s8 = scalar_lea.vmem %s6639_s23, 1024  ;;  %p6238_p8 = scmp.lt.s32.totalorder %s6639_s23, %s6639_s23 }
  0x36   : > { %p6231_p11 = scmp.ne.s32.totalorder %s6639_s23, %s6230_s8  ;;  %p6239_p6 = scmp.lt.s32.totalorder %s6230_s8, %s6230_s8 }
  0x38   : > { %p6233_p1 = pnand %p6231_p11, %p6661_p0  ;;  %p6240_p13 = por %p6239_p6, %p6238_p8 }
  0x3a   : > { %p6234_p3 = pneg %p6233_p1 }
  0x3c   : > { %p6241_p2 = pnand %p6240_p13, %p6234_p3 }
  0x3e   : > { %6244 = shalt.err (!%p6241_p2)
}
  0x3f   : > { %s8173_s30 = smov 64   ;;  %s8174_s12 = smov 4  }
  0x40   : > { %5944 = dma.hbm_to_vmem [thread:$0]  (!%p6645_p12), %s8204_s2, 1024, %s6639_s23, [#allocation7], %s8173_s30, %s8173_s30, %s8174_s12  }
  0x41   : > { %s8206_s4 = sld [smem:[#allocation32_spill]] }
  0x47   : > { %s6245_s8 = scalar_lea.hbm %s8206_s4, 9216 }
  0x48   : > { %p6246_p1 = scmp.ne.s32.totalorder %s8206_s4, %s6245_s8  ;;  %p6252_p8 = scmp.lt.u32.totalorder %s6245_s8, %s8206_s4 }
  0x4a   : > { %p6248_p3 = pnand %p6246_p1, %p6661_p0 }
  0x4c   : > { %p6249_p6 = pneg %p6248_p3 }
  0x4e   : > { %p6254_p5 = pnand %p6252_p8, %p6249_p6 }
  0x50   : > { %6257 = shalt.err (!%p6254_p5)
}
  0x51   : > { %s6258_s23 = scalar_lea.vmem %s6649_s26, 9216  ;;  %p6266_p13 = scmp.lt.s32.totalorder %s6649_s26, %s6649_s26 }
  0x52   : > { %p6259_p7 = scmp.ne.s32.totalorder %s6649_s26, %s6258_s23  ;;  %p6267_p2 = scmp.lt.s32.totalorder %s6258_s23, %s6258_s23 }
  0x54   : > { %p6261_p9 = pnand %p6259_p7, %p6661_p0  ;;  %p6268_p1 = por %p6267_p2, %p6266_p13 }
  0x56   : > { %p6262_p11 = pneg %p6261_p9 }
  0x58   : > { %p6269_p3 = pnand %p6268_p1, %p6262_p11 }
  0x5a   : > { %6272 = shalt.err (!%p6269_p3)
}
  0x5b   : > { %5947 = dma.hbm_to_vmem [thread:$0]  (!%p6645_p12), %s8206_s4, 9216, %s6649_s26, [#allocation10], %s8173_s30, %s8173_s30, %s8174_s12  }
  0x5c   : > { %s8207_s6 = sld [smem:[#allocation34_spill]] }
  0x62   : > { %s6273_s20 = scalar_lea.hbm %s8207_s6, 1024 }
  0x63   : > { %p6274_p6 = scmp.ne.s32.totalorder %s8207_s6, %s6273_s20  ;;  %p6280_p7 = scmp.lt.u32.totalorder %s6273_s20, %s8207_s6 }
  0x65   : > { %p6276_p8 = pnand %p6274_p6, %p6661_p0 }
  0x67   : > { %p6277_p5 = pneg %p6276_p8 }
  0x69   : > { %p6282_p9 = pnand %p6280_p7, %p6277_p5 }
  0x6b   : > { %6285 = shalt.err (!%p6282_p9)
}
  0x6c   : > { %s6286_s23 = scalar_lea.vmem %s302_s17, 1024  ;;  %p6294_p1 = scmp.lt.s32.totalorder %s302_s17, %s302_s17 }
  0x6d   : > { %p6287_p11 = scmp.ne.s32.totalorder %s302_s17, %s6286_s23  ;;  %p6295_p3 = scmp.lt.s32.totalorder %s6286_s23, %s6286_s23 }
  0x6f   : > { %p6289_p13 = pnand %p6287_p11, %p6661_p0  ;;  %p6296_p4 = por %p6295_p3, %p6294_p1 }
  0x71   : > { %p6290_p2 = pneg %p6289_p13 }
  0x73   : > { %p6297_p10 = pnand %p6296_p4, %p6290_p2 }
  0x75   : > { %6300 = shalt.err (!%p6297_p10)
}
  0x76   : > { %5950 = dma.hbm_to_vmem [thread:$0]  (!%p6645_p12), %s8207_s6, 1024, %s302_s17, [#allocation10], %s8173_s30, %s8173_s30, %s8174_s12  }
  0x77   : > { %p8172_p4 = scmp.eq.s32.totalorder %s6495_s15, 0  ;;  %p56_p10 = scmp.ne.s32.totalorder %s6475_s10, %s6471_s9 }
  0x78   : > { %p8171_p0 = scmp.lt.s32.totalorder %s6495_s15, 4  ;;  %s318_s24 = sand.u32 1, %s6475_s10  }
  0x79   : > { %p58_p6 = por %p8172_p4, %p56_p10  ;;  %p8208_p8 = scmp.eq.s32.totalorder %s6609_s16, 3 }
  0x7a   : > { %s4862_s11 = sshll.u32 %s318_s24, 6  ;;  %s5074_s19 = sshll.u32 %s6487_s13, 4 }
  0x7b   : > { %p6743_p5 = por %p8208_p8, %p56_p10  ;;  %s4865_s20 = sshll.u32 %s6491_s14, 5 }
  0x7c   : > { %s322_s22 = scalar_lea.vmem [#allocation3], %s4862_s11  ;;  %s329_s27 = sadd.s32 %s5074_s19, %s4865_s20 }
  0x7d   : > { %s8209_s5 = scalar_select %p6743_p5, 1, 0 }
  0x7e   : > { %s332_s25 = sshll.u32 %s322_s22, 4  ;;  %s4866_s17 = sshll.u32 %s329_s27, 6  ;;  %s6749_s25 = int_to_ptr.vmem [resolvable:$true] %s332_s25 }
  0x7f   : > { %8210 = sst [smem:[#allocation24_spill]] %s8209_s5  ;;  %p6753_p12 = pnand %p8171_p0, %p58_p6 }
  0x80   : > { %s8212_s0 = sld [smem:[#allocation29_spill]]  ;;  %s6762_s11 = scalar_lea.sflag [#allocation4], %s318_s24 }
  0x81   : > { %p6303_p9 = pneg %p6753_p12 }
  0x86   : > { %s6760_s3 = scalar_lea.hbm %s8212_s0, %s4866_s17  ;;  %s6306_s27 = scalar_lea.hbm %s8212_s0, 4096 }
  0x87   : > { %s6301_s19 = scalar_lea.hbm %s6760_s3, 1024  ;;  %p6307_p2 = scmp.lt.u32.totalorder %s6760_s3, %s8212_s0 }
  0x88   : > { %p6302_p7 = scmp.ne.s32.totalorder %s6760_s3, %s6301_s19  ;;  %p6308_p1 = scmp.lt.u32.totalorder %s6306_s27, %s6301_s19 }
  0x89   : > { %p6310_p10 = scmp.lt.u32.totalorder %s6301_s19, %s6760_s3 }
  0x8a   : > { %p6304_p11 = pnand %p6303_p9, %p6302_p7  ;;  %p6309_p3 = por %p6308_p1, %p6307_p2 }
  0x8c   : > { %p6305_p13 = pneg %p6304_p11  ;;  %p6311_p6 = por %p6310_p10, %p6309_p3 }
  0x8e   : > { %p6312_p8 = pnand %p6311_p6, %p6305_p13 }
  0x90   : > { %6315 = shalt.err (!%p6312_p8)
}
  0x91   : > { %s6316_s24 = scalar_lea.vmem %s6749_s25, 1024  ;;  %s6502_s26 = smov [#allocation3]  }
  0x92   : > { %p6317_p7 = scmp.ne.s32.totalorder %s6749_s25, %s6316_s24  ;;  %s6321_s20 = sshll.u32 %s6502_s26, 4  ;;  %s6322_s20 = int_to_ptr.vmem [resolvable:$false] %s6321_s20 }
  0x93   : > { %s6323_s22 = scalar_lea.vmem %s6322_s20, 2048  ;;  %p6324_p4 = scmp.lt.s32.totalorder %s6749_s25, %s6322_s20 }
  0x94   : > { %p6319_p11 = pnand %p6317_p7, %p6303_p9  ;;  %p6325_p2 = scmp.lt.s32.totalorder %s6323_s22, %s6316_s24 }
  0x96   : > { %p6320_p0 = pneg %p6319_p11  ;;  %p6326_p1 = por %p6325_p2, %p6324_p4 }
  0x98   : > { %p6327_p3 = pnand %p6326_p1, %p6320_p0 }
  0x9a   : > { %6330 = shalt.err (!%p6327_p3)
}
  0x9b   : > { %5954 = dma.hbm_to_vmem [thread:$0]  (!%p6753_p12), %s6760_s3, 1024, %s6749_s25, %s6762_s11, %s8173_s30, %s8173_s30, %s8174_s12  }
  0x9c   : > { %s37_s8 = sadd.s32 1, %s6487_s13  ;;  %s40_s19 = sadd.s32 1, %s6491_s14 }
  0x9d   : > { %p38_p4 = scmp.ge.s32.totalorder %s37_s8, 2  ;;  %s4855_s27 = sshll.u32 %s6491_s14, 1 }
  0x9e   : > { %s73_s17 = sadd.s32 %s6487_s13, %s4855_s27  ;;  %s79_s23 = sadd.s32 1, %s6463_s29 }
  0x9f   : > { %s8292_s8 = smov (%p38_p4, %s37_s8), 0  ;;  %s8294_s19 = smov (!%p38_p4, %s40_s19), %s6491_s14 }
  0xa0   : > { %s45_s24 = ssub.s32 %s6487_s13, %s8292_s8  ;;  %p86_p0 = scmp.ne.s32.totalorder %s6463_s29, %s6459_s28 }
  0xa1   : > { %p42_p9 = scmp.ge.s32.totalorder %s8294_s19, 2  ;;  %s342_s26 = sand.u32 1, %s6495_s15  }
  0xa2   : > { %p8213_p12 = scmp.eq.s32.totalorder %s6495_s15, 0  ;;  %s344_s3 = sand.u32 1, %s6463_s29  }
  0xa3   : > { %s8296_s19 = smov (%p42_p9, %s8294_s19), 0  ;;  %s5075_s11 = sshll.u32 %s73_s17, 8 }
  0xa4   : > { %p6808_p13 = por %p86_p0, %p8213_p12  ;;  %s44_s20 = ssub.s32 %s6491_s14, %s8296_s19 }
  0xa5   : > { %s4856_s22 = sshll.u32 %s8296_s19, 1  ;;  %s46_s27 = sor.u32 %s45_s24, %s44_s20 }
  0xa6   : > { %s75_s30 = sadd.s32 %s4856_s22, %s8292_s8  ;;  %p47_p10 = scmp.eq.s32.totalorder %s46_s27, 0 }
  0xa7   : > { %s76_s12 = ssub.s32 %s73_s17, %s75_s30  ;;  %s4867_s7 = sshll.u32 %s344_s3, 4 }
  0xa8   : > { %p77_p6 = scmp.eq.s32.totalorder %s76_s12, 0  ;;  %s8215_s0 = sadd.s32 1, %s6475_s10 }
  0xa9   : > { %s6822_s2 = scalar_select %p47_p10, %s6475_s10, %s8215_s0  }
  0xaa   : > { %s6825_s4 = scalar_select %p77_p6, %s6463_s29, %s79_s23  }
  0xab   : > { %s6830_s5 = scalar_lea.hbm %s8153_s1, %s5075_s11  ;;  %s346_s24 = scalar_lea.vmem [#allocation6], %s4867_s7 }
  0xac   : > { %s355_s20 = sshll.u32 %s346_s24, 4  ;;  %p8216_p8 = scmp.lt.s32.totalorder %s6495_s15, 4  ;;  %s6840_s20 = int_to_ptr.vmem [resolvable:$true] %s355_s20 }
  0xad   : > { %s6842_s0 = scalar_lea.sflag [#allocation7], %s342_s26  ;;  %s6331_s6 = scalar_lea.hbm %s6830_s5, 256 }
  0xae   : > { %p6836_p7 = pnand %p8216_p8, %p6808_p13  ;;  %p6332_p11 = scmp.ne.s32.totalorder %s6830_s5, %s6331_s6 }
  0xaf   : > { %s6336_s7 = scalar_lea.hbm %s8153_s1, 1024  ;;  %p6337_p4 = scmp.lt.u32.totalorder %s6830_s5, %s8153_s1 }
  0xb0   : > { %p6333_p2 = pneg %p6836_p7  ;;  %p6338_p0 = scmp.lt.u32.totalorder %s6336_s7, %s6331_s6 }
  0xb1   : > { %p6340_p12 = scmp.lt.u32.totalorder %s6331_s6, %s6830_s5 }
  0xb2   : > { %p6334_p1 = pnand %p6333_p2, %p6332_p11  ;;  %p6339_p9 = por %p6338_p0, %p6337_p4 }
  0xb4   : > { %p6335_p3 = pneg %p6334_p1  ;;  %p6341_p13 = por %p6340_p12, %p6339_p9 }
  0xb6   : > { %p6342_p10 = pnand %p6341_p13, %p6335_p3 }
  0xb8   : > { %6345 = shalt.err (!%p6342_p10)
}
  0xb9   : > { %s6346_s26 = scalar_lea.vmem %s6840_s20, 256  ;;  %s6503_s25 = smov [#allocation6]  }
  0xba   : > { %p6347_p6 = scmp.ne.s32.totalorder %s6840_s20, %s6346_s26  ;;  %s6351_s3 = sshll.u32 %s6503_s25, 4  ;;  %s6352_s3 = int_to_ptr.vmem [resolvable:$false] %s6351_s3 }
  0xbb   : > { %s6353_s11 = scalar_lea.vmem %s6352_s3, 512  ;;  %p6354_p1 = scmp.lt.s32.totalorder %s6840_s20, %s6352_s3 }
  0xbc   : > { %p6349_p8 = pnand %p6347_p6, %p6333_p2  ;;  %p6355_p4 = scmp.lt.s32.totalorder %s6353_s11, %s6346_s26 }
  0xbe   : > { %p6350_p11 = pneg %p6349_p8  ;;  %p6356_p0 = por %p6355_p4, %p6354_p1 }
  0xc0   : > { %p6357_p9 = pnand %p6356_p0, %p6350_p11 }
  0xc2   : > { %6360 = shalt.err (!%p6357_p9)
}
  0xc3   : > { %s8218_s22 = smov 4   ;;  %s8219_s27 = smov 64  }
  0xc4   : > { %5957 = dma.hbm_to_vmem [thread:$0]  (!%p6836_p7), %s6830_s5, 256, %s6840_s20, %s6842_s0, %s8219_s27, %s8219_s27, %s8218_s22  }
  0xc5   : > { %p8220_p2 = scmp.ne.s32.totalorder %s8202_s21, 0 }
  0xc7   : > { %367 = sbr.rel (%p8220_p2) target bundleno = 1377 (0x561), region = 52 }
  0xce   : > { %s6876_s24 = sand.u32 1, %s6471_s9   ;;  %p8221_p3 = scmp.ne.s32.totalorder %s8197_s18, 0 }
  0xcf   : > { %s4872_s6 = sshll.u32 %s6876_s24, 6  ;;  %s370_s13 = scalar_lea.sflag [#allocation4], %s6876_s24 }
  0xd0   : > { %s6882_s30 = scalar_lea.vmem [#allocation3], %s4872_s6 }
  0xd1   : > { %6434 = dma.done.wait (%p8221_p3), %s370_s13, 1024  }
  0xd2   : > { %6436 = vsyncadd (%p8221_p3), %s370_s13, 4294966272  ;;  %s8222_s21 = sld [smem:[#allocation22_spill]]  ;;  %s378_s5 = sand.u32 1, %s6609_s16  }
  0xd3   : > { %s380_s20 = sand.u32 1, %s6459_s28   ;;  %s379_s12 = scalar_lea.sflag [#allocation7], %s378_s5 }
  0xd4   : > { %s6890_s0 = sshll.u32 %s380_s20, 4 }
  0xd5   : > { %s382_s7 = scalar_lea.vmem [#allocation6], %s6890_s0 }
  0xd8   : > { %p8223_p7 = scmp.ne.s32.totalorder %s8222_s21, 0 }
  0xda   : > { %6438 = dma.done.wait (%p8223_p7), %s379_s12, 256  }
  0xdb   : > { %6440 = vsyncadd (%p8223_p7), %s379_s12, 4294967040  ;;  %p8224_p12 = scmp.eq.s32.totalorder %s6609_s16, 0 }
  0xdd   : > { %6442 = dma.done.wait (%p8224_p12), [#allocation7], 1024   ;;  %p8225_p13 = pmov %p8224_p12 }
  0xde   : > { %p8226_p10 = pmov %p8224_p12 }
  0xdf   : > { %6444 = vsyncadd (%p8225_p13), [#allocation7], 4294966272 }
  0xe0   : > { %6446 = dma.done.wait (%p8226_p10), [#allocation10], 10240   ;;  %p8227_p6 = pmov %p8226_p10 }
  0xe1   : > { %v6068_v0 = vld [vmem:[#allocation8] sm:$0xff]   ;;  %v6069_v1 = vld [vmem:[#allocation8 + $0x8] sm:$0xff]   ;;  %v6070_v2 = vld [vmem:[#allocation8 + $0x10] sm:$0xff]   ;;  %vm449_vm0 = vcmask 1042433   ;;  %vm450_vm1 = vsmask.f32 2310 }
  0xe2   : > { %6448 = vsyncadd (%p8227_p6), [#allocation10], 4294957056  ;;  %5355 = vmatprep.subr.bf16.mxu1 %v6068_v0  ;;  %v6071_v3 = vld [vmem:[#allocation8 + $0x18] sm:$0xff]   ;;  %v494_v4 = vld [vmem:[%s6882_s30] sm:$0xff]   ;;  %vm455_vm2 = vcmask 1043458   ;;  %vm443_vm6 = vcmask 1041408  }
  0xe3   : > { %5356 = vmatpush3.bf16.msra.mxu1 %v6068_v0  ;;  %vm456_vm3 = vsmask.f32 3338  ;;  %vm6906_vm4 = vmand %vm449_vm0, %vm450_vm1  ;;  %5371 = vmatprep.mubr.bf16.mxu1 %v494_v4  ;;  %v6072_v6 = vld [vmem:[#allocation8 + $0x20] sm:$0xff]   ;;  %v452_v7 = vld [vmem:[#allocation2 + $0x10] sm:$0x6]  ;;  %vm437_vm9 = vcmask 1040384  }
  0xe4   : > { %5357 = vmatprep.subr.bf16.mxu1 %v6069_v1  ;;  %vm457_vm5 = vmand %vm455_vm2, %vm456_vm3  ;;  %v453_v8 = vsel %vm6906_vm4, 0, %v452_v7  ;;  %v458_v9 = vld [vmem:[#allocation2 + $0x18] sm:$0xc]  ;;  %v476_v10 = vld [vmem:[#allocation2 + $0x3c] sm:$0xc]  ;;  %vm488_vm12 = vcmask 1043457  }
  0xe5   : > { %v6073_v11 = vld [vmem:[#allocation8 + $0x28] sm:$0xff]   ;;  %454 = vst [vmem:[#allocation2 + $0x10] sm:$0x6] %v453_v8  ;;  %v459_v12 = vsel %vm457_vm5, 0, %v458_v9  ;;  %v477_v13 = vsel %vm457_vm5, 0, %v476_v10  ;;  %v6074_v14 = vld [vmem:[#allocation8 + $0x30] sm:$0xff]  }
  0xe6   : > { %460 = vst [vmem:[#allocation2 + $0x18] sm:$0xc] %v459_v12  ;;  %478 = vst [vmem:[#allocation2 + $0x3c] sm:$0xc] %v477_v13  ;;  %v6075_v15 = vld [vmem:[#allocation8 + $0x38] sm:$0xff]   ;;  %v496_v16 = vld [vmem:[%s6882_s30 + $0x8] sm:$0xff]  }
  0xe7   : > { %5358 = vmatpush3.bf16.msra.mxu1 %v6069_v1  ;;  %v498_v17 = vld [vmem:[%s6882_s30 + $0x10] sm:$0xff]   ;;  %v500_v18 = vld [vmem:[%s6882_s30 + $0x18] sm:$0xff]   ;;  %v502_v19 = vld [vmem:[%s6882_s30 + $0x20] sm:$0xff]   ;;  %vm444_vm7 = vsmask.f32 1282  ;;  %vm461_vm15 = vcmask 1043459  }
  0xe8   : > { %5359 = vmatprep.subr.bf16.mxu1 %v6070_v2  ;;  %v504_v20 = vld [vmem:[%s6882_s30 + $0x28] sm:$0xff]   ;;  %v506_v21 = vld [vmem:[%s6882_s30 + $0x30] sm:$0xff]   ;;  %v508_v22 = vld [vmem:[%s6882_s30 + $0x38] sm:$0xff]   ;;  %vm8180_vm10 = vsmask.f32 256  ;;  %v8183_v48 = vmov 0.0  }
  0xe9   : > { %v6084_v23 = vld [vmem:[%s382_s7] sm:$0xff]   ;;  %v6085_v24 = vld [vmem:[%s382_s7 + $0x8] sm:$0xff]   ;;  %vm6925_vm8 = vmand %vm443_vm6, %vm444_vm7  ;;  %vm489_vm13 = vsmask.f32 7942  ;;  %vm462_vm0 = vsmask.f32 7950  ;;  %5407 = vmatprep.subr.bf16.mxu0 %v8183_v48 }
  0xea   : > { %v446_v26 = vld [vmem:[#allocation2 + $0x8] sm:$0x3]  ;;  %vm6932_vm11 = vmand %vm437_vm9, %vm8180_vm10  ;;  %v467_v29 = vld [vmem:[#allocation2 + $0x24] sm:$0x1]  ;;  %vm8178_vm3 = vmmov 0   ;;  %s8238_s16 = sld [smem:[#allocation19_spill]] }
  0xeb   : > { %5360 = vmatpush3.bf16.msra.mxu1 %v6070_v2  ;;  %v447_v27 = vsel %vm6925_vm8, 0, %v446_v26  ;;  %v468_v30 = vsel %vm6932_vm11, 0, %v467_v29  ;;  %vm6938_vm14 = vmand %vm488_vm12, %vm489_vm13  ;;  %v491_v32 = vld [vmem:[#allocation2 + $0x58] sm:$0xe]  ;;  %v470_v34 = vld [vmem:[#allocation2 + $0x2c] sm:$0x3]  ;;  %5423 = vmatprep.mubr.msk.bf16.mxu0 %vm8178_vm3, %v8183_v48 }
  0xec   : > { %5361 = vmatprep.subr.bf16.mxu1 %v6071_v3  ;;  %448 = vst [vmem:[#allocation2 + $0x8] sm:$0x3] %v447_v27  ;;  %469 = vst [vmem:[#allocation2 + $0x24] sm:$0x1] %v468_v30  ;;  %v492_v33 = vsel %vm6938_vm14, 0, %v491_v32  ;;  %v471_v35 = vsel %vm6925_vm8, 0, %v470_v34 }
  0xed   : > { %493 = vst [vmem:[#allocation2 + $0x58] sm:$0xe] %v492_v33  ;;  %472 = vst [vmem:[#allocation2 + $0x2c] sm:$0x3] %v471_v35  ;;  %v464_v37 = vld [vmem:[#allocation2 + $0x20] sm:$0x8] }
  0xee   : > { %vm6946_vm1 = vmand %vm461_vm15, %vm462_vm0  ;;  %v473_v39 = vld [vmem:[#allocation2 + $0x34] sm:$0x6]  ;;  %v479_v40 = vld [vmem:[#allocation2 + $0x44] sm:$0x8]  ;;  %s8239_s23 = sld [smem:[#allocation31_spill]]  ;;  %vm978_vm9 = vcmask 1042432  }
  0xef   : > { %5362 = vmatpush3.bf16.msra.mxu1 %v6071_v3  ;;  %v465_v38 = vsel %vm6946_vm1, 0, %v464_v37  ;;  %v474_v41 = vsel %vm6906_vm4, 0, %v473_v39  ;;  %v480_v42 = vsel %vm6946_vm1, 0, %v479_v40  ;;  %v482_v43 = vld [vmem:[#allocation2 + $0x48] sm:$0x1]  ;;  %v6086_v46 = vld [vmem:[#allocation9] sm:$0xff]  }
  0xf0   : > { %5363 = vmatprep.subr.bf16.mxu1 %v6072_v6  ;;  %466 = vst [vmem:[#allocation2 + $0x20] sm:$0x8] %v465_v38  ;;  %475 = vst [vmem:[#allocation2 + $0x34] sm:$0x6] %v474_v41  ;;  %v483_v44 = vsel %vm6932_vm11, 0, %v482_v43  ;;  %v6087_v49 = vld [vmem:[#allocation9 + $0x8] sm:$0xff]  }
  0xf1   : > { %481 = vst [vmem:[#allocation2 + $0x44] sm:$0x8] %v480_v42  ;;  %484 = vst [vmem:[#allocation2 + $0x48] sm:$0x1] %v483_v44  ;;  %v485_v45 = vld [vmem:[#allocation2 + $0x50] sm:$0x3] }
  0xf2   : > { %v486_v47 = vsel %vm6925_vm8, 0, %v485_v45  ;;  %v6088_v50 = vld [vmem:[#allocation9 + $0x40] sm:$0xff]   ;;  %v6089_v51 = vld [vmem:[#allocation9 + $0x10] sm:$0xff]   ;;  %v6090_v54 = vld [vmem:[#allocation9 + $0x48] sm:$0xff]   ;;  %p814_p8 = scmp.lt.s32.totalorder %s8238_s16, 1  ;;  %p811_p11 = scmp.gt.s32.totalorder %s8238_s16, 0 }
  0xf3   : > { %5364 = vmatpush3.bf16.msra.mxu1 %v6072_v6  ;;  %487 = vst [vmem:[#allocation2 + $0x50] sm:$0x3] %v486_v47  ;;  %v440_v52 = vld [vmem:[#allocation2] sm:$0x1]  ;;  %5408 = vmatpush3.bf16.msra.mxu0 %v6088_v50  ;;  %v6091_v55 = vld [vmem:[#allocation9 + $0x18] sm:$0xff]   ;;  %v6092_v56 = vld [vmem:[#allocation9 + $0x50] sm:$0xff]  }
  0xf4   : > { %5365 = vmatprep.subr.bf16.mxu1 %v6073_v11  ;;  %v441_v53 = vsel %vm6932_vm11, 0, %v440_v52  ;;  %5409 = vmatprep.subr.bf16.mxu0 %v8183_v48  ;;  %v6093_v57 = vld [vmem:[#allocation9 + $0x20] sm:$0xff]   ;;  %v6094_v58 = vld [vmem:[#allocation9 + $0x58] sm:$0xff]   ;;  %v6095_v59 = vld [vmem:[#allocation9 + $0x28] sm:$0xff]   ;;  %s815_s26 = scalar_select %p814_p8, 1, 0 }
  0xf5   : > { %442 = vst [vmem:[#allocation2] sm:$0x1] %v441_v53  ;;  %v6096_v60 = vld [vmem:[#allocation9 + $0x60] sm:$0xff]   ;;  %v6097_v61 = vld [vmem:[#allocation9 + $0x30] sm:$0xff]   ;;  %v6098_v62 = vld [vmem:[#allocation9 + $0x68] sm:$0xff]   ;;  %vm848_vm13 = vcmask 1043456  }
  0xf6   : > { %v6099_v63 = vld [vmem:[#allocation9 + $0x38] sm:$0xff]   ;;  %s6991_s25 = scalar_select %p811_p11, 1, 0  ;;  %vm972_vm4 = vsmask.f32 7946 }
  0xf7   : > { %5366 = vmatpush3.bf16.msra.mxu1 %v6073_v11  ;;  %5410 = vmatpush3.bf16.msra.mxu0 %v6090_v54  ;;  %s816_s3 = scvt.s32.f32 %s815_s26  ;;  %vm947_vm5 = vsmask.f32 2304  ;;  %vm948_vm7 = vsmask.f32 6416  ;;  %vm867_vm8 = vsmask.f32 1280  ;;  %vm7004_vm0 = vmand %vm455_vm2, %vm972_vm4 }
  0xf8   : > { %5367 = vmatprep.subr.bf16.mxu1 %v6074_v14  ;;  %5411 = vmatprep.subr.bf16.mxu0 %v8183_v48  ;;  %s813_s11 = scvt.s32.f32 %s6991_s25  ;;  %vm868_vm12 = vsmask.f32 5392  ;;  %vm849_vm15 = vsmask.f32 7938  ;;  %v935_v42 = vld [vmem:[#allocation2 + $0x8] sm:$0xe]  ;;  %vm7028_vm2 = vmand %vm978_vm9, %vm947_vm5 }
  0xf9   : > { %vm989_vm4 = vsmask.f32 7440  ;;  %vm7020_vm10 = vmor %vm867_vm8, %vm868_vm12  ;;  %vm8255_vm9 = vsmask.f32 256  ;;  %s8273_s13 = sld [smem:[#allocation33_spill]]  ;;  %s8274_s20 = sld [smem:[#allocation35_spill]] }
  0xfa   : > { %v7000_v26 = vstv %s813_s11  ;;  %vm7036_vm12 = vmand %vm443_vm6, %vm867_vm8  ;;  %s8053_s0 = scalar_lea.vmem [#allocation12], %s4872_s6  ;;  %s8275_s6 = sld [smem:[#allocation20_spill]] }
  0xfb   : > { %5368 = vmatpush3.bf16.msra.mxu1 %v6074_v14  ;;  %5412 = vmatpush3.bf16.msra.mxu0 %v6092_v56  ;;  %vm7052_vm6 = vmand %vm848_vm13, %vm849_vm15  ;;  %s5112_s12 = sshll.u32 %s8238_s16, 4  ;;  %s4710_s16 = sshll.u32 %s8053_s0, 4  ;;  %s8082_s16 = int_to_ptr.vmem [resolvable:$true] %s4710_s16 }
  0xfc   : > { %5369 = vmatprep.subr.bf16.mxu1 %v6075_v15  ;;  %5413 = vmatprep.subr.bf16.mxu0 %v8183_v48  ;;  %s8277_s25 = sld [smem:[#allocation36_spill]]  ;;  %s4694_s11 = scalar_lea.sflag [#allocation5], %s6876_s24 }
  0xfd   : > { %s6361_s22 = scalar_lea.vmem %s8082_s16, 1024  ;;  %s6507_s27 = smov [#allocation12]  }
  0xfe   : > { %p6362_p1 = scmp.ne.s32.totalorder %s8082_s16, %s6361_s22 }
  0xff   : > { %5370 = vmatpush3.bf16.msra.mxu1 %v6075_v15  ;;  %5414 = vmatpush3.bf16.msra.mxu0 %v6094_v58 }
 0x100   : > { %5387 = vmatprep.subr.bf16.mxu1 %v6068_v0  ;;  %5415 = vmatprep.subr.bf16.mxu0 %v8183_v48  ;;  %s5070_s7 = sshll.u32 %s8275_s6, 5  ;;  %p6363_p4 = pnand %p6362_p1, %p6743_p5 }
 0x102   : > { %5372 = vmatmul.mubr.bf16.vlgmr.msra.gmra.mrb[0].mxu1 %v496_v16  ;;  %p6364_p0 = pneg %p6363_p4 }
 0x103   : > { %5388 = vmatpush3.bf16.msra.mxu1 %v6068_v0  ;;  %5375 = vmatprep.mubr.bf16.mxu1 %v498_v17  ;;  %v6100_v0 = vld [vmem:[#allocation9 + $0x70] sm:$0xff]  }
 0x104   : > { %5389 = vmatprep.subr.bf16.mxu1 %v6069_v1  ;;  %5416 = vmatpush3.bf16.msra.mxu0 %v6096_v60 }
 0x105   : > { %5417 = vmatprep.subr.bf16.mxu0 %v8183_v48 }
 0x107   : > { %5390 = vmatpush3.bf16.msra.mxu1 %v6069_v1  ;;  %v6103_v1 = vld [vmem:[#allocation9 + $0x78] sm:$0xff]  }
 0x108   : > { %5391 = vmatprep.subr.bf16.mxu1 %v6070_v2  ;;  %5418 = vmatpush3.bf16.msra.mxu0 %v6098_v62 }
 0x109   : > { %5419 = vmatprep.subr.bf16.mxu0 %v8183_v48 }
 0x10a   : > { %5376 = vmatmul.mubr.bf16.gmra.mrb[4].mxu1 %v500_v18 }
 0x10b   : > { %5392 = vmatpush3.bf16.msra.mxu1 %v6070_v2  ;;  %5379 = vmatprep.mubr.bf16.mxu1 %v502_v19  ;;  %v6989_v2 = vld [vmem:[%s8239_s23] ss:$0 sm:$0xff] }
 0x10c   : > { %5393 = vmatprep.subr.bf16.mxu1 %v6071_v3  ;;  %5420 = vmatpush3.bf16.msra.mxu0 %v6100_v0 }
 0x10d   : > { %5421 = vmatprep.subr.bf16.mxu0 %v8183_v48 }
 0x10f   : > { %5394 = vmatpush3.bf16.msra.mxu1 %v6071_v3 }
 0x110   : > { %5395 = vmatprep.subr.bf16.mxu1 %v6072_v6  ;;  %5422 = vmatpush3.bf16.msra.mxu0 %v6103_v1 }
 0x111   : > { %5511 = vmatprep.subr.bf16.mxu0 %v8183_v48 }
 0x112   : > { %5380 = vmatmul.mubr.bf16.gmra.mrb[8].mxu1 %v504_v20  ;;  %v6998_v20 = vstv %s816_s3 }
 0x113   : > { %5396 = vmatpush3.bf16.msra.mxu1 %v6072_v6  ;;  %5383 = vmatprep.mubr.bf16.mxu1 %v506_v21  ;;  %v974_v21 = vld [vmem:[#allocation2 + $0x10] sm:$0xc] }
 0x114   : > { %5397 = vmatprep.subr.bf16.mxu1 %v6073_v11 }
 0x117   : > { %5398 = vmatpush3.bf16.msra.mxu1 %v6073_v11 }
 0x118   : > { %5399 = vmatprep.subr.bf16.mxu1 %v6074_v14 }
 0x11a   : > { %5384 = vmatmul.mubr.bf16.gmra.mrb[12].mxu1 %v508_v22 }
 0x11b   : > { %5400 = vmatpush3.bf16.msra.mxu1 %v6074_v14  ;;  %5403 = vmatprep.mubr.bf16.mxu1 %v6084_v23 }
 0x11c   : > { %5401 = vmatprep.subr.bf16.mxu1 %v6075_v15 }
 0x11f   : > { %5402 = vmatpush3.bf16.msra.mxu1 %v6075_v15 }
 0x120   : > { %5459 = vmatprep.subr.bf16.mxu1 %v8183_v48 }
 0x122   : > { %5404 = vmatmul.mubr.bf16.vlgmr.msra.gmra.mrb[16].mxu1 %v6085_v24 }
 0x123   : > { %5460 = vmatpush3.bf16.msra.mxu1 %v6086_v46  ;;  %5475 = vmatprep.mubr.msk.bf16.mxu1 %vm8178_vm3, %v8183_v48  ;;  %vm7011_vm3 = vmor %vm947_vm5, %vm948_vm7  ;;  %vm826_vm7 = vsmask.f32 4368  ;;  %vm8252_vm5 = vsmask.f32 3328 }
 0x124   : > { %5461 = vmatprep.subr.bf16.mxu1 %v8183_v48  ;;  %vm7063_vm8 = vmor %vm8252_vm5, %vm989_vm4 }
 0x125   : > { %vm7069_vm15 = vmor %vm8255_vm9, %vm826_vm7 }
 0x126   : > { %vm8258_vm4 = vmmov %vm8252_vm5 }
 0x127   : > { %5462 = vmatpush3.bf16.msra.mxu1 %v6087_v49  ;;  %vm7082_vm7 = vmand %vm848_vm13, %vm8258_vm4  ;;  %vm3299_vm13 = vcmask 1044480  }
 0x128   : > { %5463 = vmatprep.subr.bf16.mxu1 %v8183_v48 }
 0x12b   : > { %5464 = vmatpush3.bf16.msra.mxu1 %v6089_v51 }
 0x12c   : > { %5465 = vmatprep.subr.bf16.mxu1 %v8183_v48 }
 0x12f   : > { %5466 = vmatpush3.bf16.msra.mxu1 %v6091_v55 }
 0x130   : > { %5467 = vmatprep.subr.bf16.mxu1 %v8183_v48 }
 0x133   : > { %5468 = vmatpush3.bf16.msra.mxu1 %v6093_v57 }
 0x134   : > { %5469 = vmatprep.subr.bf16.mxu1 %v8183_v48 }
 0x137   : > { %5470 = vmatpush3.bf16.msra.mxu1 %v6095_v59 }
 0x138   : > { %5471 = vmatprep.subr.bf16.mxu1 %v8183_v48 }
 0x13b   : > { %5472 = vmatpush3.bf16.msra.mxu1 %v6097_v61  ;;  %v980_v61 = vld [vmem:[#allocation2 + $0x18] sm:$0x7] }
 0x13c   : > { %5473 = vmatprep.subr.bf16.mxu1 %v8183_v48 }
 0x13f   : > { %5474 = vmatpush3.bf16.msra.mxu1 %v6099_v63 }
 0x140   : > { %5563 = vmatprep.subr.bf16.mxu1 %v8183_v48 }
 0x1d5   : > { %v5373_v3 = vpop.f32.mrb[0].mxu1 }
 0x1d6   : > { %v676_v4 = vadd.f32 %v5373_v3, %v6989_v2  ;;  %v667_v5 = vpop.f32.mrb[1].mxu1 }
 0x1d7   : > { %v668_v6 = vadd.f32 %v6989_v2, %v667_v5  ;;  %v5374_v7 = vpop.f32.mrb[2].mxu1 }
 0x1d8   : > { %v732_v8 = vmax.f32 %v676_v4, 0.0  ;;  %v679_v9 = vadd.f32 %v5374_v7, %v6989_v2  ;;  %v670_v10 = vpop.f32.mrb[3].mxu1  ;;  %v939_v4 = vld [vmem:[#allocation2 + $0x10] sm:$0x3] }
 0x1d9   : > { %v730_v11 = vmax.f32 %v668_v6, 0.0  ;;  %v671_v12 = vadd.f32 %v6989_v2, %v670_v10 }
 0x1da   : > { %v5082_v13 = vpack.c.bf16 %v732_v8, %v732_v8  ;;  %v733_v14 = vmax.f32 %v679_v9, 0.0 }
 0x1db   : > { %v5080_v15 = vpack.c.bf16 %v730_v11, %v730_v11  ;;  %v731_v16 = vmax.f32 %v671_v12, 0.0 }
 0x1dc   : > { %v951_v17 = vshrl.u32 %v5082_v13, 16  ;;  %v954_v18 = vshll.u32 %v5082_v13, 16  ;;  %v5083_v19 = vpack.c.bf16 %v733_v14, %v733_v14 }
 0x1dd   : > { %v914_v22 = vshrl.u32 %v5080_v15, 16  ;;  %v917_v23 = vshll.u32 %v5080_v15, 16  ;;  %v5081_v24 = vpack.c.bf16 %v731_v16, %v731_v16  ;;  %v5377_v25 = vpop.f32.mrb[4].mxu1 }
 0x1de   : > { %v953_v27 = vrot.slane %v951_v17, 5  ;;  %v956_v29 = vrot.slane %v954_v18, 6  ;;  %v960_v30 = vshrl.u32 %v5083_v19, 16  ;;  %v963_v32 = vshll.u32 %v5083_v19, 16  ;;  %v683_v33 = vpop.f32.mrb[5].mxu1 }
 0x1df   : > { %v916_v35 = vrot.slane %v914_v22, 6  ;;  %v919_v37 = vrot.slane %v917_v23, 7  ;;  %v923_v38 = vshrl.u32 %v5081_v24, 16  ;;  %v926_v39 = vshll.u32 %v5081_v24, 16  ;;  %v5378_v40 = vpop.f32.mrb[6].mxu1 }
 0x1e0   : > { %v957_v41 = vor.u32 %v956_v29, %v953_v27  ;;  %v962_v43 = vrot.slane %v960_v30, 5  ;;  %v965_v44 = vrot.slane %v963_v32, 6  ;;  %v692_v45 = vadd.f32 %v5377_v25, %v6989_v2  ;;  %v686_v46 = vpop.f32.mrb[7].mxu1  ;;  %v1013_v24 = vld [vmem:[#allocation2 + $0x18] sm:$0x8] }
 0x1e1   : > { %v920_v47 = vor.u32 %v919_v37, %v916_v35  ;;  %v925_v50 = vrot.slane %v923_v38, 6  ;;  %v928_v51 = vrot.slane %v926_v39, 7  ;;  %v684_v52 = vadd.f32 %v6989_v2, %v683_v33  ;;  %v1046_v33 = vld [vmem:[#allocation2 + $0x24] sm:$0xf] }
 0x1e2   : > { %v958_v53 = vrot.slane %v957_v41, 4  ;;  %v975_v54 = vsel %vm7004_vm0, %v957_v41, %v974_v21  ;;  %v966_v55 = vor.u32 %v965_v44, %v962_v43  ;;  %v736_v57 = vmax.f32 %v692_v45, 0.0 }
 0x1e3   : > { %976 = vst [vmem:[#allocation2 + $0x10] sm:$0xc] %v975_v54  ;;  %v921_v58 = vrot.slane %v920_v47, 4  ;;  %v936_v59 = vsel %vm6938_vm14, %v920_v47, %v935_v42  ;;  %v929_v62 = vor.u32 %v928_v51, %v925_v50  ;;  %v734_v63 = vmax.f32 %v684_v52, 0.0 }
 0x1e4   : > { %937 = vst [vmem:[#allocation2 + $0x8] sm:$0xe] %v936_v59  ;;  %v967_v0 = vsel %vm7011_vm3, %v958_v53, %v966_v55  ;;  %v968_v1 = vrot.slane %v966_v55, 4  ;;  %v5086_v5 = vpack.c.bf16 %v736_v57, %v736_v57  ;;  %v695_v6 = vadd.f32 %v5378_v40, %v6989_v2 }
 0x1e5   : > { %977 = vst [vmem:[#allocation2 + $0x14] sm:$0xf] %v967_v0  ;;  %v930_v7 = vsel %vm7020_vm10, %v921_v58, %v929_v62  ;;  %v931_v8 = vrot.slane %v929_v62, 4  ;;  %v5084_v9 = vpack.c.bf16 %v734_v63, %v734_v63  ;;  %v687_v10 = vadd.f32 %v6989_v2, %v686_v46  ;;  %v5381_v11 = vpop.f32.mrb[8].mxu1  ;;  %v1050_v46 = vld [vmem:[#allocation2 + $0x2c] sm:$0x1] }
 0x1e6   : > { %v981_v12 = vsel %vm7028_vm2, %v968_v1, %v980_v61  ;;  %938 = vst [vmem:[#allocation2 + $0xc] sm:$0xf] %v930_v7  ;;  %v1027_v13 = vshrl.u32 %v5086_v5, 16  ;;  %v1030_v14 = vshll.u32 %v5086_v5, 16  ;;  %v737_v15 = vmax.f32 %v695_v6, 0.0  ;;  %v699_v16 = vpop.f32.mrb[9].mxu1 }
 0x1e7   : > { %982 = vst [vmem:[#allocation2 + $0x18] sm:$0x7] %v981_v12  ;;  %v940_v17 = vsel %vm7036_vm12, %v931_v8, %v939_v4  ;;  %v992_v18 = vshll.u32 %v5084_v9, 16  ;;  %v995_v19 = vshrl.u32 %v5084_v9, 16  ;;  %v735_v21 = vmax.f32 %v687_v10, 0.0  ;;  %v5382_v22 = vpop.f32.mrb[10].mxu1 }
 0x1e8   : > { %941 = vst [vmem:[#allocation2 + $0x10] sm:$0x3] %v940_v17  ;;  %v1029_v23 = vrot.slane %v1027_v13, 7  ;;  %v5087_v25 = vpack.c.bf16 %v737_v15, %v737_v15  ;;  %v708_v27 = vadd.f32 %v5381_v11, %v6989_v2  ;;  %v700_v29 = vadd.f32 %v6989_v2, %v699_v16  ;;  %v702_v30 = vpop.f32.mrb[11].mxu1  ;;  %v1018_v4 = vld [vmem:[#allocation2 + $0x20] sm:$0xf] }
 0x1e9   : > { %v994_v35 = vrot.slane %v992_v18, 5  ;;  %v997_v37 = vrot.slane %v995_v19, 4  ;;  %v5085_v38 = vpack.c.bf16 %v735_v21, %v735_v21  ;;  %v711_v39 = vadd.f32 %v5382_v22, %v6989_v2  ;;  %v1114_v21 = vld [vmem:[#allocation2 + $0x34] sm:$0xc] }
 0x1ea   : > { %v1032_v40 = vor.u32 %v1030_v14, %v1029_v23  ;;  %v1033_v41 = vrot.slane %v1029_v23, 4  ;;  %v1035_v42 = vshrl.u32 %v5087_v25, 16  ;;  %v1038_v43 = vshll.u32 %v5087_v25, 16 }
 0x1eb   : > { %v998_v44 = vor.u32 %v997_v37, %v994_v35  ;;  %v1014_v45 = vsel %vm6946_vm1, %v994_v35, %v1013_v24  ;;  %v1001_v47 = vshll.u32 %v5085_v38, 16  ;;  %v1005_v50 = vshrl.u32 %v5085_v38, 16 }
 0x1ec   : > { %v1047_v51 = vsel %vm7052_vm6, %v1032_v40, %v1046_v33  ;;  %1015 = vst [vmem:[#allocation2 + $0x18] sm:$0x8] %v1014_v45  ;;  %v1037_v52 = vrot.slane %v1035_v42, 7  ;;  %v740_v54 = vmax.f32 %v708_v27, 0.0  ;;  %v738_v55 = vmax.f32 %v700_v29, 0.0 }
 0x1ed   : > { %1048 = vst [vmem:[#allocation2 + $0x24] sm:$0xf] %v1047_v51  ;;  %v999_v57 = vrot.slane %v998_v44, 4  ;;  %v1003_v59 = vrot.slane %v1001_v47, 5  ;;  %v1007_v61 = vrot.slane %v1005_v50, 4  ;;  %v741_v62 = vmax.f32 %v711_v39, 0.0 }
 0x1ee   : > { %v5385_v63 = vpop.f32.mrb[12].mxu1  ;;  %v1040_v0 = vor.u32 %v1038_v43, %v1037_v52  ;;  %v1042_v1 = vrot.slane %v1037_v52, 4  ;;  %v5090_v5 = vpack.c.bf16 %v740_v54, %v740_v54  ;;  %v5088_v6 = vpack.c.bf16 %v738_v55, %v738_v55  ;;  %v1080_v29 = vld [vmem:[#allocation2 + $0x2c] sm:$0xe]  ;;  %v1118_v45 = vld [vmem:[#allocation2 + $0x3c] sm:$0x7] }
 0x1ef   : > { %v715_v7 = vpop.f32.mrb[13].mxu1  ;;  %v1004_v8 = vsel %vm7063_vm8, %v999_v57, %v1003_v59  ;;  %v1008_v9 = vor.u32 %v1007_v61, %v1003_v59  ;;  %v5091_v10 = vpack.c.bf16 %v741_v62, %v741_v62  ;;  %v703_v11 = vadd.f32 %v6989_v2, %v702_v30 }
 0x1f0   : > { %v5386_v12 = vpop.f32.mrb[14].mxu1  ;;  %v1041_v13 = vsel %vm7069_vm15, %v1033_v41, %v1040_v0  ;;  %v1051_v14 = vsel %vm6932_vm11, %v1042_v1, %v1050_v46  ;;  %1016 = vst [vmem:[#allocation2 + $0x1c] sm:$0xf] %v1004_v8  ;;  %v1093_v16 = vshrl.u32 %v5090_v5, 16  ;;  %v1096_v17 = vshll.u32 %v5090_v5, 16 }
 0x1f1   : > { %v718_v18 = vpop.f32.mrb[15].mxu1  ;;  %1049 = vst [vmem:[#allocation2 + $0x28] sm:$0xf] %v1041_v13  ;;  %1052 = vst [vmem:[#allocation2 + $0x2c] sm:$0x1] %v1051_v14  ;;  %v1009_v19 = vrot.slane %v1008_v9, 4  ;;  %v724_v43 = vadd.f32 %v5385_v63, %v6989_v2  ;;  %v716_v46 = vadd.f32 %v6989_v2, %v715_v7  ;;  %v727_v47 = vadd.f32 %v5386_v12, %v6989_v2 }
 0x1f2   : > { %v1059_v22 = vshrl.u32 %v5088_v6, 16  ;;  %v1062_v23 = vshll.u32 %v5088_v6, 16  ;;  %v1102_v24 = vshrl.u32 %v5091_v10, 16  ;;  %v1095_v25 = vrot.slane %v1093_v16, 5  ;;  %v1084_v13 = vld [vmem:[#allocation2 + $0x34] sm:$0x3] }
 0x1f3   : > { %v1098_v27 = vrot.slane %v1096_v17, 6  ;;  %v1105_v30 = vshll.u32 %v5091_v10, 16  ;;  %v739_v33 = vmax.f32 %v703_v11, 0.0  ;;  %v1019_v35 = vsel %vm7082_vm7, %v1009_v19, %v1018_v4 }
 0x1f4   : > { %v1061_v37 = vrot.slane %v1059_v22, 6  ;;  %v1064_v38 = vrot.slane %v1062_v23, 7  ;;  %v1104_v39 = vrot.slane %v1102_v24, 5  ;;  %1020 = vst [vmem:[#allocation2 + $0x20] sm:$0xf] %v1019_v35  ;;  %v719_v50 = vadd.f32 %v6989_v2, %v718_v18 }
 0x1f5   : > { %v1099_v40 = vor.u32 %v1098_v27, %v1095_v25  ;;  %v1107_v41 = vrot.slane %v1105_v30, 6  ;;  %v5089_v42 = vpack.c.bf16 %v739_v33, %v739_v33  ;;  %v5405_v51 = vpop.f32.mrb[16].mxu1  ;;  %v744_v0 = vmax.f32 %v724_v43, 0.0  ;;  %v1180_v23 = vld [vmem:[#allocation2 + $0x48] sm:$0xf] }
 0x1f6   : > { %v1065_v44 = vor.u32 %v1064_v38, %v1061_v37  ;;  %v792_v59 = vpop.f32.mrb[17].mxu1  ;;  %v742_v7 = vmax.f32 %v716_v46, 0.0  ;;  %v745_v10 = vmax.f32 %v727_v47, 0.0  ;;  %v743_v11 = vmax.f32 %v719_v50, 0.0 }
 0x1f7   : > { %v1100_v52 = vrot.slane %v1099_v40, 4  ;;  %v1115_v54 = vsel %vm7004_vm0, %v1099_v40, %v1114_v21  ;;  %v1108_v55 = vor.u32 %v1107_v41, %v1104_v39  ;;  %v1068_v57 = vshrl.u32 %v5089_v42, 16  ;;  %v5406_v1 = vpop.f32.mrb[18].mxu1  ;;  %v1148_v21 = vld [vmem:[#allocation2 + $0x3c] sm:$0x8] }
 0x1f8   : > { %1116 = vst [vmem:[#allocation2 + $0x34] sm:$0xc] %v1115_v54  ;;  %v1066_v61 = vrot.slane %v1065_v44, 4  ;;  %v1081_v62 = vsel %vm6938_vm14, %v1065_v44, %v1080_v29  ;;  %v1071_v63 = vshll.u32 %v5089_v42, 16  ;;  %v795_v34 = vpop.f32.mrb[19].mxu1  ;;  %v5094_v9 = vpack.c.bf16 %v744_v0, %v744_v0 }
 0x1f9   : > { %1082 = vst [vmem:[#allocation2 + $0x2c] sm:$0xe] %v1081_v62  ;;  %v1109_v4 = vsel %vm7011_vm3, %v1100_v52, %v1108_v55  ;;  %v1110_v5 = vrot.slane %v1108_v55, 4  ;;  %v1070_v6 = vrot.slane %v1068_v57, 6  ;;  %v5092_v14 = vpack.c.bf16 %v742_v7, %v742_v7 }
 0x1fa   : > { %1117 = vst [vmem:[#allocation2 + $0x38] sm:$0xf] %v1109_v4  ;;  %v1073_v8 = vrot.slane %v1071_v63, 7  ;;  %v801_v16 = vadd.f32 %v5405_v51, %v6989_v2  ;;  %v793_v17 = vadd.f32 %v6989_v2, %v792_v59  ;;  %v1161_v18 = vshrl.u32 %v5094_v9, 16 }
 0x1fb   : > { %v1119_v12 = vsel %vm7028_vm2, %v1110_v5, %v1118_v45  ;;  %v1164_v19 = vshll.u32 %v5094_v9, 16  ;;  %v5095_v22 = vpack.c.bf16 %v745_v10, %v745_v10  ;;  %v1127_v24 = vshll.u32 %v5092_v14, 16  ;;  %v1184_v45 = vld [vmem:[#allocation2 + $0x50] sm:$0x1] }
 0x1fc   : > { %1120 = vst [vmem:[#allocation2 + $0x3c] sm:$0x7] %v1119_v12  ;;  %v1074_v49 = vor.u32 %v1073_v8, %v1070_v6  ;;  %v1130_v25 = vshrl.u32 %v5092_v14, 16  ;;  %v5093_v27 = vpack.c.bf16 %v743_v11, %v743_v11  ;;  %v809_v29 = vmax.f32 %v801_v16, 0.0  ;;  %v1152_v8 = vld [vmem:[#allocation2 + $0x44] sm:$0xf] }
 0x1fd   : > { %v1163_v33 = vrot.slane %v1161_v18, 7  ;;  %v1169_v35 = vshrl.u32 %v5095_v22, 16  ;;  %v1129_v37 = vrot.slane %v1127_v24, 5  ;;  %v1172_v39 = vshll.u32 %v5095_v22, 16 }
 0x1fe   : > { %v1075_v60 = vsel %vm7020_vm10, %v1066_v61, %v1074_v49  ;;  %v1076_v30 = vrot.slane %v1074_v49, 4  ;;  %v1132_v38 = vrot.slane %v1130_v25, 4  ;;  %v1136_v40 = vshll.u32 %v5093_v27, 16  ;;  %v892_v49 = vld [vmem:[#allocation2 + $0x50] sm:$0xe] }
 0x1ff   : > { %1083 = vst [vmem:[#allocation2 + $0x30] sm:$0xf] %v1075_v60  ;;  %v1166_v42 = vor.u32 %v1164_v19, %v1163_v33  ;;  %v1167_v43 = vrot.slane %v1163_v33, 4  ;;  %v1171_v44 = vrot.slane %v1169_v35, 7  ;;  %v1149_v47 = vsel %vm6946_vm1, %v1129_v37, %v1148_v21 }
 0x200   : > { %v1085_v41 = vsel %vm7036_vm12, %v1076_v30, %v1084_v13  ;;  %v1133_v46 = vor.u32 %v1132_v38, %v1129_v37  ;;  %v1138_v50 = vrot.slane %v1136_v40, 5  ;;  %v1140_v51 = vshrl.u32 %v5093_v27, 16  ;;  %1150 = vst [vmem:[#allocation2 + $0x3c] sm:$0x8] %v1149_v47  ;;  %v855_v38 = vld [vmem:[#allocation2 + $0x8] sm:$0x1] }
 0x201   : > { %1086 = vst [vmem:[#allocation2 + $0x34] sm:$0x3] %v1085_v41  ;;  %v1181_v52 = vsel %vm7052_vm6, %v1166_v42, %v1180_v23  ;;  %v1174_v54 = vor.u32 %v1172_v39, %v1171_v44  ;;  %v1176_v55 = vrot.slane %v1171_v44, 4  ;;  %v859_v57 = vmul.f32 %v6998_v20, %v809_v29  ;;  %v851_v29 = vld [vmem:[#allocation2] sm:$0xf]  ;;  %v7143_v28 = vld [vmem:[#allocation2 + $0x28] sm:$0xff]  }
 0x202   : > { %1182 = vst [vmem:[#allocation2 + $0x48] sm:$0xf] %v1181_v52  ;;  %v1134_v59 = vrot.slane %v1133_v46, 4  ;;  %v1142_v61 = vrot.slane %v1140_v51, 4  ;;  %v807_v62 = vmax.f32 %v793_v17, 0.0  ;;  %v804_v63 = vadd.f32 %v5406_v1, %v6989_v2  ;;  %v7138_v51 = vld [vmem:[#allocation2 + $0x18] sm:$0xff]  }
 0x203   : > { %v1175_v36 = vsel %vm7069_vm15, %v1167_v43, %v1174_v54  ;;  %v1185_v0 = vsel %vm6932_vm11, %v1176_v55, %v1184_v45  ;;  %v5078_v4 = vpack.c.bf16 %v859_v57, %v859_v57  ;;  %v796_v5 = vadd.f32 %v6989_v2, %v795_v34  ;;  %v897_v41 = vld [vmem:[#allocation2 + $0x58] sm:$0x3]  ;;  %v7140_v52 = vld [vmem:[#allocation2 + $0x20] sm:$0xff]  }
 0x204   : > { %1183 = vst [vmem:[#allocation2 + $0x4c] sm:$0xf] %v1175_v36  ;;  %1186 = vst [vmem:[#allocation2 + $0x50] sm:$0x1] %v1185_v0  ;;  %v1139_v6 = vsel %vm7063_vm8, %v1134_v59, %v1138_v50  ;;  %v1143_v7 = vor.u32 %v1142_v61, %v1138_v50  ;;  %v818_v9 = vmul.f32 %v7000_v26, %v807_v62  ;;  %v810_v10 = vmax.f32 %v804_v63, 0.0  ;;  %v7136_v50 = vld [vmem:[#allocation2 + $0x10] sm:$0xff]  }
 0x205   : > { %1151 = vst [vmem:[#allocation2 + $0x40] sm:$0xf] %v1139_v6  ;;  %v871_v1 = vshrl.u32 %v5078_v4, 16  ;;  %v874_v11 = vshll.u32 %v5078_v4, 16  ;;  %v808_v12 = vmax.f32 %v796_v5, 0.0  ;;  %v6113_v54 = vld [vmem:[#allocation9 + $0xc0] sm:$0xff]  }
 0x206   : > { %v1144_v13 = vrot.slane %v1143_v7, 4  ;;  %v5076_v14 = vpack.c.bf16 %v818_v9, %v818_v9  ;;  %v860_v16 = vmul.f32 %v6998_v20, %v810_v10  ;;  %v1304_v55 = vshll.u32 %v7136_v50, 16 }
 0x207   : > { %v873_v17 = vrot.slane %v871_v1, 6  ;;  %v876_v2 = vrot.slane %v874_v11, 7  ;;  %v819_v34 = vmul.f32 %v7000_v26, %v808_v12  ;;  %v1715_v3 = vrot.slane %v7138_v51, 1  ;;  %v1910_v1 = vld [vmem:[#allocation2 + $0xc] sm:$0xf] }
 0x208   : > { %v1153_v53 = vsel %vm7082_vm7, %v1144_v13, %v1152_v8  ;;  %v829_v18 = vshrl.u32 %v5076_v14, 16  ;;  %v5079_v19 = vpack.c.bf16 %v860_v16, %v860_v16  ;;  %v832_v24 = vshll.u32 %v5076_v14, 16  ;;  %v7148_v4 = vld [vmem:[#allocation2 + $0x30] sm:$0xff]   ;;  %v6115_v13 = vld [vmem:[#allocation9 + $0xc8] sm:$0xff]  }
 0x209   : > { %1154 = vst [vmem:[#allocation2 + $0x44] sm:$0xf] %v1153_v53  ;;  %v877_v21 = vor.u32 %v876_v2, %v873_v17  ;;  %v5077_v22 = vpack.c.bf16 %v819_v34, %v819_v34  ;;  %v1713_v61 = vrot.slane %v7136_v50, 1  ;;  %v1312_v0 = vshll.u32 %v7138_v51, 16 }
 0x20a   : > { %v831_v23 = vrot.slane %v829_v18, 7  ;;  %v880_v25 = vshrl.u32 %v5079_v19, 16  ;;  %v883_v27 = vshll.u32 %v5079_v19, 16  ;;  %v1306_v9 = vrot.slane %v1304_v55, 1  ;;  %v2483_v19 = vld [vmem:[#allocation2 + $0x8] sm:$0xc] }
 0x20b   : > { %v893_v20 = vsel %vm6938_vm14, %v877_v21, %v892_v49  ;;  %v837_v60 = vshrl.u32 %v5077_v22, 16  ;;  %v878_v30 = vrot.slane %v877_v21, 4  ;;  %v840_v37 = vshll.u32 %v5077_v22, 16  ;;  %v7156_v14 = vld [vmem:[#allocation2 + $0x48] ss:$0 sps:$4 sm:$0x11]  }
 0x20c   : > { %894 = vst [vmem:[#allocation2 + $0x50] sm:$0xe] %v893_v20  ;;  %v834_v26 = vor.u32 %v832_v24, %v831_v23  ;;  %v882_v15 = vrot.slane %v880_v25, 6  ;;  %v885_v33 = vrot.slane %v883_v27, 7  ;;  %v835_v42 = vrot.slane %v831_v23, 4  ;;  %v6105_v20 = vld [vmem:[#allocation9 + $0x80] sm:$0xff]  }
 0x20d   : > { %v839_v35 = vrot.slane %v837_v60, 7  ;;  %vm1709_vm14 = vcmask 1046528   ;;  %v1308_v10 = vshrl.u32 %v7136_v50, 16  ;;  %v1717_v17 = vrot.slane %v7140_v52, 1  ;;  %v1909_v22 = vld [vmem:[#allocation2 + $0x8] sm:$0xe] }
 0x20e   : > { %v852_v39 = vsel %vm7052_vm6, %v834_v26, %v851_v29  ;;  %v886_v40 = vor.u32 %v885_v33, %v882_v15  ;;  %v7151_v6 = vsel %vm1709_vm14, %v1713_v61, %v1715_v3  ;;  %v1719_v18 = vrot.slane %v7143_v28, 1 }
 0x20f   : > { %853 = vst [vmem:[#allocation2] sm:$0xf] %v852_v39  ;;  %v842_v43 = vor.u32 %v840_v37, %v839_v35  ;;  %v844_v31 = vrot.slane %v839_v35, 4  ;;  %v7169_v21 = vrot.slane %v1312_v0, 1  ;;  %v7172_v23 = vsel %vm1709_vm14, %v1715_v3, %v1717_v17  ;;  %v6117_v37 = vld [vmem:[#allocation9 + $0xd0] sm:$0xff]   ;;  %v6119_v3 = vld [vmem:[#allocation9 + $0xd8] sm:$0xff]  }
 0x210   : > { %v887_v44 = vsel %vm7020_vm10, %v878_v30, %v886_v40  ;;  %v888_v45 = vrot.slane %v886_v40, 4  ;;  %vm8261_vm10 = vmmov 0   ;;  %v7163_v53 = vld [vmem:[#allocation2 + $0x40] sm:$0xff]   ;;  %v8182_v24 = vrot.slane %v7148_v4, 1  ;;  %v7177_v30 = vld [vmem:[#allocation2 + $0x10] sm:$0xff]  }
 0x211   : > { %895 = vst [vmem:[#allocation2 + $0x54] sm:$0xf] %v887_v44  ;;  %v843_v46 = vsel %vm7069_vm15, %v835_v42, %v842_v43  ;;  %v856_v47 = vsel %vm6932_vm11, %v844_v31, %v855_v38  ;;  %v4979_v25 = vcombine.low %v2483_v19, %v1910_v1  ;;  %v7175_v60 = vcombine.low %v1909_v22, %v1910_v1  ;;  %v7189_v38 = vld [vmem:[#allocation2 + $0x18] sm:$0xff]   ;;  %v6107_v44 = vld [vmem:[#allocation9 + $0x88] sm:$0xff]  }
 0x212   : > { %v898_v32 = vsel %vm7036_vm12, %v888_v45, %v897_v41  ;;  %854 = vst [vmem:[#allocation2 + $0x4] sm:$0xf] %v843_v46  ;;  %857 = vst [vmem:[#allocation2 + $0x8] sm:$0x1] %v856_v47  ;;  %v7180_v26 = vsel %vm1709_vm14, %v1717_v17, %v1719_v18  ;;  %vm1287_vm11 = vsmask.f32 7424  ;;  %v7185_v15 = vsel %vm1709_vm14, %v1719_v18, %v8182_v24 }
 0x213   : > { %899 = vst [vmem:[#allocation2 + $0x58] sm:$0x3] %v898_v32  ;;  %vm2504_vm1 = vcmask 1045504   ;;  %v1310_v35 = vor.u32 %v1308_v10, %v1306_v9  ;;  %v8181_v39 = vrot.slane %v7163_v53, 1  ;;  %vm2213_vm3 = vsmask.f32 6400 }
 0x214   : > { %v1316_v40 = vshrl.u32 %v7138_v51, 16  ;;  %v1320_v41 = vshll.u32 %v7140_v52, 16  ;;  %v1727_v42 = vrot.slane %v7156_v14, 1  ;;  %v2505_v43 = vrot.slane %v4979_v25, 2  ;;  %v7200_v46 = vld [vmem:[#allocation2 + $0x20] sm:$0xff]   ;;  %v7235_v19 = vld [vmem:[#allocation2 + $0x38] sm:$0xff]  }
 0x215   : > { %v7198_v45 = vsel %vm1287_vm11, %v1310_v35, %v7169_v21  ;;  %v2506_v47 = vrot.slane %v7177_v30, 2  ;;  %v2215_v32 = vshrl.u32 %v7175_v60, 16  ;;  %v2226_v55 = vshll.u32 %v7177_v30, 16  ;;  %v6121_v18 = vld [vmem:[#allocation9 + $0xe0] sm:$0xff]  }
 0x216   : > { %v1187_v56 = vld [vmem:[#allocation2] sm:$0xf]  ;;  %v2510_v1 = vrot.slane %v7200_v46, 2  ;;  %vm3008_vm0 = vsmask.f32 5376 }
 0x217   : > { %v1688_v58 = vld [vmem:[#allocation2] sm:$0xe] }
 0x219   : > { %v1188_v57 = vld [vmem:[#allocation2 + $0x4] sm:$0xf]  ;;  %v6104_v59 = vld [vmem:[#allocation2 + $0x8] sm:$0xff]  }
 0x21a   : > { %v4917_v62 = vcombine.low %v1187_v56, %v1188_v57  ;;  %v4943_v63 = vcombine.low %v1688_v58, %v1188_v57  ;;  %v1296_v36 = vshll.u32 %v6104_v59, 16  ;;  %v1711_v5 = vrot.slane %v6104_v59, 1  ;;  %v7217_v57 = vld [vmem:[#allocation2 + $0x28] sm:$0xff]  }
 0x21b   : > { %v1300_v12 = vshrl.u32 %v6104_v59, 16  ;;  %v7211_v56 = vsel %vm1709_vm14, %v8181_v39, %v1727_v42  ;;  %v2223_v58 = vshrl.u32 %v7177_v30, 16  ;;  %v7250_v42 = vld [vmem:[#allocation2 + $0x40] sm:$0xff]  }
 0x21c   : > { %5476 = vmatmul.mubr.bf16.vlgmr.msra.gmra.mrb[20].mxu1 %v4917_v62  ;;  %v1710_v7 = vrot.slane %v4943_v63, 1  ;;  %v1291_v8 = vshll.u32 %v4917_v62, 16  ;;  %v1298_v11 = vrot.slane %v1296_v36, 1  ;;  %v7159_v16 = vsel %vm1709_vm14, %v1711_v5, %v1713_v61 }
 0x21d   : > { %5479 = vmatprep.mubr.msk.bf16.mxu1 %vm8261_vm10, %v8183_v48  ;;  %5564 = vmatpush3.bf16.msra.mxu1 %v6113_v54  ;;  %v1289_v2 = vshrl.u32 %v4917_v62, 16  ;;  %v2218_v54 = vshll.u32 %v7175_v60, 16  ;;  %v2217_v61 = vrot.slane %v2215_v32, 1  ;;  %v2508_v62 = vrot.slane %v7189_v38, 2  ;;  %v6111_v32 = vld [vmem:[#allocation9 + $0x98] sm:$0xff]  }
 0x21e   : > { %v1293_v34 = vrot.slane %v1291_v8, 1  ;;  %5565 = vmatprep.subr.bf16.mxu1 %v8183_v48  ;;  %v7166_v49 = vsel %vm1709_vm14, %v1710_v7, %v1711_v5  ;;  %v1302_v29 = vor.u32 %v1300_v12, %v1298_v11  ;;  %v2232_v63 = vshrl.u32 %v7189_v38, 16  ;;  %v7226_v8 = vld [vmem:[#allocation2 + $0x30] sm:$0xff]  }
 0x21f   : > { %v2220_v36 = vrot.slane %v2218_v54, 2  ;;  %v2225_v0 = vrot.slane %v2223_v58, 1  ;;  %v2228_v5 = vrot.slane %v2226_v55, 2  ;;  %v2235_v7 = vshll.u32 %v7189_v38, 16  ;;  %v6109_v12 = vld [vmem:[#allocation9 + $0x90] sm:$0xff]  }
 0x220   : > { %v1294_v27 = vor.u32 %v1293_v34, %v1289_v2  ;;  %v1307_v31 = vsel %vm1287_vm11, %v1302_v29, %v1306_v9  ;;  %v7229_v9 = vsel %vm2504_vm1, %v2506_v47, %v2508_v62  ;;  %v2234_v10 = vrot.slane %v2232_v63, 1 }
 0x221   : > { %5566 = vmatpush3.bf16.msra.mxu1 %v6115_v13  ;;  %v2221_v13 = vor.u32 %v2220_v36, %v2217_v61  ;;  %v2229_v17 = vor.u32 %v2228_v5, %v2225_v0  ;;  %v2237_v2 = vrot.slane %v2235_v7, 2  ;;  %v2244_v34 = vshll.u32 %v7200_v46, 16  ;;  %v7264_v61 = vld [vmem:[#allocation2 + $0x48] sm:$0xff]  }
 0x222   : > { %v1299_v33 = vsel %vm1287_vm11, %v1294_v27, %v1298_v11  ;;  %5567 = vmatprep.subr.bf16.mxu1 %v8183_v48  ;;  %v2241_v11 = vshrl.u32 %v7200_v46, 16  ;;  %v7238_v22 = vsel %vm2504_vm1, %v2508_v62, %v2510_v1  ;;  %v2512_v27 = vrot.slane %v7217_v57, 2 }
 0x223   : > { %5424 = vmatmul.mubr.bf16.vlgmr.msra.gmra.mrb[0].mxu0 %v1299_v33  ;;  %v7244_v29 = vsel %vm2213_vm3, %v2221_v13, %v2229_v17  ;;  %v2238_v33 = vor.u32 %v2237_v2, %v2234_v10  ;;  %v2246_v35 = vrot.slane %v2244_v34, 2  ;;  %v2262_v55 = vshll.u32 %v7226_v8, 16  ;;  %v6169_v2 = vld [vmem:[#allocation2 + $0x50] ss:$0 sps:$4 sm:$0x33]   ;;  %v6114_v34 = vld [vmem:[#allocation9 + $0xa0] sm:$0xff]  }
 0x224   : > { %5480 = vmatmul.mubr.bf16.gmra.mrb[24].mxu1 %v6104_v59  ;;  %5512 = vmatpush3.bf16.msra.mxu0 %v6105_v20  ;;  %v7220_v59 = vsel %vm2504_vm1, %v2505_v43, %v2506_v47  ;;  %v2243_v25 = vrot.slane %v2241_v11, 1  ;;  %v2250_v20 = vshrl.u32 %v7217_v57, 16  ;;  %v7253_v43 = vsel %vm2504_vm1, %v2510_v1, %v2512_v27 }
 0x225   : > { %5427 = vmatprep.mubr.msk.bf16.mxu0 %vm8261_vm10, %v8183_v48  ;;  %5483 = vmatprep.mubr.msk.bf16.mxu1 %vm8261_vm10, %v8183_v48  ;;  %v2259_v47 = vshrl.u32 %v7226_v8, 16  ;;  %v2516_v36 = vrot.slane %v7235_v19, 2  ;;  %v2268_v0 = vshrl.u32 %v7235_v19, 16  ;;  %v2264_v10 = vrot.slane %v2262_v55, 2 }
 0x226   : > { %5513 = vmatprep.subr.bf16.mxu0 %v8183_v48  ;;  %5568 = vmatpush3.bf16.msra.mxu1 %v6117_v37  ;;  %v2253_v37 = vshll.u32 %v7217_v57, 16  ;;  %v2247_v54 = vor.u32 %v2246_v35, %v2243_v25  ;;  %v2271_v1 = vshll.u32 %v7235_v19, 16  ;;  %v2518_v13 = vrot.slane %v7250_v42, 2 }
 0x227   : > { %5569 = vmatprep.subr.bf16.mxu1 %v8183_v48  ;;  %v2261_v63 = vrot.slane %v2259_v47, 1 }
 0x228   : > { %5514 = vmatpush3.bf16.msra.mxu0 %v6107_v44  ;;  %v2514_v44 = vrot.slane %v7226_v8, 2  ;;  %v2255_v58 = vrot.slane %v2253_v37, 2  ;;  %v7273_v5 = vsel %vm2213_vm3, %v2238_v33, %v2247_v54  ;;  %v7287_v35 = vsel %vm2504_vm1, %v2516_v36, %v2518_v13 }
 0x229   : > { %5515 = vmatprep.subr.bf16.mxu0 %v8183_v48  ;;  %v2265_v25 = vor.u32 %v2264_v10, %v2261_v63  ;;  %v2522_v63 = vrot.slane %v6169_v2, 2 }
 0x22a   : > { %5570 = vmatpush3.bf16.msra.mxu1 %v6119_v3  ;;  %v6122_v3 = vld [vmem:[#allocation9 + $0xe8] sm:$0xff]   ;;  %v7267_v62 = vsel %vm2504_vm1, %v2512_v27, %v2514_v44  ;;  %v7277_v11 = vsel %vm2504_vm1, %v2514_v44, %v2516_v36  ;;  %v2273_v27 = vrot.slane %v2271_v1, 2  ;;  %v2286_v44 = vshrl.u32 %v7264_v61, 16 }
 0x22b   : > { %5428 = vmatmul.mubr.bf16.gmra.mrb[4].mxu0 %v1307_v31  ;;  %5571 = vmatprep.subr.bf16.mxu1 %v8183_v48  ;;  %v2252_v31 = vrot.slane %v2250_v20, 1  ;;  %v2280_v20 = vshll.u32 %v7250_v42, 16  ;;  %v6118_v36 = vld [vmem:[#allocation9 + $0xa8] sm:$0xff]   ;;  %v2298_v1 = vshll.u32 %v6169_v2, 16 }
 0x22c   : > { %5484 = vmatmul.mubr.bf16.gmra.mrb[28].mxu1 %v7136_v50  ;;  %5431 = vmatprep.mubr.msk.bf16.mxu0 %vm8261_vm10, %v8183_v48  ;;  %v7260_v50 = vsel %vm2213_vm3, %v2229_v17, %v2238_v33  ;;  %v2277_v17 = vshrl.u32 %v7250_v42, 16  ;;  %v6125_v33 = vld [vmem:[#allocation9 + $0xf0] sm:$0xff]  }
 0x22d   : > { %5487 = vmatprep.mubr.msk.bf16.mxu1 %vm8261_vm10, %v8183_v48  ;;  %5516 = vmatpush3.bf16.msra.mxu0 %v6109_v12  ;;  %v2256_v7 = vor.u32 %v2255_v58, %v2252_v31  ;;  %v2270_v12 = vrot.slane %v2268_v0, 1  ;;  %v2520_v31 = vrot.slane %v7264_v61, 2  ;;  %v2289_v58 = vshll.u32 %v7264_v61, 16 }
 0x22e   : > { %5517 = vmatprep.subr.bf16.mxu0 %v8183_v48  ;;  %5572 = vmatpush3.bf16.msra.mxu1 %v6121_v18  ;;  %v2279_v37 = vrot.slane %v2277_v17, 1  ;;  %v6126_v17 = vld [vmem:[#allocation9 + $0xf8] sm:$0xff]  }
 0x22f   : > { %5573 = vmatprep.subr.bf16.mxu1 %v8183_v48  ;;  %v7282_v18 = vsel %vm2213_vm3, %v2247_v54, %v2256_v7  ;;  %v7294_v47 = vsel %vm2213_vm3, %v2256_v7, %v2265_v25  ;;  %v2282_v54 = vrot.slane %v2280_v20, 2  ;;  %v7301_v55 = vsel %vm2504_vm1, %v2518_v13, %v2520_v31 }
 0x230   : > { %v2291_v10 = vrot.slane %v2289_v58, 2  ;;  %v1322_v13 = vrot.slane %v1320_v41, 1  ;;  %v2300_v20 = vrot.slane %v2298_v1, 2  ;;  %v7355_v1 = vld [vmem:[#allocation2 + $0x28] sm:$0xff]  }
 0x231   : > { %5518 = vmatpush3.bf16.msra.mxu0 %v6111_v32  ;;  %v2274_v32 = vor.u32 %v2273_v27, %v2270_v12  ;;  %v2283_v7 = vor.u32 %v2282_v54, %v2279_v37  ;;  %v1318_v12 = vor.u32 %v1316_v40, %v7169_v21 }
 0x232   : > { %5519 = vmatprep.subr.bf16.mxu0 %v8183_v48  ;;  %5574 = vmatpush3.bf16.msra.mxu1 %v6122_v3  ;;  %v2288_v3 = vrot.slane %v2286_v44, 1  ;;  %v1324_v44 = vshrl.u32 %v7140_v52, 16 }
 0x233   : > { %5432 = vmatmul.mubr.bf16.gmra.mrb[8].mxu0 %v7198_v45  ;;  %5575 = vmatprep.subr.bf16.mxu1 %v8183_v48  ;;  %v2295_v45 = vshrl.u32 %v6169_v2, 16  ;;  %v7306_v0 = vsel %vm2213_vm3, %v2265_v25, %v2274_v32  ;;  %v7319_v25 = vsel %vm2213_vm3, %v2274_v32, %v2283_v7  ;;  %v1323_v41 = vsel %vm1287_vm11, %v1318_v12, %v1322_v13 }
 0x234   : > { %5488 = vmatmul.mubr.bf16.gmra.mrb[32].mxu1 %v7138_v51  ;;  %5435 = vmatprep.mubr.msk.bf16.mxu0 %vm8261_vm10, %v8183_v48  ;;  %v2292_v2 = vor.u32 %v2291_v10, %v2288_v3  ;;  %v6123_v51 = vld [vmem:[#allocation9 + $0xb0] sm:$0xff]   ;;  %v1326_v54 = vor.u32 %v1324_v44, %v1322_v13  ;;  %v1336_v3 = vshll.u32 %v7148_v4, 16  ;;  %v7353_v10 = vld [vmem:[#allocation2 + $0x20] sm:$0xff]   ;;  %v7372_v44 = vld [vmem:[#allocation2 + $0x58] ss:$0 sps:$4 sm:$0x77]  }
 0x235   : > { %5491 = vmatprep.mubr.msk.bf16.mxu1 %vm8261_vm10, %v8183_v48  ;;  %5520 = vmatpush3.bf16.msra.mxu0 %v6114_v34  ;;  %v7315_v34 = vsel %vm2504_vm1, %v2520_v31, %v2522_v63  ;;  %v2297_v27 = vrot.slane %v2295_v45, 1  ;;  %v6128_v31 = vld [vmem:[#allocation9 + $0xb8] sm:$0xff]  }
 0x236   : > { %5521 = vmatprep.subr.bf16.mxu0 %v8183_v48  ;;  %5576 = vmatpush3.bf16.msra.mxu1 %v6125_v33  ;;  %v7322_v21 = vsel %vm2213_vm3, %v2283_v7, %v2292_v2  ;;  %v1328_v33 = vshll.u32 %v7143_v28, 16  ;;  %v1338_v63 = vrot.slane %v1336_v3, 1  ;;  %v7347_v45 = vld [vmem:[#allocation2 + $0x38] sm:$0xff]   ;;  %v7357_v13 = vld [vmem:[#allocation2 + $0x30] sm:$0xff]  }
 0x237   : > { %5577 = vmatprep.subr.bf16.mxu1 %v8183_v48  ;;  %v2301_v40 = vor.u32 %v2300_v20, %v2297_v27  ;;  %v7351_v7 = vld [vmem:[#allocation2 + $0x18] sm:$0xff]   ;;  %v3278_v27 = vld [vmem:[#allocation2 + $0x10] sm:$0x8] }
 0x238   : > { %v1330_v32 = vrot.slane %v1328_v33, 1  ;;  %v7369_v33 = vld [vmem:[#allocation2 + $0x50] sm:$0xff]  }
 0x239   : > { %5522 = vmatpush3.bf16.msra.mxu0 %v6118_v36  ;;  %v7329_v37 = vsel %vm2213_vm3, %v2292_v2, %v2301_v40  ;;  %v7349_v36 = vld [vmem:[#allocation2 + $0x14] sm:$0xf]  ;;  %v7361_v2 = vld [vmem:[#allocation2 + $0x40] sm:$0xff]   ;;  %v1344_v40 = vshll.u32 %v7347_v45, 16 }
 0x23a   : > { %5523 = vmatprep.subr.bf16.mxu0 %v8183_v48  ;;  %5578 = vmatpush3.bf16.msra.mxu1 %v6126_v17  ;;  %v1331_v58 = vsel %vm1287_vm11, %v1326_v54, %v1330_v32  ;;  %v7359_v17 = vld [vmem:[#allocation2 + $0x38] sm:$0xff]   ;;  %v3303_v54 = vrot.slane %v7353_v10, 3  ;;  %v3311_v39 = vrot.slane %v7361_v2, 3 }
 0x23b   : > { %5436 = vmatmul.mubr.bf16.gmra.mrb[12].mxu0 %v1323_v41  ;;  %5667 = vmatprep.subr.bf16.mxu1 %v8183_v48  ;;  %v7367_v41 = vld [vmem:[#allocation2 + $0x48] sm:$0xff]   ;;  %v1346_v24 = vrot.slane %v1344_v40, 1 }
 0x23c   : > { %5492 = vmatmul.mubr.bf16.gmra.mrb[36].mxu1 %v7140_v52  ;;  %5439 = vmatprep.mubr.msk.bf16.mxu0 %vm8261_vm10, %v8183_v48  ;;  %v1332_v52 = vshrl.u32 %v7143_v28, 16 }
 0x23d   : > { %5495 = vmatprep.mubr.msk.bf16.mxu1 %vm8261_vm10, %v8183_v48  ;;  %5524 = vmatpush3.bf16.msra.mxu0 %v6123_v51  ;;  %v1340_v51 = vshrl.u32 %v7148_v4, 16 }
 0x23e   : > { %5525 = vmatprep.subr.bf16.mxu0 %v8183_v48  ;;  %v1334_v12 = vor.u32 %v1332_v52, %v1330_v32  ;;  %v3307_v52 = vrot.slane %v7357_v13, 3 }
 0x23f   : > { %v1342_v3 = vor.u32 %v1340_v51, %v1338_v63 }
 0x240   : > { %v1339_v20 = vsel %vm1287_vm11, %v1334_v12, %v1338_v63  ;;  %v3309_v12 = vrot.slane %v7359_v17, 3 }
 0x241   : > { %5526 = vmatpush3.bf16.msra.mxu0 %v6128_v31  ;;  %v3301_v31 = vrot.slane %v7351_v7, 3 }
 0x242   : > { %5615 = vmatprep.subr.bf16.mxu0 %v8183_v48  ;;  %v7397_v51 = vsel %vm3299_vm13, %v3307_v52, %v3309_v12 }
 0x243   : > { %5440 = vmatmul.mubr.bf16.gmra.mrb[16].mxu0 %v1331_v58  ;;  %v3305_v58 = vrot.slane %v7355_v1, 3  ;;  %8263 = vst [vmem:[#allocation26_spill] sm:$0xff] %v7397_v51  ;;  %v1352_v51 = vshll.u32 %v7163_v53, 16 }
 0x244   : > { %5496 = vmatmul.mubr.bf16.gmra.mrb[40].mxu1 %v7143_v28  ;;  %5443 = vmatprep.mubr.msk.bf16.mxu0 %vm8261_vm10, %v8183_v48  ;;  %v5015_v28 = vcombine.low %v3278_v27, %v7349_v36 }
 0x245   : > { %5499 = vmatprep.mubr.msk.bf16.mxu1 %vm8261_vm10, %v8183_v48  ;;  %v7394_v63 = vsel %vm3299_vm13, %v3305_v58, %v3307_v52  ;;  %v1347_v52 = vsel %vm1287_vm11, %v1342_v3, %v1346_v24  ;;  %v1356_v3 = vshrl.u32 %v7163_v53, 16 }
 0x246   : > { %v3300_v32 = vrot.slane %v5015_v28, 3  ;;  %v7387_v28 = vsel %vm3299_vm13, %v3301_v31, %v3303_v54 }
 0x247   : > { %8262 = vst [vmem:[#allocation25_spill] sm:$0xff] %v7387_v28  ;;  %v3317_v28 = vrot.slane %v7372_v44, 3 }
 0x248   : > { %v7384_v27 = vsel %vm3299_vm13, %v3300_v32, %v3301_v31  ;;  %v7401_v32 = vsel %vm3299_vm13, %v3309_v12, %v3311_v39  ;;  %v3315_v31 = vrot.slane %v7369_v33, 3  ;;  %v8266_v12 = vmov 0.0  }
 0x24b   : > { %5444 = vmatmul.mubr.bf16.gmra.mrb[20].mxu0 %v1339_v20  ;;  %v7390_v20 = vsel %vm3299_vm13, %v3303_v54, %v3305_v58  ;;  %v7412_v58 = vsel %vm3299_vm13, %v3315_v31, %v3317_v28 }
 0x24c   : > { %5500 = vmatmul.mubr.bf16.gmra.mrb[44].mxu1 %v7148_v4  ;;  %5447 = vmatprep.mubr.msk.bf16.mxu0 %vm8261_vm10, %v8183_v48  ;;  %8265 = vst [vmem:[#allocation28_spill] sm:$0xff] %v7412_v58  ;;  %v1993_v58 = vrot.slane %v7175_v60, 1  ;;  %v1996_v60 = vrot.slane %v7189_v38, 1  ;;  %v6146_v38 = vld [vmem:[#allocation9 + $0x158] sm:$0xff]  }
 0x24d   : > { %5503 = vmatprep.mubr.msk.bf16.mxu1 %vm8261_vm10, %v8183_v48  ;;  %v3313_v48 = vrot.slane %v7367_v41, 3 }
 0x24f   : > { %v7406_v54 = vsel %vm3299_vm13, %v3311_v39, %v3313_v48  ;;  %v7409_v40 = vsel %vm3299_vm13, %v3313_v48, %v3315_v31  ;;  %v1348_v39 = vshrl.u32 %v7347_v45, 16  ;;  %v1354_v48 = vrot.slane %v1352_v51, 1 }
 0x250   : > { %8264 = vst [vmem:[#allocation27_spill] sm:$0xff] %v7409_v40  ;;  %v1360_v31 = vshll.u32 %v7156_v14, 16  ;;  %v6142_v14 = vld [vmem:[#allocation9 + $0x148] sm:$0xff]  }
 0x251   : > { %v1350_v40 = vor.u32 %v1348_v39, %v1346_v24  ;;  %v1994_v24 = vrot.slane %v7177_v30, 1  ;;  %v6132_v30 = vld [vmem:[#allocation9 + $0x100] sm:$0xff]  }
 0x252   : > { %v1362_v51 = vrot.slane %v1360_v31, 1  ;;  %v1998_v31 = vrot.slane %v7200_v46, 1  ;;  %v6138_v46 = vld [vmem:[#allocation9 + $0x118] sm:$0xff]  }
 0x253   : > { %5448 = vmatmul.mubr.bf16.gmra.mrb[24].mxu0 %v1347_v52  ;;  %v1355_v28 = vsel %vm1287_vm11, %v1350_v40, %v1354_v48  ;;  %v1358_v52 = vor.u32 %v1356_v3, %v1354_v48  ;;  %v6140_v40 = vld [vmem:[#allocation9 + $0x140] sm:$0xff]   ;;  %v6144_v48 = vld [vmem:[#allocation9 + $0x150] sm:$0xff]   ;;  %v6134_v3 = vld [vmem:[#allocation9 + $0x108] sm:$0xff]  }
 0x254   : > { %5504 = vmatmul.mubr.bf16.gmra.mrb[48].mxu1 %v7347_v45  ;;  %5451 = vmatprep.mubr.msk.bf16.mxu0 %vm8261_vm10, %v8266_v12 }
 0x255   : > { %5507 = vmatprep.mubr.msk.bf16.mxu1 %vm8261_vm10, %v8266_v12  ;;  %v1363_v39 = vsel %vm1287_vm11, %v1358_v52, %v1362_v51  ;;  %v6148_v52 = vld [vmem:[#allocation9 + $0x160] sm:$0xff]   ;;  %v6149_v51 = vld [vmem:[#allocation9 + $0x168] sm:$0xff]  }
 0x25b   : > { %5452 = vmatmul.mubr.bf16.gmra.mrb[28].mxu0 %v1355_v28  ;;  %v1995_v28 = vsel %vm1709_vm14, %v1993_v58, %v1994_v24  ;;  %v1997_v58 = vsel %vm1709_vm14, %v1994_v24, %v1996_v60  ;;  %v1999_v24 = vsel %vm1709_vm14, %v1996_v60, %v1998_v31  ;;  %v2002_v60 = vrot.slane %v7226_v8, 1  ;;  %v6154_v8 = vld [vmem:[#allocation9 + $0x138] sm:$0xff]  }
 0x25c   : > { %5508 = vmatmul.mubr.bf16.gmra.mrb[52].mxu1 %v7163_v53  ;;  %5455 = vmatprep.mubr.msk.bf16.mxu0 %vm8261_vm10, %v8266_v12 }
 0x25d   : > { %5579 = vmatprep.mubr.msk.bf16.mxu1 %vm8261_vm10, %v8266_v12 }
 0x263   : > { %5456 = vmatmul.mubr.bf16.gmra.mrb[32].mxu0 %v1363_v39  ;;  %v6152_v39 = vld [vmem:[#allocation9 + $0x170] sm:$0xff]  }
 0x264   : > { %5580 = vmatmul.mubr.bf16.vlgmr.msra.gmra.mrb[56].mxu1 %v1995_v28  ;;  %5527 = vmatprep.mubr.msk.bf16.mxu0 %vm8261_vm10, %v8266_v12 }
 0x265   : > { %5583 = vmatprep.mubr.msk.bf16.mxu1 %vm8261_vm10, %v8266_v12  ;;  %5668 = vmatpush3.bf16.msra.mxu1 %v6140_v40  ;;  %v2000_v40 = vrot.slane %v7217_v57, 1  ;;  %v6145_v57 = vld [vmem:[#allocation9 + $0x128] sm:$0xff]  }
 0x266   : > { %5669 = vmatprep.subr.bf16.mxu1 %v8266_v12 }
 0x267   : > { %v2001_v28 = vsel %vm1709_vm14, %v1998_v31, %v2000_v40 }
 0x269   : > { %5670 = vmatpush3.bf16.msra.mxu1 %v6142_v14  ;;  %v6153_v14 = vld [vmem:[#allocation9 + $0x178] sm:$0xff]  }
 0x26a   : > { %5671 = vmatprep.subr.bf16.mxu1 %v8266_v12 }
 0x26b   : > { %5528 = vmatmul.mubr.bf16.vlgmr.msra.gmra.mrb[36].mxu0 %v7166_v49  ;;  %v6136_v49 = vld [vmem:[#allocation9 + $0x110] sm:$0xff]  }
 0x26c   : > { %5584 = vmatmul.mubr.bf16.gmra.mrb[60].mxu1 %v1997_v58  ;;  %5616 = vmatpush3.bf16.msra.mxu0 %v6132_v30  ;;  %v2003_v30 = vsel %vm1709_vm14, %v2000_v40, %v2002_v60  ;;  %v2006_v58 = vrot.slane %v7250_v42, 1  ;;  %v6151_v42 = vld [vmem:[#allocation2 + $0x50] ss:$0 sps:$4 sm:$0x11]   ;;  %v6167_v40 = vld [vmem:[#allocation9 + $0x1e8] sm:$0xff]  }
 0x26d   : > { %5531 = vmatprep.mubr.msk.bf16.mxu0 %vm8261_vm10, %v8266_v12  ;;  %5587 = vmatprep.mubr.msk.bf16.mxu1 %vm8261_vm10, %v8266_v12 }
 0x26e   : > { %5617 = vmatprep.subr.bf16.mxu0 %v8266_v12  ;;  %5672 = vmatpush3.bf16.msra.mxu1 %v6144_v48  ;;  %v2004_v48 = vrot.slane %v7235_v19, 1 }
 0x26f   : > { %5673 = vmatprep.subr.bf16.mxu1 %v8266_v12 }
 0x270   : > { %5618 = vmatpush3.bf16.msra.mxu0 %v6134_v3  ;;  %v2007_v19 = vsel %vm1709_vm14, %v2004_v48, %v2006_v58  ;;  %v2008_v3 = vrot.slane %v7264_v61, 1 }
 0x271   : > { %5619 = vmatprep.subr.bf16.mxu0 %v8266_v12 }
 0x272   : > { %5674 = vmatpush3.bf16.msra.mxu1 %v6146_v38  ;;  %v8267_v38 = vrot.slane %v7148_v4, 1 }
 0x273   : > { %5532 = vmatmul.mubr.bf16.gmra.mrb[40].mxu0 %v7159_v16  ;;  %5675 = vmatprep.subr.bf16.mxu1 %v8266_v12  ;;  %v6141_v16 = vld [vmem:[#allocation9 + $0x120] sm:$0xff]  }
 0x274   : > { %5588 = vmatmul.mubr.bf16.gmra.mrb[64].mxu1 %v1999_v24  ;;  %5535 = vmatprep.mubr.msk.bf16.mxu0 %vm8261_vm10, %v8266_v12  ;;  %v6156_v24 = vld [vmem:[#allocation9 + $0x180] sm:$0xff]  }
 0x275   : > { %5591 = vmatprep.mubr.msk.bf16.mxu1 %vm8261_vm10, %v8266_v12  ;;  %5620 = vmatpush3.bf16.msra.mxu0 %v6136_v49  ;;  %v2010_v49 = vrot.slane %v6151_v42, 1  ;;  %v3039_v42 = vshll.u32 %v7355_v1, 16 }
 0x276   : > { %5621 = vmatprep.subr.bf16.mxu0 %v8266_v12  ;;  %5676 = vmatpush3.bf16.msra.mxu1 %v6148_v52  ;;  %v6160_v52 = vld [vmem:[#allocation9 + $0x1c0] sm:$0xff]  }
 0x277   : > { %5677 = vmatprep.subr.bf16.mxu1 %v8266_v12  ;;  %v2011_v4 = vsel %vm1709_vm14, %v2008_v3, %v2010_v49 }
 0x279   : > { %5622 = vmatpush3.bf16.msra.mxu0 %v6138_v46  ;;  %v6163_v46 = vld [vmem:[#allocation9 + $0x1d0] sm:$0xff]  }
 0x27a   : > { %5623 = vmatprep.subr.bf16.mxu0 %v8266_v12  ;;  %5678 = vmatpush3.bf16.msra.mxu1 %v6149_v51  ;;  %v6159_v51 = vld [vmem:[#allocation9 + $0x198] sm:$0xff]  }
 0x27b   : > { %5536 = vmatmul.mubr.bf16.gmra.mrb[44].mxu0 %v7151_v6  ;;  %5679 = vmatprep.subr.bf16.mxu1 %v8266_v12  ;;  %v6150_v6 = vld [vmem:[#allocation9 + $0x130] sm:$0xff]  }
 0x27c   : > { %5592 = vmatmul.mubr.bf16.gmra.mrb[68].mxu1 %v2001_v28  ;;  %5539 = vmatprep.mubr.msk.bf16.mxu0 %vm8261_vm10, %v8266_v12 }
 0x27d   : > { %5595 = vmatprep.mubr.msk.bf16.mxu1 %vm8261_vm10, %v8266_v12  ;;  %5624 = vmatpush3.bf16.msra.mxu0 %v6141_v16  ;;  %v6164_v16 = vld [vmem:[#allocation9 + $0x1a8] sm:$0xff]  }
 0x27e   : > { %5625 = vmatprep.subr.bf16.mxu0 %v8266_v12  ;;  %5680 = vmatpush3.bf16.msra.mxu1 %v6152_v39  ;;  %v6171_v39 = vld [vmem:[#allocation9 + $0x1f8] sm:$0xff]  }
 0x27f   : > { %5681 = vmatprep.subr.bf16.mxu1 %v8266_v12 }
 0x281   : > { %5626 = vmatpush3.bf16.msra.mxu0 %v6145_v57 }
 0x282   : > { %5627 = vmatprep.subr.bf16.mxu0 %v8266_v12  ;;  %5682 = vmatpush3.bf16.msra.mxu1 %v6153_v14 }
 0x283   : > { %5540 = vmatmul.mubr.bf16.gmra.mrb[48].mxu0 %v7172_v23  ;;  %5771 = vmatprep.subr.bf16.mxu1 %v8266_v12  ;;  %v2005_v23 = vsel %vm1709_vm14, %v2002_v60, %v2004_v48  ;;  %v3027_v60 = vshrl.u32 %v7353_v10, 16 }
 0x284   : > { %5596 = vmatmul.mubr.bf16.gmra.mrb[72].mxu1 %v2003_v30  ;;  %5543 = vmatprep.mubr.msk.bf16.mxu0 %vm8261_vm10, %v8266_v12 }
 0x285   : > { %5599 = vmatprep.mubr.msk.bf16.mxu1 %vm8261_vm10, %v8266_v12  ;;  %5628 = vmatpush3.bf16.msra.mxu0 %v6150_v6  ;;  %v3030_v6 = vshll.u32 %v7353_v10, 16 }
 0x286   : > { %5629 = vmatprep.subr.bf16.mxu0 %v8266_v12 }
 0x289   : > { %5630 = vmatpush3.bf16.msra.mxu0 %v6154_v8 }
 0x28a   : > { %5719 = vmatprep.subr.bf16.mxu0 %v8266_v12 }
 0x28b   : > { %5544 = vmatmul.mubr.bf16.gmra.mrb[52].mxu0 %v7180_v26  ;;  %v1723_v26 = vrot.slane %v7347_v45, 1  ;;  %v8268_v45 = vrot.slane %v7163_v53, 1  ;;  %v6162_v53 = vld [vmem:[#allocation9 + $0x1c8] sm:$0xff]  }
 0x28c   : > { %5600 = vmatmul.mubr.bf16.gmra.mrb[76].mxu1 %v2005_v23  ;;  %5547 = vmatprep.mubr.msk.bf16.mxu0 %vm8261_vm10, %v8266_v12  ;;  %v3029_v23 = vrot.slane %v3027_v60, 2  ;;  %v2793_v60 = vrot.slane %v7355_v1, 2 }
 0x28d   : > { %5603 = vmatprep.mubr.msk.bf16.mxu1 %vm8261_vm10, %v8266_v12  ;;  %v1724_v31 = vsel %vm1709_vm14, %v8267_v38, %v1723_v26  ;;  %v1726_v61 = vsel %vm1709_vm14, %v1723_v26, %v8268_v45  ;;  %v2789_v26 = vrot.slane %v7351_v7, 2 }
 0x293   : > { %5548 = vmatmul.mubr.bf16.gmra.mrb[56].mxu0 %v7185_v15  ;;  %v2009_v15 = vsel %vm1709_vm14, %v2006_v58, %v2008_v3  ;;  %v3032_v58 = vrot.slane %v3030_v6, 3 }
 0x294   : > { %5604 = vmatmul.mubr.bf16.gmra.mrb[80].mxu1 %v2007_v19  ;;  %5551 = vmatprep.mubr.msk.bf16.mxu0 %vm8261_vm10, %v8266_v12 }
 0x295   : > { %5607 = vmatprep.mubr.msk.bf16.mxu1 %vm8261_vm10, %v8266_v12 }
 0x29b   : > { %5552 = vmatmul.mubr.bf16.gmra.mrb[60].mxu0 %v1724_v31 }
 0x29c   : > { %5608 = vmatmul.mubr.bf16.gmra.mrb[84].mxu1 %v2009_v15  ;;  %5555 = vmatprep.mubr.msk.bf16.mxu0 %vm8261_vm10, %v8266_v12  ;;  %v3033_v15 = vor.u32 %v3032_v58, %v3029_v23 }
 0x29d   : > { %5611 = vmatprep.mubr.msk.bf16.mxu1 %vm8261_vm10, %v8266_v12 }
 0x2a3   : > { %5556 = vmatmul.mubr.bf16.gmra.mrb[64].mxu0 %v1726_v61 }
 0x2a4   : > { %5612 = vmatmul.mubr.bf16.gmra.mrb[88].mxu1 %v2011_v4  ;;  %5559 = vmatprep.mubr.msk.bf16.mxu0 %vm8261_vm10, %v8266_v12  ;;  %v6176_v4 = vld [vmem:[#allocation9 + $0x200] sm:$0xff]  }
 0x2a5   : > { %5683 = vmatprep.mubr.msk.bf16.mxu1 %vm8261_vm10, %v8266_v12 }
 0x2ab   : > { %5560 = vmatmul.mubr.bf16.gmra.mrb[68].mxu0 %v7211_v56  ;;  %v6157_v56 = vld [vmem:[#allocation9 + $0x188] sm:$0xff]  }
 0x2ac   : > { %5684 = vmatmul.mubr.bf16.vlgmr.msra.gmra.mrb[92].mxu1 %v7220_v59  ;;  %5631 = vmatprep.mubr.msk.bf16.mxu0 %vm8261_vm10, %v8266_v12  ;;  %v6165_v59 = vld [vmem:[#allocation9 + $0x1d8] sm:$0xff]  }
 0x2ad   : > { %5687 = vmatprep.mubr.msk.bf16.mxu1 %vm8261_vm10, %v8266_v12  ;;  %5772 = vmatpush3.bf16.msra.mxu1 %v6160_v52 }
 0x2ae   : > { %5773 = vmatprep.subr.bf16.mxu1 %v8266_v12 }
 0x2b1   : > { %5774 = vmatpush3.bf16.msra.mxu1 %v6162_v53 }
 0x2b2   : > { %5775 = vmatprep.subr.bf16.mxu1 %v8266_v12 }
 0x2b3   : > { %5632 = vmatmul.mubr.bf16.vlgmr.msra.gmra.mrb[72].mxu0 %v7244_v29  ;;  %v6158_v29 = vld [vmem:[#allocation9 + $0x190] sm:$0xff]  }
 0x2b4   : > { %5688 = vmatmul.mubr.bf16.gmra.mrb[96].mxu1 %v7229_v9  ;;  %5720 = vmatpush3.bf16.msra.mxu0 %v6156_v24  ;;  %v6166_v9 = vld [vmem:[#allocation9 + $0x1e0] sm:$0xff]  }
 0x2b5   : > { %5635 = vmatprep.mubr.msk.bf16.mxu0 %vm8261_vm10, %v8266_v12  ;;  %5691 = vmatprep.mubr.msk.bf16.mxu1 %vm8261_vm10, %v8266_v12 }
 0x2b6   : > { %5721 = vmatprep.subr.bf16.mxu0 %v8266_v12  ;;  %5776 = vmatpush3.bf16.msra.mxu1 %v6163_v46 }
 0x2b7   : > { %5777 = vmatprep.subr.bf16.mxu1 %v8266_v12 }
 0x2b8   : > { %5722 = vmatpush3.bf16.msra.mxu0 %v6157_v56 }
 0x2b9   : > { %5723 = vmatprep.subr.bf16.mxu0 %v8266_v12 }
 0x2ba   : > { %5778 = vmatpush3.bf16.msra.mxu1 %v6165_v59 }
 0x2bb   : > { %5636 = vmatmul.mubr.bf16.gmra.mrb[76].mxu0 %v7260_v50  ;;  %5779 = vmatprep.subr.bf16.mxu1 %v8266_v12  ;;  %v6161_v50 = vld [vmem:[#allocation9 + $0x1a0] sm:$0xff]  }
 0x2bc   : > { %5692 = vmatmul.mubr.bf16.gmra.mrb[100].mxu1 %v7238_v22  ;;  %5639 = vmatprep.mubr.msk.bf16.mxu0 %vm8261_vm10, %v8266_v12  ;;  %v6170_v22 = vld [vmem:[#allocation9 + $0x1f0] sm:$0xff]  }
 0x2bd   : > { %5695 = vmatprep.mubr.msk.bf16.mxu1 %vm8261_vm10, %v8266_v12  ;;  %5724 = vmatpush3.bf16.msra.mxu0 %v6158_v29  ;;  %v3041_v29 = vrot.slane %v3039_v42, 3 }
 0x2be   : > { %5725 = vmatprep.subr.bf16.mxu0 %v8266_v12  ;;  %5780 = vmatpush3.bf16.msra.mxu1 %v6166_v9  ;;  %v6178_v9 = vld [vmem:[#allocation9 + $0x208] sm:$0xff]  }
 0x2bf   : > { %5781 = vmatprep.subr.bf16.mxu1 %v8266_v12 }
 0x2c1   : > { %5726 = vmatpush3.bf16.msra.mxu0 %v6159_v51 }
 0x2c2   : > { %5727 = vmatprep.subr.bf16.mxu0 %v8266_v12  ;;  %5782 = vmatpush3.bf16.msra.mxu1 %v6167_v40  ;;  %v2791_v40 = vrot.slane %v7353_v10, 2  ;;  %v6180_v10 = vld [vmem:[#allocation9 + $0x210] sm:$0xff]  }
 0x2c3   : > { %5640 = vmatmul.mubr.bf16.gmra.mrb[80].mxu0 %v7273_v5  ;;  %5783 = vmatprep.subr.bf16.mxu1 %v8266_v12  ;;  %v6168_v5 = vld [vmem:[#allocation9 + $0x1b0] sm:$0xff]  }
 0x2c4   : > { %5696 = vmatmul.mubr.bf16.gmra.mrb[104].mxu1 %v7253_v43  ;;  %5643 = vmatprep.mubr.msk.bf16.mxu0 %vm8261_vm10, %v8266_v12  ;;  %v6172_v43 = vld [vmem:[#allocation9 + $0x1b8] sm:$0xff]  }
 0x2c5   : > { %5699 = vmatprep.mubr.msk.bf16.mxu1 %vm8261_vm10, %v8266_v12  ;;  %5728 = vmatpush3.bf16.msra.mxu0 %v6161_v50 }
 0x2c6   : > { %5729 = vmatprep.subr.bf16.mxu0 %v8266_v12  ;;  %5784 = vmatpush3.bf16.msra.mxu1 %v6170_v22 }
 0x2c7   : > { %5785 = vmatprep.subr.bf16.mxu1 %v8266_v12 }
 0x2c9   : > { %5730 = vmatpush3.bf16.msra.mxu0 %v6164_v16 }
 0x2ca   : > { %5731 = vmatprep.subr.bf16.mxu0 %v8266_v12  ;;  %5786 = vmatpush3.bf16.msra.mxu1 %v6171_v39 }
 0x2cb   : > { %5644 = vmatmul.mubr.bf16.gmra.mrb[84].mxu0 %v7282_v18  ;;  %v3018_v18 = vshrl.u32 %v7351_v7, 16 }
 0x2cc   : > { %5700 = vmatmul.mubr.bf16.gmra.mrb[108].mxu1 %v7267_v62  ;;  %5647 = vmatprep.mubr.msk.bf16.mxu0 %vm8261_vm10, %v8266_v12  ;;  %v2704_v62 = vld [vmem:[#allocation2 + $0x10] sm:$0xc] }
 0x2cd   : > { %5703 = vmatprep.mubr.msk.bf16.mxu1 %vm8261_vm10, %v8266_v12  ;;  %5732 = vmatpush3.bf16.msra.mxu0 %v6168_v5  ;;  %v3045_v5 = vshrl.u32 %v7357_v13, 16 }
 0x2ce   : > { %5733 = vmatprep.subr.bf16.mxu0 %v8266_v12 }
 0x2d1   : > { %5734 = vmatpush3.bf16.msra.mxu0 %v6172_v43  ;;  %v3048_v43 = vshll.u32 %v7357_v13, 16 }
 0x2d2   : > { %5823 = vmatprep.subr.bf16.mxu0 %v8266_v12 }
 0x2d3   : > { %5648 = vmatmul.mubr.bf16.gmra.mrb[88].mxu0 %v7294_v47 }
 0x2d4   : > { %5704 = vmatmul.mubr.bf16.gmra.mrb[112].mxu1 %v7277_v11  ;;  %5651 = vmatprep.mubr.msk.bf16.mxu0 %vm8261_vm10, %v8266_v12  ;;  %v4988_v11 = vcombine.low %v2704_v62, %v7349_v36 }
 0x2d5   : > { %5707 = vmatprep.mubr.msk.bf16.mxu1 %vm8261_vm10, %v8266_v12 }
 0x2d6   : > { %v3010_v47 = vshrl.u32 %v4988_v11, 16  ;;  %v2788_v61 = vrot.slane %v4988_v11, 2 }
 0x2db   : > { %5652 = vmatmul.mubr.bf16.gmra.mrb[92].mxu0 %v7306_v0  ;;  %v3013_v0 = vshll.u32 %v4988_v11, 16 }
 0x2dc   : > { %5708 = vmatmul.mubr.bf16.gmra.mrb[116].mxu1 %v7287_v35  ;;  %5655 = vmatprep.mubr.msk.bf16.mxu0 %vm8261_vm10, %v8266_v12  ;;  %v3021_v35 = vshll.u32 %v7351_v7, 16  ;;  %v2790_v7 = vsel %vm2504_vm1, %v2788_v61, %v2789_v26 }
 0x2dd   : > { %5711 = vmatprep.mubr.msk.bf16.mxu1 %vm8261_vm10, %v8266_v12  ;;  %v3015_v36 = vrot.slane %v3013_v0, 3 }
 0x2de   : > { %v3023_v28 = vrot.slane %v3021_v35, 3 }
 0x2e3   : > { %5656 = vmatmul.mubr.bf16.gmra.mrb[96].mxu0 %v7319_v25  ;;  %v3020_v25 = vrot.slane %v3018_v18, 2 }
 0x2e4   : > { %5712 = vmatmul.mubr.bf16.gmra.mrb[120].mxu1 %v7301_v55  ;;  %5659 = vmatprep.mubr.msk.bf16.mxu0 %vm8261_vm10, %v8266_v12  ;;  %v3012_v55 = vrot.slane %v3010_v47, 2 }
 0x2e5   : > { %5715 = vmatprep.mubr.msk.bf16.mxu1 %vm8261_vm10, %v8266_v12  ;;  %v3024_v14 = vor.u32 %v3023_v28, %v3020_v25  ;;  %v2792_v25 = vsel %vm2504_vm1, %v2789_v26, %v2791_v40 }
 0x2e6   : > { %v3016_v8 = vor.u32 %v3015_v36, %v3012_v55  ;;  %v3047_v55 = vrot.slane %v3045_v5, 2  ;;  %v3050_v36 = vrot.slane %v3048_v43, 3 }
 0x2e7   : > { %v3034_v56 = vsel %vm3008_vm0, %v3024_v14, %v3033_v15 }
 0x2eb   : > { %5660 = vmatmul.mubr.bf16.gmra.mrb[100].mxu0 %v7322_v21 }
 0x2ec   : > { %5716 = vmatmul.mubr.bf16.gmra.mrb[124].mxu1 %v7315_v34  ;;  %5663 = vmatprep.mubr.msk.bf16.mxu0 %vm8261_vm10, %v8266_v12  ;;  %v3025_v34 = vsel %vm3008_vm0, %v3016_v8, %v3024_v14  ;;  %v3051_v8 = vor.u32 %v3050_v36, %v3047_v55 }
 0x2ed   : > { %5787 = vmatprep.mubr.msk.bf16.mxu1 %vm8261_vm10, %v8266_v12 }
 0x2ef   : > { %v1617_v57 = vpop.f32.mrb[20].mxu1 }
 0x2f0   : > { %v5477_v30 = vpop.f32.mrb[21].mxu1 }
 0x2f1   : > { %v1620_v21 = vpop.f32.mrb[22].mxu1 }
 0x2f2   : > { %v5478_v48 = vpop.f32.mrb[23].mxu1 }
 0x2f3   : > { %5664 = vmatmul.mubr.bf16.gmra.mrb[104].mxu0 %v7329_v37  ;;  %v3036_v37 = vshrl.u32 %v7355_v1, 16  ;;  %v3054_v48 = vshrl.u32 %v7359_v17, 16 }
 0x2f4   : > { %5788 = vmatmul.mubr.bf16.vlgmr.msra.gmra.mrb[128].mxu1 %v3025_v34  ;;  %5735 = vmatprep.mubr.msk.bf16.mxu0 %vm8261_vm10, %v8266_v12  ;;  %v3057_v34 = vshll.u32 %v7359_v17, 16 }
 0x2f5   : > { %5791 = vmatprep.mubr.msk.bf16.mxu1 %vm8261_vm10, %v8266_v12  ;;  %v3038_v59 = vrot.slane %v3036_v37, 2  ;;  %v3056_v42 = vrot.slane %v3054_v48, 2 }
 0x2f6   : > { %v1455_v19 = vpop.f32.mrb[0].mxu0 }
 0x2f7   : > { %v7595_v3 = vadd.f32 %v1617_v57, %v1455_v19  ;;  %v5425_v38 = vpop.f32.mrb[1].mxu0  ;;  %v1625_v31 = vpop.f32.mrb[24].mxu1  ;;  %v3042_v39 = vor.u32 %v3041_v29, %v3038_v59  ;;  %v6182_v57 = vld [vmem:[#allocation9 + $0x218] sm:$0xff]   ;;  %v3066_v59 = vshll.u32 %v7361_v2, 16 }
 0x2f8   : > { %v1458_v49 = vpop.f32.mrb[2].mxu0  ;;  %v5481_v45 = vpop.f32.mrb[25].mxu1 }
 0x2f9   : > { %v7599_v52 = vadd.f32 %v1620_v21, %v1458_v49  ;;  %v5426_v53 = vpop.f32.mrb[3].mxu0  ;;  %v1628_v24 = vpop.f32.mrb[26].mxu1  ;;  %v3043_v28 = vsel %vm3008_vm0, %v3033_v15, %v3042_v39  ;;  %v2794_v15 = vsel %vm2504_vm1, %v2791_v40, %v2793_v60  ;;  %v3052_v37 = vsel %vm3008_vm0, %v3042_v39, %v3051_v8  ;;  %v6186_v45 = vld [vmem:[#allocation9 + $0x228] sm:$0xff]  }
 0x2fa   : > { %v5482_v46 = vpop.f32.mrb[27].mxu1  ;;  %v3059_v49 = vrot.slane %v3057_v34, 3 }
 0x2fb   : > { %5736 = vmatmul.mubr.bf16.vlgmr.msra.gmra.mrb[108].mxu0 %v2790_v7 }
 0x2fc   : > { %5792 = vmatmul.mubr.bf16.gmra.mrb[132].mxu1 %v3034_v56  ;;  %5824 = vmatpush3.bf16.msra.mxu0 %v6176_v4  ;;  %v2795_v4 = vrot.slane %v7357_v13, 2  ;;  %v3060_v7 = vor.u32 %v3059_v49, %v3056_v42  ;;  %v3063_v56 = vshrl.u32 %v7361_v2, 16 }
 0x2fd   : > { %5739 = vmatprep.mubr.msk.bf16.mxu0 %vm8261_vm10, %v8266_v12  ;;  %5795 = vmatprep.mubr.msk.bf16.mxu1 %vm8261_vm10, %v8266_v12 }
 0x2fe   : > { %v1463_v51 = vpop.f32.mrb[4].mxu0  ;;  %5825 = vmatprep.subr.bf16.mxu0 %v8266_v12  ;;  %v2796_v39 = vsel %vm2504_vm1, %v2793_v60, %v2795_v4  ;;  %v3061_v5 = vsel %vm3008_vm0, %v3051_v8, %v3060_v7  ;;  %v3065_v43 = vrot.slane %v3063_v56, 2 }
 0x2ff   : > { %v7609_v50 = vadd.f32 %v1625_v31, %v1463_v51  ;;  %v5429_v22 = vpop.f32.mrb[5].mxu0  ;;  %v1633_v16 = vpop.f32.mrb[28].mxu1  ;;  %v6184_v31 = vld [vmem:[#allocation9 + $0x220] sm:$0xff]  }
 0x300   : > { %v1466_v62 = vpop.f32.mrb[6].mxu0  ;;  %v5485_v11 = vpop.f32.mrb[29].mxu1  ;;  %5826 = vmatpush3.bf16.msra.mxu0 %v6178_v9 }
 0x301   : > { %v7613_v18 = vadd.f32 %v1628_v24, %v1466_v62  ;;  %v5430_v35 = vpop.f32.mrb[7].mxu0  ;;  %v1636_v47 = vpop.f32.mrb[30].mxu1  ;;  %5827 = vmatprep.subr.bf16.mxu0 %v8266_v12  ;;  %v3068_v62 = vrot.slane %v3066_v59, 3  ;;  %v6191_v11 = vld [vmem:[#allocation9 + $0x238] sm:$0xff]  }
 0x302   : > { %v5486_v0 = vpop.f32.mrb[31].mxu1 }
 0x303   : > { %5740 = vmatmul.mubr.bf16.gmra.mrb[112].mxu0 %v2792_v25 }
 0x304   : > { %5796 = vmatmul.mubr.bf16.gmra.mrb[136].mxu1 %v3043_v28  ;;  %5743 = vmatprep.mubr.msk.bf16.mxu0 %vm8261_vm10, %v8266_v12  ;;  %v3069_v28 = vor.u32 %v3068_v62, %v3065_v43  ;;  %v2801_v62 = vrot.slane %v7367_v41, 2 }
 0x305   : > { %5799 = vmatprep.mubr.msk.bf16.mxu1 %vm8261_vm10, %v8266_v12  ;;  %5828 = vmatpush3.bf16.msra.mxu0 %v6180_v10 }
 0x306   : > { %v1471_v14 = vpop.f32.mrb[8].mxu0  ;;  %5829 = vmatprep.subr.bf16.mxu0 %v8266_v12  ;;  %v3070_v48 = vsel %vm3008_vm0, %v3060_v7, %v3069_v28 }
 0x307   : > { %v7624_v6 = vadd.f32 %v1633_v16, %v1471_v14  ;;  %v5433_v30 = vpop.f32.mrb[9].mxu0  ;;  %v1641_v21 = vpop.f32.mrb[32].mxu1  ;;  %v6188_v16 = vld [vmem:[#allocation9 + $0x230] sm:$0xff]  }
 0x308   : > { %v1474_v23 = vpop.f32.mrb[10].mxu0  ;;  %v5489_v58 = vpop.f32.mrb[33].mxu1  ;;  %v3072_v30 = vshrl.u32 %v7367_v41, 16 }
 0x309   : > { %v7628_v19 = vadd.f32 %v1636_v47, %v1474_v23  ;;  %v5434_v26 = vpop.f32.mrb[11].mxu0  ;;  %v1644_v38 = vpop.f32.mrb[34].mxu1  ;;  %5830 = vmatpush3.bf16.msra.mxu0 %v6182_v57  ;;  %v2797_v47 = vrot.slane %v7359_v17, 2 }
 0x30a   : > { %v5490_v1 = vpop.f32.mrb[35].mxu1  ;;  %5831 = vmatprep.subr.bf16.mxu0 %v8266_v12  ;;  %v3074_v34 = vrot.slane %v3072_v30, 2  ;;  %v2799_v26 = vrot.slane %v7361_v2, 2 }
 0x30b   : > { %5744 = vmatmul.mubr.bf16.gmra.mrb[116].mxu0 %v2794_v15  ;;  %v2798_v17 = vsel %vm2504_vm1, %v2795_v4, %v2797_v47  ;;  %v3081_v15 = vshrl.u32 %v7369_v33, 16 }
 0x30c   : > { %5800 = vmatmul.mubr.bf16.gmra.mrb[140].mxu1 %v3052_v37  ;;  %5747 = vmatprep.mubr.msk.bf16.mxu0 %vm8261_vm10, %v8266_v12  ;;  %v3084_v37 = vshll.u32 %v7369_v33, 16  ;;  %v2800_v7 = vsel %vm2504_vm1, %v2797_v47, %v2799_v26 }
 0x30d   : > { %5803 = vmatprep.mubr.msk.bf16.mxu1 %vm8261_vm10, %v8266_v12  ;;  %5832 = vmatpush3.bf16.msra.mxu0 %v6184_v31  ;;  %v3083_v56 = vrot.slane %v3081_v15, 2 }
 0x30e   : > { %v1479_v61 = vpop.f32.mrb[12].mxu0  ;;  %5833 = vmatprep.subr.bf16.mxu0 %v8266_v12  ;;  %v3086_v59 = vrot.slane %v3084_v37, 3 }
 0x30f   : > { %v7639_v53 = vadd.f32 %v1641_v21, %v1479_v61  ;;  %v5437_v24 = vpop.f32.mrb[13].mxu0  ;;  %v1649_v46 = vpop.f32.mrb[36].mxu1  ;;  %v3075_v21 = vshll.u32 %v7367_v41, 16 }
 0x310   : > { %v1482_v29 = vpop.f32.mrb[14].mxu0  ;;  %v5493_v9 = vpop.f32.mrb[37].mxu1 }
 0x311   : > { %v7643_v51 = vadd.f32 %v1644_v38, %v1482_v29  ;;  %v5438_v40 = vpop.f32.mrb[15].mxu0  ;;  %v1652_v22 = vpop.f32.mrb[38].mxu1  ;;  %5834 = vmatpush3.bf16.msra.mxu0 %v6186_v45  ;;  %v3077_v23 = vrot.slane %v3075_v21, 3 }
 0x312   : > { %v5494_v13 = vpop.f32.mrb[39].mxu1  ;;  %5835 = vmatprep.subr.bf16.mxu0 %v8266_v12 }
 0x313   : > { %5748 = vmatmul.mubr.bf16.gmra.mrb[120].mxu0 %v2796_v39  ;;  %v3078_v24 = vor.u32 %v3077_v23, %v3074_v34  ;;  %v3090_v13 = vshrl.u32 %v7372_v44, 16  ;;  %v3093_v39 = vshll.u32 %v7372_v44, 16  ;;  %v2803_v44 = vrot.slane %v7369_v33, 2 }
 0x314   : > { %5804 = vmatmul.mubr.bf16.gmra.mrb[144].mxu1 %v3061_v5  ;;  %5751 = vmatprep.mubr.msk.bf16.mxu0 %vm8261_vm10, %v8266_v12 }
 0x315   : > { %5807 = vmatprep.mubr.msk.bf16.mxu1 %vm8261_vm10, %v8266_v12  ;;  %5836 = vmatpush3.bf16.msra.mxu0 %v6188_v16  ;;  %v3079_v2 = vsel %vm3008_vm0, %v3069_v28, %v3078_v24  ;;  %v3087_v16 = vor.u32 %v3086_v59, %v3083_v56 }
 0x316   : > { %v1487_v35 = vpop.f32.mrb[16].mxu0  ;;  %5837 = vmatprep.subr.bf16.mxu0 %v8266_v12 }
 0x317   : > { %v7654_v10 = vadd.f32 %v1649_v46, %v1487_v35  ;;  %v5441_v0 = vpop.f32.mrb[17].mxu0  ;;  %v1657_v25 = vpop.f32.mrb[40].mxu1  ;;  %v3088_v28 = vsel %vm3008_vm0, %v3078_v24, %v3087_v16 }
 0x318   : > { %v1490_v55 = vpop.f32.mrb[18].mxu0  ;;  %v5497_v36 = vpop.f32.mrb[41].mxu1 }
 0x319   : > { %v7656_v57 = vadd.f32 %v1652_v22, %v1490_v55  ;;  %v5442_v14 = vpop.f32.mrb[19].mxu0  ;;  %v1660_v60 = vpop.f32.mrb[42].mxu1  ;;  %5838 = vmatpush3.bf16.msra.mxu0 %v6191_v11  ;;  %v3092_v55 = vrot.slane %v3090_v13, 2  ;;  %v3095_v36 = vrot.slane %v3093_v39, 3 }
 0x31a   : > { %v5498_v8 = vpop.f32.mrb[43].mxu1 }
 0x31b   : > { %5752 = vmatmul.mubr.bf16.gmra.mrb[124].mxu0 %v2798_v17  ;;  %v3096_v21 = vor.u32 %v3095_v36, %v3092_v55 }
 0x31c   : > { %5808 = vmatmul.mubr.bf16.gmra.mrb[148].mxu1 %v3070_v48  ;;  %5755 = vmatprep.mubr.msk.bf16.mxu0 %vm8261_vm10, %v8266_v12 }
 0x31d   : > { %5811 = vmatprep.mubr.msk.bf16.mxu1 %vm8261_vm10, %v8266_v12 }
 0x31e   : > { %v1495_v58 = vpop.f32.mrb[20].mxu0 }
 0x31f   : > { %v7667_v38 = vadd.f32 %v1657_v25, %v1495_v58  ;;  %v5445_v31 = vpop.f32.mrb[21].mxu0  ;;  %v1665_v1 = vpop.f32.mrb[44].mxu1  ;;  %v2802_v25 = vsel %vm2504_vm1, %v2799_v26, %v2801_v62  ;;  %v2804_v26 = vsel %vm2504_vm1, %v2801_v62, %v2803_v44 }
 0x320   : > { %v1498_v42 = vpop.f32.mrb[22].mxu0  ;;  %v5501_v49 = vpop.f32.mrb[45].mxu1  ;;  %v6190_v31 = vld [vmem:[#allocation2 + $0x58] ss:$0 sps:$4 sm:$0x33]  }
 0x321   : > { %v7671_v45 = vadd.f32 %v1660_v60, %v1498_v42  ;;  %v5446_v61 = vpop.f32.mrb[23].mxu0  ;;  %v1668_v4 = vpop.f32.mrb[46].mxu1  ;;  %v2805_v15 = vrot.slane %v6190_v31, 2 }
 0x322   : > { %v5502_v46 = vpop.f32.mrb[47].mxu1 }
 0x323   : > { %5756 = vmatmul.mubr.bf16.gmra.mrb[128].mxu0 %v2800_v7  ;;  %v2806_v56 = vsel %vm2504_vm1, %v2803_v44, %v2805_v15 }
 0x324   : > { %5812 = vmatmul.mubr.bf16.gmra.mrb[152].mxu1 %v3079_v2  ;;  %5759 = vmatprep.mubr.msk.bf16.mxu0 %vm8261_vm10, %v8266_v12 }
 0x325   : > { %5815 = vmatprep.mubr.msk.bf16.mxu1 %vm8261_vm10, %v8266_v12 }
 0x326   : > { %v1503_v29 = vpop.f32.mrb[24].mxu0 }
 0x327   : > { %v7679_v9 = vadd.f32 %v1665_v1, %v1503_v29  ;;  %v5449_v40 = vpop.f32.mrb[25].mxu0  ;;  %v1673_v22 = vpop.f32.mrb[48].mxu1  ;;  %v3097_v1 = vsel %vm3008_vm0, %v3087_v16, %v3096_v21 }
 0x328   : > { %v1506_v5 = vpop.f32.mrb[26].mxu0  ;;  %v5505_v43 = vpop.f32.mrb[49].mxu1 }
 0x329   : > { %v7684_v11 = vadd.f32 %v1668_v4, %v1506_v5  ;;  %v5450_v35 = vpop.f32.mrb[27].mxu0  ;;  %v1676_v47 = vpop.f32.mrb[50].mxu1 }
 0x32a   : > { %v5506_v0 = vpop.f32.mrb[51].mxu1 }
 0x32b   : > { %5760 = vmatmul.mubr.bf16.gmra.mrb[132].mxu0 %v2802_v25 }
 0x32c   : > { %5816 = vmatmul.mubr.bf16.gmra.mrb[156].mxu1 %v3088_v28  ;;  %5763 = vmatprep.mubr.msk.bf16.mxu0 %vm8261_vm10, %v8266_v12 }
 0x32d   : > { %5819 = vmatprep.mubr.msk.bf16.mxu1 %vm8261_vm10, %v8266_v12 }
 0x32e   : > { %v1511_v41 = vpop.f32.mrb[28].mxu0 }
 0x32f   : > { %v7693_v14 = vadd.f32 %v1673_v22, %v1511_v41  ;;  %v5453_v60 = vpop.f32.mrb[29].mxu0  ;;  %v1681_v30 = vpop.f32.mrb[52].mxu1 }
 0x330   : > { %v1514_v8 = vpop.f32.mrb[30].mxu0  ;;  %v5509_v17 = vpop.f32.mrb[53].mxu1 }
 0x331   : > { %v7695_v48 = vadd.f32 %v1676_v47, %v1514_v8  ;;  %v5454_v34 = vpop.f32.mrb[31].mxu0  ;;  %v1684_v23 = vpop.f32.mrb[54].mxu1 }
 0x332   : > { %v5510_v58 = vpop.f32.mrb[55].mxu1 }
 0x333   : > { %5764 = vmatmul.mubr.bf16.gmra.mrb[136].mxu0 %v2804_v26 }
 0x334   : > { %5820 = vmatmul.mubr.bf16.gmra.mrb[160].mxu1 %v3097_v1  ;;  %5767 = vmatprep.mubr.msk.bf16.mxu0 %vm8261_vm10, %v8266_v12 }
 0x336   : > { %v1519_v33 = vpop.f32.mrb[32].mxu0 }
 0x337   : > { %v7701_v37 = vadd.f32 %v1681_v30, %v1519_v33  ;;  %v5457_v42 = vpop.f32.mrb[33].mxu0  ;;  %v2103_v49 = vpop.f32.mrb[56].mxu1 }
 0x338   : > { %v1522_v61 = vpop.f32.mrb[34].mxu0  ;;  %v5581_v4 = vpop.f32.mrb[57].mxu1 }
 0x339   : > { %v7703_v24 = vadd.f32 %v1684_v23, %v1522_v61  ;;  %v5458_v46 = vpop.f32.mrb[35].mxu0  ;;  %v2106_v7 = vpop.f32.mrb[58].mxu1 }
 0x33a   : > { %v5582_v2 = vpop.f32.mrb[59].mxu1 }
 0x33b   : > { %5768 = vmatmul.mubr.bf16.gmra.mrb[140].mxu0 %v2806_v56 }
 0x33c   : > { %5839 = vmatprep.mubr.msk.bf16.mxu0 %vm8261_vm10, %v8266_v12 }
 0x33e   : > { %v1820_v59 = vpop.f32.mrb[36].mxu0 }
 0x33f   : > { %v1891_v29 = vadd.f32 %v1820_v59, %v7595_v3  ;;  %v5529_v40 = vpop.f32.mrb[37].mxu0  ;;  %v2111_v22 = vpop.f32.mrb[60].mxu1 }
 0x340   : > { %v1823_v16 = vpop.f32.mrb[38].mxu0  ;;  %v5585_v13 = vpop.f32.mrb[61].mxu1 }
 0x341   : > { %v1892_v39 = vadd.f32 %v1823_v16, %v7599_v52  ;;  %v5530_v5 = vpop.f32.mrb[39].mxu0  ;;  %v2114_v43 = vpop.f32.mrb[62].mxu1  ;;  %v7710_v62 = vadd.f32 %v2103_v49, %v1891_v29 }
 0x342   : > { %v5586_v35 = vpop.f32.mrb[63].mxu1 }
 0x343   : > { %5840 = vmatmul.mubr.bf16.vlgmr.msra.gmra.mrb[144].mxu0 %v7384_v27  ;;  %v7713_v47 = vadd.f32 %v2106_v7, %v1892_v39  ;;  %v8269_v27 = vld [vmem:[#allocation25_spill] sm:$0xff] }
 0x344   : > { %5843 = vmatprep.mubr.msk.bf16.mxu0 %vm8261_vm10, %v8266_v12 }
 0x346   : > { %v1828_v0 = vpop.f32.mrb[40].mxu0 }
 0x347   : > { %v1893_v3 = vadd.f32 %v1828_v0, %v7609_v50  ;;  %v5533_v25 = vpop.f32.mrb[41].mxu0  ;;  %v2119_v28 = vpop.f32.mrb[64].mxu1 }
 0x348   : > { %v1831_v55 = vpop.f32.mrb[42].mxu0  ;;  %v5589_v36 = vpop.f32.mrb[65].mxu1 }
 0x349   : > { %v1894_v52 = vadd.f32 %v1831_v55, %v7613_v18  ;;  %v5534_v41 = vpop.f32.mrb[43].mxu0  ;;  %v2122_v44 = vpop.f32.mrb[66].mxu1  ;;  %v7719_v60 = vadd.f32 %v2111_v22, %v1893_v3 }
 0x34a   : > { %v5590_v30 = vpop.f32.mrb[67].mxu1 }
 0x34b   : > { %5844 = vmatmul.mubr.bf16.gmra.mrb[148].mxu0 %v8269_v27  ;;  %v7722_v21 = vadd.f32 %v2114_v43, %v1894_v52 }
 0x34c   : > { %5847 = vmatprep.mubr.msk.bf16.mxu0 %vm8261_vm10, %v8266_v12 }
 0x34e   : > { %v1836_v8 = vpop.f32.mrb[44].mxu0 }
 0x34f   : > { %v1895_v50 = vadd.f32 %v1836_v8, %v7624_v6  ;;  %v5537_v17 = vpop.f32.mrb[45].mxu0  ;;  %v2127_v34 = vpop.f32.mrb[68].mxu1 }
 0x350   : > { %v1839_v23 = vpop.f32.mrb[46].mxu0  ;;  %v5593_v58 = vpop.f32.mrb[69].mxu1 }
 0x351   : > { %v1896_v18 = vadd.f32 %v1839_v23, %v7628_v19  ;;  %v5538_v26 = vpop.f32.mrb[47].mxu0  ;;  %v2130_v31 = vpop.f32.mrb[70].mxu1  ;;  %v7728_v1 = vadd.f32 %v2119_v28, %v1895_v50 }
 0x352   : > { %v5594_v33 = vpop.f32.mrb[71].mxu1 }
 0x353   : > { %5848 = vmatmul.mubr.bf16.gmra.mrb[152].mxu0 %v7390_v20  ;;  %v7731_v15 = vadd.f32 %v2122_v44, %v1896_v18 }
 0x354   : > { %5851 = vmatprep.mubr.msk.bf16.mxu0 %vm8261_vm10, %v8266_v12 }
 0x356   : > { %v1844_v42 = vpop.f32.mrb[48].mxu0 }
 0x357   : > { %v1897_v6 = vadd.f32 %v1844_v42, %v7639_v53  ;;  %v5541_v49 = vpop.f32.mrb[49].mxu0  ;;  %v2135_v61 = vpop.f32.mrb[72].mxu1 }
 0x358   : > { %v1847_v4 = vpop.f32.mrb[50].mxu0  ;;  %v5597_v46 = vpop.f32.mrb[73].mxu1 }
 0x359   : > { %v1898_v19 = vadd.f32 %v1847_v4, %v7643_v51  ;;  %v5542_v7 = vpop.f32.mrb[51].mxu0  ;;  %v2138_v2 = vpop.f32.mrb[74].mxu1  ;;  %v7737_v56 = vadd.f32 %v2127_v34, %v1897_v6 }
 0x35a   : > { %v5598_v59 = vpop.f32.mrb[75].mxu1 }
 0x35b   : > { %5852 = vmatmul.mubr.bf16.gmra.mrb[156].mxu0 %v7394_v63  ;;  %v7740_v20 = vadd.f32 %v2130_v31, %v1898_v19  ;;  %v8270_v63 = vld [vmem:[#allocation26_spill] sm:$0xff] }
 0x35c   : > { %5855 = vmatprep.mubr.msk.bf16.mxu0 %vm8261_vm10, %v8266_v12 }
 0x35e   : > { %v1852_v29 = vpop.f32.mrb[52].mxu0 }
 0x35f   : > { %v1899_v53 = vadd.f32 %v1852_v29, %v7654_v10  ;;  %v5545_v40 = vpop.f32.mrb[53].mxu0  ;;  %v2143_v22 = vpop.f32.mrb[76].mxu1 }
 0x360   : > { %v1855_v16 = vpop.f32.mrb[54].mxu0  ;;  %v5601_v13 = vpop.f32.mrb[77].mxu1 }
 0x361   : > { %v1900_v51 = vadd.f32 %v1855_v16, %v7656_v57  ;;  %v5546_v39 = vpop.f32.mrb[55].mxu0  ;;  %v2146_v5 = vpop.f32.mrb[78].mxu1  ;;  %v7746_v43 = vadd.f32 %v2135_v61, %v1899_v53 }
 0x362   : > { %v5602_v35 = vpop.f32.mrb[79].mxu1 }
 0x363   : > { %5856 = vmatmul.mubr.bf16.gmra.mrb[160].mxu0 %v8270_v63  ;;  %v7749_v0 = vadd.f32 %v2138_v2, %v1900_v51 }
 0x364   : > { %5859 = vmatprep.mubr.msk.bf16.mxu0 %vm8261_vm10, %v8266_v12 }
 0x366   : > { %v1860_v3 = vpop.f32.mrb[56].mxu0 }
 0x367   : > { %v1901_v10 = vadd.f32 %v1860_v3, %v7667_v38  ;;  %v5549_v25 = vpop.f32.mrb[57].mxu0  ;;  %v2151_v28 = vpop.f32.mrb[80].mxu1 }
 0x368   : > { %v1863_v55 = vpop.f32.mrb[58].mxu0  ;;  %v5605_v36 = vpop.f32.mrb[81].mxu1 }
 0x369   : > { %v1902_v57 = vadd.f32 %v1863_v55, %v7671_v45  ;;  %v5550_v52 = vpop.f32.mrb[59].mxu0  ;;  %v2154_v41 = vpop.f32.mrb[82].mxu1  ;;  %v7755_v44 = vadd.f32 %v2143_v22, %v1901_v10 }
 0x36a   : > { %v5606_v30 = vpop.f32.mrb[83].mxu1 }
 0x36b   : > { %5860 = vmatmul.mubr.bf16.gmra.mrb[164].mxu0 %v7401_v32  ;;  %v7758_v27 = vadd.f32 %v2146_v5, %v1902_v57  ;;  %v8272_v5 = vld [vmem:[#allocation28_spill] sm:$0xff] }
 0x36c   : > { %5863 = vmatprep.mubr.msk.bf16.mxu0 %vm8261_vm10, %v8266_v12 }
 0x36e   : > { %v1868_v8 = vpop.f32.mrb[60].mxu0 }
 0x36f   : > { %v1903_v38 = vadd.f32 %v1868_v8, %v7679_v9  ;;  %v5553_v50 = vpop.f32.mrb[61].mxu0  ;;  %v2159_v17 = vpop.f32.mrb[84].mxu1 }
 0x370   : > { %v1871_v34 = vpop.f32.mrb[62].mxu0  ;;  %v5609_v23 = vpop.f32.mrb[85].mxu1 }
 0x371   : > { %v1904_v45 = vadd.f32 %v1871_v34, %v7684_v11  ;;  %v5554_v58 = vpop.f32.mrb[63].mxu0  ;;  %v2162_v18 = vpop.f32.mrb[86].mxu1  ;;  %v7764_v26 = vadd.f32 %v2151_v28, %v1903_v38 }
 0x372   : > { %v5610_v31 = vpop.f32.mrb[87].mxu1 }
 0x373   : > { %5864 = vmatmul.mubr.bf16.gmra.mrb[168].mxu0 %v7406_v54  ;;  %v7767_v32 = vadd.f32 %v2154_v41, %v1904_v45  ;;  %v8271_v54 = vld [vmem:[#allocation27_spill] sm:$0xff] }
 0x374   : > { %5867 = vmatprep.mubr.msk.bf16.mxu0 %vm8261_vm10, %v8266_v12 }
 0x376   : > { %v1876_v33 = vpop.f32.mrb[64].mxu0 }
 0x377   : > { %v1905_v9 = vadd.f32 %v1876_v33, %v7693_v14  ;;  %v5557_v42 = vpop.f32.mrb[65].mxu0  ;;  %v2167_v6 = vpop.f32.mrb[88].mxu1 }
 0x378   : > { %v1879_v49 = vpop.f32.mrb[66].mxu0  ;;  %v5613_v61 = vpop.f32.mrb[89].mxu1 }
 0x379   : > { %v1906_v11 = vadd.f32 %v1879_v49, %v7695_v48  ;;  %v5558_v4 = vpop.f32.mrb[67].mxu0  ;;  %v2170_v46 = vpop.f32.mrb[90].mxu1  ;;  %v7773_v19 = vadd.f32 %v2159_v17, %v1905_v9 }
 0x37a   : > { %v5614_v7 = vpop.f32.mrb[91].mxu1 }
 0x37b   : > { %5868 = vmatmul.mubr.bf16.gmra.mrb[172].mxu0 %v8271_v54  ;;  %v7776_v2 = vadd.f32 %v2162_v18, %v1906_v11 }
 0x37c   : > { %5871 = vmatprep.mubr.msk.bf16.mxu0 %vm8261_vm10, %v8266_v12 }
 0x37e   : > { %v1884_v59 = vpop.f32.mrb[68].mxu0 }
 0x37f   : > { %v1907_v14 = vadd.f32 %v1884_v59, %v7701_v37  ;;  %v5561_v29 = vpop.f32.mrb[69].mxu0  ;;  %v2615_v53 = vpop.f32.mrb[92].mxu1 }
 0x380   : > { %v1887_v40 = vpop.f32.mrb[70].mxu0  ;;  %v5685_v22 = vpop.f32.mrb[93].mxu1 }
 0x381   : > { %v1908_v48 = vadd.f32 %v1887_v40, %v7703_v24  ;;  %v5562_v16 = vpop.f32.mrb[71].mxu0  ;;  %v2618_v13 = vpop.f32.mrb[94].mxu1  ;;  %v7782_v51 = vadd.f32 %v2167_v6, %v1907_v14 }
 0x382   : > { %v5686_v39 = vpop.f32.mrb[95].mxu1 }
 0x383   : > { %5872 = vmatmul.mubr.bf16.gmra.mrb[176].mxu0 %v8272_v5  ;;  %v7785_v35 = vadd.f32 %v2170_v46, %v1908_v48 }
 0x386   : > { %v2394_v63 = vpop.f32.mrb[72].mxu0 }
 0x387   : > { %v2465_v12 = vadd.f32 %v2394_v63, %v7710_v62  ;;  %v5633_v3 = vpop.f32.mrb[73].mxu0  ;;  %v2623_v37 = vpop.f32.mrb[96].mxu1  ;;  %v6193_v63 = vld [vmem:[#allocation11] sm:$0xff]  }
 0x388   : > { %v2397_v10 = vpop.f32.mrb[74].mxu0  ;;  %v5689_v25 = vpop.f32.mrb[97].mxu1  ;;  %5907 = vmatprep.subr.bf16.mxu1 %v6193_v63  ;;  %5875 = vmatprep.subr.bf16.mxu0 %v6193_v63 }
 0x389   : > { %v2466_v28 = vadd.f32 %v2397_v10, %v7713_v47  ;;  %v5634_v55 = vpop.f32.mrb[75].mxu0  ;;  %v2626_v24 = vpop.f32.mrb[98].mxu1  ;;  %v7789_v36 = vadd.f32 %v2615_v53, %v2465_v12  ;;  %5915 = vmatpush3.bf16.msra.mxu1 %v6193_v63  ;;  %5876 = vmatpush3.bf16.msra.mxu0 %v6193_v63 }
 0x38a   : > { %v5690_v57 = vpop.f32.mrb[99].mxu1 }
 0x38b   : > { %v7791_v52 = vadd.f32 %v2618_v13, %v2466_v28 }
 0x38e   : > { %v2402_v41 = vpop.f32.mrb[76].mxu0 }
 0x38f   : > { %v2467_v30 = vadd.f32 %v2402_v41, %v7719_v60  ;;  %v5637_v8 = vpop.f32.mrb[77].mxu0  ;;  %v2631_v38 = vpop.f32.mrb[100].mxu1 }
 0x390   : > { %v2405_v50 = vpop.f32.mrb[78].mxu0  ;;  %v5693_v62 = vpop.f32.mrb[101].mxu1 }
 0x391   : > { %v2468_v17 = vadd.f32 %v2405_v50, %v7722_v21  ;;  %v5638_v34 = vpop.f32.mrb[79].mxu0  ;;  %v2634_v23 = vpop.f32.mrb[102].mxu1  ;;  %v7795_v45 = vadd.f32 %v2623_v37, %v2467_v30 }
 0x392   : > { %v5694_v47 = vpop.f32.mrb[103].mxu1 }
 0x393   : > { %v7797_v58 = vadd.f32 %v2626_v24, %v2468_v17  ;;  %v6195_v47 = vld [vmem:[#allocation11 + $0x10] sm:$0xff]  }
 0x396   : > { %v2410_v18 = vpop.f32.mrb[80].mxu0 }
 0x397   : > { %v2469_v31 = vadd.f32 %v2410_v18, %v7728_v1  ;;  %v5641_v33 = vpop.f32.mrb[81].mxu0  ;;  %v2639_v9 = vpop.f32.mrb[104].mxu1 }
 0x398   : > { %v2413_v42 = vpop.f32.mrb[82].mxu0  ;;  %v5697_v60 = vpop.f32.mrb[105].mxu1 }
 0x399   : > { %v2470_v6 = vadd.f32 %v2413_v42, %v7731_v15  ;;  %v5642_v49 = vpop.f32.mrb[83].mxu0  ;;  %v2642_v61 = vpop.f32.mrb[106].mxu1  ;;  %v7801_v11 = vadd.f32 %v2631_v38, %v2469_v31 }
 0x39a   : > { %v5698_v21 = vpop.f32.mrb[107].mxu1 }
 0x39b   : > { %v7803_v4 = vadd.f32 %v2634_v23, %v2470_v6  ;;  %v6194_v23 = vld [vmem:[#allocation11 + $0x8] sm:$0xff]  }
 0x39c   : > { %5877 = vmatprep.subr.bf16.mxu0 %v6194_v23  ;;  %5908 = vmatprep.subr.bf16.mxu1 %v6194_v23 }
 0x39d   : > { %5878 = vmatpush3.bf16.msra.mxu0 %v6194_v23  ;;  %5916 = vmatpush3.bf16.msra.mxu1 %v6194_v23 }
 0x39e   : > { %v2418_v46 = vpop.f32.mrb[84].mxu0  ;;  %5879 = vmatprep.subr.bf16.mxu0 %v6195_v47  ;;  %5909 = vmatprep.subr.bf16.mxu1 %v6195_v47 }
 0x39f   : > { %v2471_v7 = vadd.f32 %v2418_v46, %v7737_v56  ;;  %v5645_v54 = vpop.f32.mrb[85].mxu0  ;;  %v2647_v59 = vpop.f32.mrb[108].mxu1  ;;  %v6197_v46 = vld [vmem:[#allocation11 + $0x20] sm:$0xff]  }
 0x3a0   : > { %v2421_v14 = vpop.f32.mrb[86].mxu0  ;;  %v5701_v1 = vpop.f32.mrb[109].mxu1 }
 0x3a1   : > { %v2472_v29 = vadd.f32 %v2421_v14, %v7740_v20  ;;  %v5646_v53 = vpop.f32.mrb[87].mxu0  ;;  %v2650_v40 = vpop.f32.mrb[110].mxu1  ;;  %v7807_v22 = vadd.f32 %v2639_v9, %v2471_v7  ;;  %5880 = vmatpush3.bf16.msra.mxu0 %v6195_v47  ;;  %5917 = vmatpush3.bf16.msra.mxu1 %v6195_v47 }
 0x3a2   : > { %v5702_v15 = vpop.f32.mrb[111].mxu1 }
 0x3a3   : > { %v7809_v48 = vadd.f32 %v2642_v61, %v2472_v29  ;;  %v6196_v61 = vld [vmem:[#allocation11 + $0x18] sm:$0xff]  }
 0x3a4   : > { %5881 = vmatprep.subr.bf16.mxu0 %v6196_v61  ;;  %5910 = vmatprep.subr.bf16.mxu1 %v6196_v61 }
 0x3a5   : > { %5882 = vmatpush3.bf16.msra.mxu0 %v6196_v61  ;;  %5918 = vmatpush3.bf16.msra.mxu1 %v6196_v61 }
 0x3a6   : > { %v2426_v16 = vpop.f32.mrb[88].mxu0  ;;  %5883 = vmatprep.subr.bf16.mxu0 %v6197_v46  ;;  %5911 = vmatprep.subr.bf16.mxu1 %v6197_v46 }
 0x3a7   : > { %v2473_v13 = vadd.f32 %v2426_v16, %v7746_v43  ;;  %v5649_v39 = vpop.f32.mrb[89].mxu0  ;;  %v2655_v5 = vpop.f32.mrb[112].mxu1 }
 0x3a8   : > { %v2429_v56 = vpop.f32.mrb[90].mxu0  ;;  %v5705_v12 = vpop.f32.mrb[113].mxu1  ;;  %v6199_v39 = vld [vmem:[#allocation11 + $0x30] sm:$0xff]  }
 0x3a9   : > { %v2474_v3 = vadd.f32 %v2429_v56, %v7749_v0  ;;  %v5650_v37 = vpop.f32.mrb[91].mxu0  ;;  %v2658_v10 = vpop.f32.mrb[114].mxu1  ;;  %v7813_v20 = vadd.f32 %v2647_v59, %v2473_v13  ;;  %5884 = vmatpush3.bf16.msra.mxu0 %v6197_v46  ;;  %5919 = vmatpush3.bf16.msra.mxu1 %v6197_v46  ;;  %v6198_v13 = vld [vmem:[#allocation11 + $0x28] sm:$0xff]  }
 0x3aa   : > { %v5706_v25 = vpop.f32.mrb[115].mxu1  ;;  %5885 = vmatprep.subr.bf16.mxu0 %v6198_v13  ;;  %5912 = vmatprep.subr.bf16.mxu1 %v6198_v13 }
 0x3ab   : > { %v7815_v28 = vadd.f32 %v2650_v40, %v2474_v3 }
 0x3ad   : > { %5886 = vmatpush3.bf16.msra.mxu0 %v6198_v13  ;;  %5920 = vmatpush3.bf16.msra.mxu1 %v6198_v13 }
 0x3ae   : > { %v2434_v55 = vpop.f32.mrb[92].mxu0  ;;  %5887 = vmatprep.subr.bf16.mxu0 %v6199_v39  ;;  %5913 = vmatprep.subr.bf16.mxu1 %v6199_v39 }
 0x3af   : > { %v2475_v43 = vadd.f32 %v2434_v55, %v7755_v44  ;;  %v5653_v24 = vpop.f32.mrb[93].mxu0  ;;  %v2663_v57 = vpop.f32.mrb[116].mxu1 }
 0x3b0   : > { %v2437_v41 = vpop.f32.mrb[94].mxu0  ;;  %v5709_v30 = vpop.f32.mrb[117].mxu1 }
 0x3b1   : > { %v2476_v0 = vadd.f32 %v2437_v41, %v7758_v27  ;;  %v5654_v8 = vpop.f32.mrb[95].mxu0  ;;  %v2666_v38 = vpop.f32.mrb[118].mxu1  ;;  %v7819_v50 = vadd.f32 %v2655_v5, %v2475_v43  ;;  %5888 = vmatpush3.bf16.msra.mxu0 %v6199_v39  ;;  %5921 = vmatpush3.bf16.msra.mxu1 %v6199_v39 }
 0x3b2   : > { %v5710_v62 = vpop.f32.mrb[119].mxu1 }
 0x3b3   : > { %v7821_v17 = vadd.f32 %v2658_v10, %v2476_v0 }
 0x3b6   : > { %v2442_v34 = vpop.f32.mrb[96].mxu0 }
 0x3b7   : > { %v2477_v18 = vadd.f32 %v2442_v34, %v7764_v26  ;;  %v5657_v31 = vpop.f32.mrb[97].mxu0  ;;  %v2671_v44 = vpop.f32.mrb[120].mxu1 }
 0x3b8   : > { %v2445_v33 = vpop.f32.mrb[98].mxu0  ;;  %v5713_v9 = vpop.f32.mrb[121].mxu1 }
 0x3b9   : > { %v2478_v27 = vadd.f32 %v2445_v33, %v7767_v32  ;;  %v5658_v42 = vpop.f32.mrb[99].mxu0  ;;  %v2674_v60 = vpop.f32.mrb[122].mxu1  ;;  %v7825_v6 = vadd.f32 %v2663_v57, %v2477_v18 }
 0x3ba   : > { %v5714_v49 = vpop.f32.mrb[123].mxu1 }
 0x3bb   : > { %v7827_v21 = vadd.f32 %v2666_v38, %v2478_v27 }
 0x3be   : > { %v2450_v26 = vpop.f32.mrb[100].mxu0 }
 0x3bf   : > { %v2479_v32 = vadd.f32 %v2450_v26, %v7773_v19  ;;  %v5661_v7 = vpop.f32.mrb[101].mxu0  ;;  %v2679_v54 = vpop.f32.mrb[124].mxu1 }
 0x3c0   : > { %v2453_v59 = vpop.f32.mrb[102].mxu0  ;;  %v5717_v14 = vpop.f32.mrb[125].mxu1 }
 0x3c1   : > { %v2480_v1 = vadd.f32 %v2453_v59, %v7776_v2  ;;  %v5662_v29 = vpop.f32.mrb[103].mxu0  ;;  %v2682_v53 = vpop.f32.mrb[126].mxu1  ;;  %v7831_v40 = vadd.f32 %v2671_v44, %v2479_v32 }
 0x3c2   : > { %v5718_v15 = vpop.f32.mrb[127].mxu1 }
 0x3c3   : > { %v7833_v16 = vadd.f32 %v2674_v60, %v2480_v1 }
 0x3c6   : > { %v2458_v19 = vpop.f32.mrb[104].mxu0 }
 0x3c7   : > { %v2481_v5 = vadd.f32 %v2458_v19, %v7782_v51  ;;  %v5665_v63 = vpop.f32.mrb[105].mxu0  ;;  %v3189_v2 = vpop.f32.mrb[128].mxu1  ;;  %v6200_v51 = vld [vmem:[#allocation11 + $0x38] sm:$0xff]  }
 0x3c8   : > { %v2461_v56 = vpop.f32.mrb[106].mxu0  ;;  %v5789_v12 = vpop.f32.mrb[129].mxu1  ;;  %5889 = vmatprep.subr.bf16.mxu0 %v6200_v51  ;;  %5914 = vmatprep.subr.bf16.mxu1 %v6200_v51 }
 0x3c9   : > { %v2482_v3 = vadd.f32 %v2461_v56, %v7785_v35  ;;  %v5666_v37 = vpop.f32.mrb[107].mxu0  ;;  %v3192_v10 = vpop.f32.mrb[130].mxu1  ;;  %v7837_v25 = vadd.f32 %v2679_v54, %v2481_v5  ;;  %5890 = vmatpush3.bf16.msra.mxu0 %v6200_v51  ;;  %5922 = vmatpush3.bf16.msra.mxu1 %v6200_v51 }
 0x3ca   : > { %v5790_v55 = vpop.f32.mrb[131].mxu1 }
 0x3cb   : > { %v7839_v43 = vadd.f32 %v2682_v53, %v2482_v3 }
 0x3ce   : > { %v2898_v24 = vpop.f32.mrb[108].mxu0 }
 0x3cf   : > { %v2969_v57 = vadd.f32 %v2898_v24, %v7789_v36  ;;  %v5737_v35 = vpop.f32.mrb[109].mxu0  ;;  %v3197_v41 = vpop.f32.mrb[132].mxu1 }
 0x3d0   : > { %v2901_v30 = vpop.f32.mrb[110].mxu0  ;;  %v5793_v0 = vpop.f32.mrb[133].mxu1 }
 0x3d1   : > { %v2970_v8 = vadd.f32 %v2901_v30, %v7791_v52  ;;  %v5738_v38 = vpop.f32.mrb[111].mxu0  ;;  %v3200_v62 = vpop.f32.mrb[134].mxu1  ;;  %v7843_v34 = vadd.f32 %v3189_v2, %v2969_v57 }
 0x3d2   : > { %v5794_v23 = vpop.f32.mrb[135].mxu1 }
 0x3d3   : > { %v7845_v47 = vadd.f32 %v3192_v10, %v2970_v8 }
 0x3d6   : > { %v2906_v18 = vpop.f32.mrb[112].mxu0 }
 0x3d7   : > { %v2971_v31 = vadd.f32 %v2906_v18, %v7795_v45  ;;  %v5741_v44 = vpop.f32.mrb[113].mxu0  ;;  %v3205_v36 = vpop.f32.mrb[136].mxu1 }
 0x3d8   : > { %v2909_v33 = vpop.f32.mrb[114].mxu0  ;;  %v5797_v9 = vpop.f32.mrb[137].mxu1 }
 0x3d9   : > { %v2972_v27 = vadd.f32 %v2909_v33, %v7797_v58  ;;  %v5742_v42 = vpop.f32.mrb[115].mxu0  ;;  %v3208_v52 = vpop.f32.mrb[138].mxu1  ;;  %v7849_v60 = vadd.f32 %v3197_v41, %v2971_v31 }
 0x3da   : > { %v5798_v49 = vpop.f32.mrb[139].mxu1 }
 0x3db   : > { %v7851_v61 = vadd.f32 %v3200_v62, %v2972_v27 }
 0x3de   : > { %v2914_v26 = vpop.f32.mrb[116].mxu0 }
 0x3df   : > { %v2973_v46 = vadd.f32 %v2914_v26, %v7801_v11  ;;  %v5745_v32 = vpop.f32.mrb[117].mxu0  ;;  %v3213_v7 = vpop.f32.mrb[140].mxu1 }
 0x3e0   : > { %v2917_v54 = vpop.f32.mrb[118].mxu0  ;;  %v5801_v45 = vpop.f32.mrb[141].mxu1 }
 0x3e1   : > { %v2974_v59 = vadd.f32 %v2917_v54, %v7803_v4  ;;  %v5746_v14 = vpop.f32.mrb[119].mxu0  ;;  %v3216_v1 = vpop.f32.mrb[142].mxu1  ;;  %v7855_v29 = vadd.f32 %v3205_v36, %v2973_v46 }
 0x3e2   : > { %v5802_v58 = vpop.f32.mrb[143].mxu1 }
 0x3e3   : > { %v7857_v53 = vadd.f32 %v3208_v52, %v2974_v59 }
 0x3e6   : > { %v2922_v15 = vpop.f32.mrb[120].mxu0 }
 0x3e7   : > { %v2975_v19 = vadd.f32 %v2922_v15, %v7807_v22  ;;  %v5749_v13 = vpop.f32.mrb[121].mxu0  ;;  %v3221_v39 = vpop.f32.mrb[144].mxu1 }
 0x3e8   : > { %v2925_v5 = vpop.f32.mrb[122].mxu0  ;;  %v5805_v11 = vpop.f32.mrb[145].mxu1 }
 0x3e9   : > { %v2976_v63 = vadd.f32 %v2925_v5, %v7809_v48  ;;  %v5750_v2 = vpop.f32.mrb[123].mxu0  ;;  %v3224_v56 = vpop.f32.mrb[146].mxu1  ;;  %v7861_v12 = vadd.f32 %v3213_v7, %v2975_v19 }
 0x3ea   : > { %v5806_v4 = vpop.f32.mrb[147].mxu1 }
 0x3eb   : > { %v7863_v3 = vadd.f32 %v3216_v1, %v2976_v63 }
 0x3ee   : > { %v2930_v37 = vpop.f32.mrb[124].mxu0 }
 0x3ef   : > { %v2977_v10 = vadd.f32 %v2930_v37, %v7813_v20  ;;  %v5753_v55 = vpop.f32.mrb[125].mxu0  ;;  %v3229_v51 = vpop.f32.mrb[148].mxu1 }
 0x3f0   : > { %v2933_v24 = vpop.f32.mrb[126].mxu0  ;;  %v5809_v22 = vpop.f32.mrb[149].mxu1 }
 0x3f1   : > { %v2978_v57 = vadd.f32 %v2933_v24, %v7815_v28  ;;  %v5754_v35 = vpop.f32.mrb[127].mxu0  ;;  %v3232_v41 = vpop.f32.mrb[150].mxu1  ;;  %v7867_v30 = vadd.f32 %v3221_v39, %v2977_v10  ;;  %v3564_v24 = vlaneseq }
 0x3f2   : > { %v5810_v48 = vpop.f32.mrb[151].mxu1 }
 0x3f3   : > { %v7869_v0 = vadd.f32 %v3224_v56, %v2978_v57  ;;  %v7898_v57 = vld [vmem:[%s8273_s13] ss:$0 sm:$0xff]  ;;  %s6365_s13 = sshll.u32 %s6507_s27, 4  ;;  %s6366_s13 = int_to_ptr.vmem [resolvable:$false] %s6365_s13 }
 0x3f4   : > { %s6367_s21 = scalar_lea.vmem %s6366_s13, 2048  ;;  %p6368_p9 = scmp.lt.s32.totalorder %s8082_s16, %s6366_s13 }
 0x3f5   : > { %p6369_p2 = scmp.lt.s32.totalorder %s6367_s21, %s6361_s22 }
 0x3f6   : > { %v2938_v8 = vpop.f32.mrb[128].mxu0 }
 0x3f7   : > { %v2979_v38 = vadd.f32 %v2938_v8, %v7819_v50  ;;  %v5757_v62 = vpop.f32.mrb[129].mxu0  ;;  %v3237_v23 = vpop.f32.mrb[152].mxu1  ;;  %p6370_p3 = por %p6369_p2, %p6368_p9 }
 0x3f8   : > { %v2941_v18 = vpop.f32.mrb[130].mxu0  ;;  %v5813_v20 = vpop.f32.mrb[153].mxu1 }
 0x3f9   : > { %v2980_v31 = vadd.f32 %v2941_v18, %v7821_v17  ;;  %v5758_v44 = vpop.f32.mrb[131].mxu0  ;;  %v3240_v36 = vpop.f32.mrb[154].mxu1  ;;  %v7873_v33 = vadd.f32 %v3229_v51, %v2979_v38  ;;  %v3565_v38 = vshrl.u32 %v3564_v24, 7  ;;  %p6371_p7 = pnand %p6370_p3, %p6364_p0 }
 0x3fa   : > { %v5814_v28 = vpop.f32.mrb[155].mxu1 }
 0x3fb   : > { %v7875_v9 = vadd.f32 %v3232_v41, %v2980_v31 }
 0x3fe   : > { %v2946_v27 = vpop.f32.mrb[132].mxu0 }
 0x3ff   : > { %v2981_v42 = vadd.f32 %v2946_v27, %v7825_v6  ;;  %v5761_v52 = vpop.f32.mrb[133].mxu0  ;;  %v3245_v49 = vpop.f32.mrb[156].mxu1 }
 0x400   : > { %v2949_v26 = vpop.f32.mrb[134].mxu0  ;;  %v5817_v50 = vpop.f32.mrb[157].mxu1 }
 0x401   : > { %v2982_v46 = vadd.f32 %v2949_v26, %v7827_v21  ;;  %v5762_v32 = vpop.f32.mrb[135].mxu0  ;;  %v3248_v7 = vpop.f32.mrb[158].mxu1  ;;  %v7879_v54 = vadd.f32 %v3237_v23, %v2981_v42 }
 0x402   : > { %v5818_v17 = vpop.f32.mrb[159].mxu1 }
 0x403   : > { %v7881_v45 = vadd.f32 %v3240_v36, %v2982_v46 }
 0x406   : > { %v2954_v59 = vpop.f32.mrb[136].mxu0 }
 0x407   : > { %v2983_v14 = vadd.f32 %v2954_v59, %v7831_v40  ;;  %v5765_v1 = vpop.f32.mrb[137].mxu0  ;;  %v3253_v58 = vpop.f32.mrb[160].mxu1 }
 0x408   : > { %v2957_v15 = vpop.f32.mrb[138].mxu0  ;;  %v5821_v6 = vpop.f32.mrb[161].mxu1 }
 0x409   : > { %v2984_v19 = vadd.f32 %v2957_v15, %v7833_v16  ;;  %v5766_v13 = vpop.f32.mrb[139].mxu0  ;;  %v3256_v39 = vpop.f32.mrb[162].mxu1  ;;  %v7885_v5 = vadd.f32 %v3245_v49, %v2983_v14  ;;  %v6506_v16 = vmov 1966171168  }
 0x40a   : > { %v5822_v21 = vpop.f32.mrb[163].mxu1  ;;  %v3562_v51 = vunpack.c.l.s4 %v6506_v16 }
 0x40b   : > { %v7887_v11 = vadd.f32 %v3248_v7, %v2984_v19 }
 0x40c   : > { %v3563_v8 = vunpack.c.0.s8 %v3562_v51 }
 0x40e   : > { %v2962_v63 = vpop.f32.mrb[140].mxu0  ;;  %v7904_v31 = vsub.s32 %v3563_v8, %v3565_v38 }
 0x40f   : > { %v2985_v2 = vadd.f32 %v2962_v63, %v7837_v25  ;;  %v5769_v56 = vpop.f32.mrb[141].mxu0 }
 0x410   : > { %v2965_v4 = vpop.f32.mrb[142].mxu0 }
 0x411   : > { %v2986_v40 = vadd.f32 %v2965_v4, %v7839_v43  ;;  %v5770_v37 = vpop.f32.mrb[143].mxu0  ;;  %v7891_v10 = vadd.f32 %v3253_v58, %v2985_v2 }
 0x413   : > { %v7893_v55 = vadd.f32 %v3256_v39, %v2986_v40 }
 0x416   : > { %v3410_v22 = vpop.f32.mrb[144].mxu0 }
 0x417   : > { %v3481_v25 = vadd.f32 %v3410_v22, %v7843_v34  ;;  %v5841_v35 = vpop.f32.mrb[145].mxu0 }
 0x418   : > { %v3413_v41 = vpop.f32.mrb[146].mxu0 }
 0x419   : > { %v3506_v43 = vadd.f32 %v7898_v57, %v3481_v25  ;;  %v3482_v48 = vadd.f32 %v3413_v41, %v7845_v47  ;;  %v5842_v62 = vpop.f32.mrb[147].mxu0 }
 0x41b   : > { %v3507_v23 = vadd.f32 %v7898_v57, %v3482_v48  ;;  %v3524_v18 = vmax.f32 %v3506_v43, 0.0 }
 0x41d   : > { %v3525_v20 = vmax.f32 %v3507_v23, 0.0 }
 0x41e   : > { %v3418_v44 = vpop.f32.mrb[148].mxu0 }
 0x41f   : > { %v3542_v36 = vpack.c.bf16 %v3525_v20, %v3524_v18  ;;  %v5025_v28 = vpack.c.bf16 %v3525_v20, %v3525_v20  ;;  %v3483_v34 = vadd.f32 %v3418_v44, %v7849_v60  ;;  %v5845_v27 = vpop.f32.mrb[149].mxu0 }
 0x420   : > { %v3421_v42 = vpop.f32.mrb[150].mxu0 }
 0x421   : > { %v3567_v52 = vrot.slane %v3542_v36, %v7904_v31  ;;  %v3574_v47 = vrot.slane %v5025_v28, %v7904_v31  ;;  %v3484_v49 = vadd.f32 %v3421_v42, %v7851_v61  ;;  %v5846_v26 = vpop.f32.mrb[151].mxu0  ;;  %v3508_v50 = vadd.f32 %v7898_v57, %v3483_v34 }
 0x423   : > { %v3575_v46 = vcombine.high %v3567_v52, %v3567_v52  ;;  %v3576_v32 = vcombine.high %v3574_v47, %v3574_v47  ;;  %v3509_v7 = vadd.f32 %v7898_v57, %v3484_v49  ;;  %v3583_v17 = vrot.slane %v3567_v52, %v7904_v31 }
 0x424   : > { %v3590_v59 = vrot.slane %v3574_v47, %v7904_v31  ;;  %v3526_v1 = vmax.f32 %v3508_v50, 0.0 }
 0x425   : > { %v3597_v60 = vrot.slane %v3575_v46, %v7904_v31  ;;  %v3604_v14 = vrot.slane %v3576_v32, %v7904_v31  ;;  %v3527_v58 = vmax.f32 %v3509_v7, 0.0 }
 0x426   : > { %v3426_v15 = vpop.f32.mrb[152].mxu0 }
 0x427   : > { %v4020_v6 = vcombine.low %v3583_v17, %v3597_v60  ;;  %v5035_v61 = vcombine.high %v3583_v17, %v3597_v60  ;;  %v4022_v19 = vcombine.low %v3590_v59, %v3604_v14  ;;  %v5036_v13 = vcombine.high %v3590_v59, %v3604_v14  ;;  %v5849_v39 = vpop.f32.mrb[153].mxu0 }
 0x428   : > { %v3543_v21 = vpack.c.bf16 %v3527_v58, %v3526_v1  ;;  %v5026_v63 = vpack.c.bf16 %v3527_v58, %v3527_v58  ;;  %v3485_v2 = vadd.f32 %v3426_v15, %v7855_v29  ;;  %v3429_v56 = vpop.f32.mrb[154].mxu0 }
 0x429   : > { %v3486_v4 = vadd.f32 %v3429_v56, %v7857_v53  ;;  %v5850_v40 = vpop.f32.mrb[155].mxu0  ;;  %v4030_v37 = vrot.slane %v4020_v6, %v7904_v31  ;;  %v4037_v16 = vrot.slane %v5035_v61, %v7904_v31  ;;  %v4044_v51 = vrot.slane %v4022_v19, %v7904_v31 }
 0x42a   : > { %v3616_v24 = vrot.slane %v3543_v21, %v7904_v31  ;;  %v3623_v22 = vrot.slane %v5026_v63, %v7904_v31  ;;  %v3510_v25 = vadd.f32 %v7898_v57, %v3485_v2  ;;  %v4051_v35 = vrot.slane %v5036_v13, %v7904_v31 }
 0x42b   : > { %v3511_v29 = vadd.f32 %v7898_v57, %v3486_v4  ;;  %v4052_v41 = vcombine.low %v4030_v37, %v4037_v16 }
 0x42c   : > { %v3624_v43 = vcombine.high %v3616_v24, %v3616_v24  ;;  %v3625_v53 = vcombine.high %v3623_v22, %v3623_v22  ;;  %v3632_v48 = vrot.slane %v3616_v24, %v7904_v31  ;;  %v3639_v8 = vrot.slane %v3623_v22, %v7904_v31 }
 0x42d   : > { %v3528_v38 = vmax.f32 %v3510_v25, 0.0  ;;  %v3529_v62 = vmax.f32 %v3511_v29, 0.0  ;;  %v4053_v23 = vcombine.low %v4044_v51, %v4051_v35  ;;  %v4060_v18 = vrot.slane %v4052_v41, %v7904_v31 }
 0x42e   : > { %v3646_v20 = vrot.slane %v3624_v43, %v7904_v31  ;;  %v3653_v44 = vrot.slane %v3625_v53, %v7904_v31  ;;  %v3654_v36 = vcombine.high %v3632_v48, %v3632_v48  ;;  %v3655_v28 = vcombine.high %v3639_v8, %v3639_v8  ;;  %v3434_v34 = vpop.f32.mrb[156].mxu0 }
 0x42f   : > { %v3544_v27 = vpack.c.bf16 %v3529_v62, %v3528_v38  ;;  %v5027_v42 = vpack.c.bf16 %v3529_v62, %v3529_v62  ;;  %v3487_v52 = vadd.f32 %v3434_v34, %v7861_v12  ;;  %v5853_v47 = vpop.f32.mrb[157].mxu0  ;;  %v4067_v49 = vrot.slane %v4053_v23, %v7904_v31 }
 0x430   : > { %v3656_v26 = vcombine.high %v3646_v20, %v3646_v20  ;;  %v4069_v50 = vcombine.low %v3646_v20, %v3654_v36  ;;  %v3437_v46 = vpop.f32.mrb[158].mxu0  ;;  %v4071_v14 = vcombine.low %v3653_v44, %v3655_v28  ;;  %v3657_v15 = vcombine.high %v3653_v44, %v3653_v44 }
 0x431   : > { %v3665_v32 = vrot.slane %v3544_v27, %v7904_v31  ;;  %v3672_v7 = vrot.slane %v5027_v42, %v7904_v31  ;;  %v3488_v17 = vadd.f32 %v3437_v46, %v7863_v3  ;;  %v5854_v59 = vpop.f32.mrb[159].mxu0  ;;  %v3512_v1 = vadd.f32 %v7898_v57, %v3487_v52 }
 0x432   : > { %v4070_v60 = vcombine.low %v3656_v26, %v3639_v8  ;;  %v4068_v58 = vcombine.low %v4060_v18, %v4067_v49  ;;  %v4079_v19 = vrot.slane %v4069_v50, %v7904_v31  ;;  %v4093_v16 = vrot.slane %v4071_v14, %v7904_v31 }
 0x433   : > { %v3673_v12 = vcombine.high %v3665_v32, %v3665_v32  ;;  %v3674_v6 = vcombine.high %v3672_v7, %v3672_v7  ;;  %v3681_v61 = vrot.slane %v3665_v32, %v7904_v31  ;;  %v3513_v39 = vadd.f32 %v7898_v57, %v3488_v17 }
 0x434   : > { %v4086_v13 = vrot.slane %v4070_v60, %v7904_v31  ;;  %5891 = vmatprep.mubr.bf16.mxu0 %v4068_v58  ;;  %v3688_v3 = vrot.slane %v3672_v7, %v7904_v31  ;;  %v3530_v4 = vmax.f32 %v3512_v1, 0.0 }
 0x435   : > { %v3695_v21 = vrot.slane %v3673_v12, %v7904_v31  ;;  %v3702_v63 = vrot.slane %v3674_v6, %v7904_v31  ;;  %v4072_v2 = vcombine.low %v3657_v15, %v3681_v61  ;;  %v3531_v40 = vmax.f32 %v3513_v39, 0.0 }
 0x436   : > { %v4101_v56 = vcombine.low %v4079_v19, %v4086_v13  ;;  %v3442_v37 = vpop.f32.mrb[160].mxu0 }
 0x437   : > { %v4100_v51 = vrot.slane %v4072_v2, %v7904_v31  ;;  %v5037_v24 = vcombine.high %v3681_v61, %v3695_v21  ;;  %v4119_v22 = vcombine.low %v3688_v3, %v3702_v63  ;;  %v5857_v25 = vpop.f32.mrb[161].mxu0  ;;  %v3545_v35 = vpack.c.bf16 %v3531_v40, %v3530_v4 }
 0x438   : > { %v5028_v29 = vpack.c.bf16 %v3531_v40, %v3531_v40  ;;  %v3489_v41 = vadd.f32 %v3442_v37, %v7867_v30  ;;  %v3445_v43 = vpop.f32.mrb[162].mxu0  ;;  %v4109_v36 = vrot.slane %v4101_v56, %v7904_v31  ;;  %v5038_v34 = vcombine.high %v3688_v3, %v3702_v63 }
 0x439   : > { %v4102_v53 = vcombine.low %v4093_v16, %v4100_v51  ;;  %v3490_v48 = vadd.f32 %v3445_v43, %v7869_v0  ;;  %v5858_v8 = vpop.f32.mrb[163].mxu0  ;;  %v4128_v38 = vrot.slane %v5037_v24, %v7904_v31  ;;  %v4135_v62 = vrot.slane %v4119_v22, %v7904_v31 }
 0x43a   : > { %v3714_v23 = vrot.slane %v3545_v35, %v7904_v31  ;;  %v3721_v18 = vrot.slane %v5028_v29, %v7904_v31  ;;  %v3514_v20 = vadd.f32 %v7898_v57, %v3489_v41  ;;  %v4142_v6 = vrot.slane %v5038_v34, %v7904_v31 }
 0x43b   : > { %v3515_v44 = vadd.f32 %v7898_v57, %v3490_v48  ;;  %v4116_v30 = vrot.slane %v4102_v53, %v7904_v31  ;;  %v4150_v28 = vcombine.low %v4128_v38, %v4135_v62 }
 0x43c   : > { %v3722_v0 = vcombine.high %v3714_v23, %v3714_v23  ;;  %v3723_v27 = vcombine.high %v3721_v18, %v3721_v18  ;;  %v3737_v42 = vrot.slane %v3721_v18, %v7904_v31  ;;  %v3532_v52 = vmax.f32 %v3514_v20, 0.0 }
 0x43d   : > { %v3533_v47 = vmax.f32 %v3515_v44, 0.0  ;;  %v4117_v49 = vcombine.low %v4109_v36, %v4116_v30  ;;  %v3730_v26 = vrot.slane %v3714_v23, %v7904_v31  ;;  %v4158_v3 = vrot.slane %v4150_v28, %v7904_v31 }
 0x43e   : > { %v3744_v50 = vrot.slane %v3722_v0, %v7904_v31  ;;  %v3751_v46 = vrot.slane %v3723_v27, %v7904_v31  ;;  %v3752_v32 = vcombine.high %v3737_v42, %v3737_v42  ;;  %v3450_v7 = vpop.f32.mrb[164].mxu0 }
 0x43f   : > { %v3546_v17 = vpack.c.bf16 %v3533_v47, %v3532_v52  ;;  %v5029_v59 = vpack.c.bf16 %v3533_v47, %v3533_v47  ;;  %v3491_v60 = vadd.f32 %v3450_v7, %v7873_v33  ;;  %v5861_v14 = vpop.f32.mrb[165].mxu0  ;;  %5892 = vmatmul.mubr.bf16.vlgmr.msra.gmra.mrb[180].mxu0 %v4117_v49 }
 0x440   : > { %v3753_v1 = vcombine.high %v3744_v50, %v3744_v50  ;;  %v4121_v58 = vcombine.low %v3730_v26, %v3744_v50  ;;  %v4168_v15 = vcombine.low %v3751_v46, %v3752_v32  ;;  %v3453_v12 = vpop.f32.mrb[166].mxu0  ;;  %v3754_v63 = vcombine.high %v3751_v46, %v3751_v46 }
 0x441   : > { %v3762_v61 = vrot.slane %v3546_v17, %v7904_v31  ;;  %v3769_v19 = vrot.slane %v5029_v59, %v7904_v31  ;;  %v3492_v13 = vadd.f32 %v3453_v12, %v7875_v9  ;;  %v5862_v39 = vpop.f32.mrb[167].mxu0  ;;  %v3516_v33 = vadd.f32 %v7898_v57, %v3491_v60 }
 0x442   : > { %v4167_v21 = vcombine.low %v3753_v1, %v3737_v42  ;;  %v4149_v2 = vrot.slane %v4121_v58, %v7904_v31  ;;  %v4184_v56 = vrot.slane %v4168_v15, %v7904_v31 }
 0x443   : > { %v3770_v4 = vcombine.high %v3762_v61, %v3762_v61  ;;  %v3771_v40 = vcombine.high %v3769_v19, %v3769_v19  ;;  %v3778_v37 = vrot.slane %v3762_v61, %v7904_v31  ;;  %v3785_v51 = vrot.slane %v3769_v19, %v7904_v31 }
 0x444   : > { %v4177_v16 = vrot.slane %v4167_v21, %v7904_v31  ;;  %v3517_v9 = vadd.f32 %v7898_v57, %v3492_v13  ;;  %v4151_v24 = vcombine.low %v4142_v6, %v4149_v2  ;;  %v3534_v43 = vmax.f32 %v3516_v33, 0.0 }
 0x445   : > { %v3792_v22 = vrot.slane %v3770_v4, %v7904_v31  ;;  %v3799_v25 = vrot.slane %v3771_v40, %v7904_v31  ;;  %v3800_v35 = vcombine.high %v3778_v37, %v3778_v37  ;;  %v4169_v29 = vcombine.low %v3754_v63, %v3778_v37 }
 0x446   : > { %v4199_v41 = vcombine.low %v4177_v16, %v4184_v56  ;;  %v3535_v53 = vmax.f32 %v3517_v9, 0.0  ;;  %v3458_v48 = vpop.f32.mrb[168].mxu0  ;;  %v4165_v8 = vrot.slane %v4151_v24, %v7904_v31 }
 0x447   : > { %v4170_v38 = vcombine.low %v3792_v22, %v3800_v35  ;;  %v4216_v62 = vcombine.low %v3785_v51, %v3799_v25  ;;  %v5039_v23 = vcombine.high %v3785_v51, %v3799_v25  ;;  %v5865_v18 = vpop.f32.mrb[169].mxu0  ;;  %v3493_v36 = vadd.f32 %v3458_v48, %v7879_v54 }
 0x448   : > { %v3547_v20 = vpack.c.bf16 %v3535_v53, %v3534_v43  ;;  %v5030_v44 = vpack.c.bf16 %v3535_v53, %v3535_v53  ;;  %v3461_v30 = vpop.f32.mrb[170].mxu0  ;;  %v4166_v28 = vcombine.low %v4158_v3, %v4165_v8  ;;  %v4191_v34 = vrot.slane %v4169_v29, %v7904_v31 }
 0x449   : > { %v4198_v0 = vrot.slane %v4170_v38, %v7904_v31  ;;  %v3494_v27 = vadd.f32 %v3461_v30, %v7881_v45  ;;  %v5866_v42 = vpop.f32.mrb[171].mxu0  ;;  %v3518_v49 = vadd.f32 %v7898_v57, %v3493_v36  ;;  %v4226_v54 = vrot.slane %v4216_v62, %v7904_v31 }
 0x44a   : > { %v3810_v52 = vrot.slane %v3547_v20, %v7904_v31  ;;  %v3817_v47 = vrot.slane %v5030_v44, %v7904_v31  ;;  %5895 = vmatprep.mubr.bf16.mxu1 %v4166_v28  ;;  %v4233_v17 = vrot.slane %v5039_v23, %v7904_v31  ;;  %v4207_v60 = vrot.slane %v4199_v41, %v7904_v31 }
 0x44b   : > { %v4200_v26 = vcombine.low %v4191_v34, %v4198_v0  ;;  %v3519_v50 = vadd.f32 %v7898_v57, %v3494_v27  ;;  %v3536_v45 = vmax.f32 %v3518_v49, 0.0 }
 0x44c   : > { %v3818_v46 = vcombine.high %v3810_v52, %v3810_v52  ;;  %v3819_v32 = vcombine.high %v3817_v47, %v3817_v47  ;;  %v3833_v7 = vrot.slane %v3817_v47, %v7904_v31  ;;  %v3826_v1 = vrot.slane %v3810_v52, %v7904_v31 }
 0x44d   : > { %v3537_v59 = vmax.f32 %v3519_v50, 0.0  ;;  %v4214_v14 = vrot.slane %v4200_v26, %v7904_v31  ;;  %v4248_v2 = vcombine.low %v4226_v54, %v4233_v17 }
 0x44e   : > { %v3840_v58 = vrot.slane %v3818_v46, %v7904_v31  ;;  %v3847_v15 = vrot.slane %v3819_v32, %v7904_v31  ;;  %v3849_v12 = vcombine.high %v3833_v7, %v3833_v7  ;;  %v3466_v6 = vpop.f32.mrb[172].mxu0 }
 0x44f   : > { %v3548_v61 = vpack.c.bf16 %v3537_v59, %v3536_v45  ;;  %v5031_v19 = vpack.c.bf16 %v3537_v59, %v3537_v59  ;;  %v3495_v13 = vadd.f32 %v3466_v6, %v7885_v5  ;;  %v5869_v39 = vpop.f32.mrb[173].mxu0  ;;  %v4215_v3 = vcombine.low %v4207_v60, %v4214_v14 }
 0x450   : > { %v4218_v21 = vcombine.low %v3826_v1, %v3840_v58  ;;  %v5040_v63 = vcombine.high %v3826_v1, %v3840_v58  ;;  %v3469_v33 = vpop.f32.mrb[174].mxu0  ;;  %v4265_v16 = vcombine.low %v3847_v15, %v3849_v12  ;;  %v3851_v24 = vcombine.high %v3847_v15, %v3847_v15 }
 0x451   : > { %v3859_v56 = vrot.slane %v3548_v61, %v7904_v31  ;;  %v3866_v4 = vrot.slane %v5031_v19, %v7904_v31  ;;  %v3496_v40 = vadd.f32 %v3469_v33, %v7887_v11  ;;  %v5870_v37 = vpop.f32.mrb[175].mxu0  ;;  %5896 = vmatmul.mubr.bf16.vlgmr.msra.gmra.mrb[164].mxu1 %v4215_v3  ;;  %v3520_v51 = vadd.f32 %v7898_v57, %v3495_v13 }
 0x452   : > { %v4240_v9 = vrot.slane %v4218_v21, %v7904_v31  ;;  %v4247_v5 = vrot.slane %v5040_v63, %v7904_v31  ;;  %v4256_v41 = vrot.slane %v4248_v2, %v7904_v31  ;;  %v4275_v18 = vrot.slane %v4265_v16, %v7904_v31 }
 0x453   : > { %v3867_v22 = vcombine.high %v3859_v56, %v3859_v56  ;;  %v3875_v25 = vrot.slane %v3859_v56, %v7904_v31  ;;  %v3521_v35 = vadd.f32 %v7898_v57, %v3496_v40  ;;  %v3868_v43 = vcombine.high %v3866_v4, %v3866_v4 }
 0x454   : > { %v4249_v29 = vcombine.low %v4240_v9, %v4247_v5  ;;  %v3538_v8 = vmax.f32 %v3520_v51, 0.0  ;;  %v3882_v20 = vrot.slane %v3866_v4, %v7904_v31 }
 0x455   : > { %v3889_v11 = vrot.slane %v3867_v22, %v7904_v31  ;;  %v3897_v53 = vcombine.high %v3875_v25, %v3875_v25  ;;  %v4266_v48 = vcombine.low %v3851_v24, %v3875_v25  ;;  %v3539_v38 = vmax.f32 %v3521_v35, 0.0 }
 0x456   : > { %v3474_v62 = vpop.f32.mrb[176].mxu0  ;;  %v4263_v23 = vrot.slane %v4249_v29, %v7904_v31  ;;  %v3896_v47 = vrot.slane %v3868_v43, %v7904_v31 }
 0x457   : > { %v3899_v44 = vcombine.high %v3889_v11, %v3889_v11  ;;  %v3497_v36 = vadd.f32 %v3474_v62, %v7891_v10  ;;  %v5873_v30 = vpop.f32.mrb[177].mxu0  ;;  %v4267_v28 = vcombine.low %v3889_v11, %v3897_v53  ;;  %v3549_v34 = vpack.c.bf16 %v3539_v38, %v3538_v8 }
 0x458   : > { %v5032_v0 = vpack.c.bf16 %v3539_v38, %v3539_v38  ;;  %v3477_v27 = vpop.f32.mrb[178].mxu0  ;;  %v4264_v42 = vcombine.low %v4256_v41, %v4263_v23  ;;  %v4282_v52 = vrot.slane %v4266_v48, %v7904_v31  ;;  %v5041_v14 = vcombine.high %v3882_v20, %v3896_v47  ;;  %v8043_v47 = vld [vmem:[%s8274_s20] ss:$0 sm:$0xff] }
 0x459   : > { %v4268_v49 = vcombine.low %v3899_v44, %v3882_v20  ;;  %v3522_v26 = vadd.f32 %v7898_v57, %v3497_v36  ;;  %v3498_v50 = vadd.f32 %v3477_v27, %v7893_v55  ;;  %v5874_v54 = vpop.f32.mrb[179].mxu0  ;;  %v3908_v46 = vrot.slane %v3549_v34, %v7904_v31 }
 0x45a   : > { %v3915_v10 = vrot.slane %v5032_v0, %v7904_v31  ;;  %5899 = vmatprep.mubr.bf16.mxu1 %v4264_v42  ;;  %v4297_v32 = vcombine.low %v4275_v18, %v4282_v52  ;;  %v4289_v17 = vrot.slane %v4267_v28, %v7904_v31  ;;  %v4324_v4 = vrot.slane %v5041_v14, %v7904_v31 }
 0x45b   : > { %v3523_v7 = vadd.f32 %v7898_v57, %v3498_v50  ;;  %v4296_v45 = vrot.slane %v4268_v49, %v7904_v31  ;;  %v3916_v59 = vcombine.high %v3908_v46, %v3908_v46  ;;  %v3540_v1 = vmax.f32 %v3522_v26, 0.0  ;;  %v6209_v49 = vld [vmem:[%s6882_s30 + $0x8] sm:$0xff]   ;;  %v6210_v50 = vld [vmem:[%s6882_s30] sm:$0xff]  }
 0x45c   : > { %v3917_v60 = vcombine.high %v3915_v10, %v3915_v10  ;;  %v3924_v55 = vrot.slane %v3908_v46, %v7904_v31  ;;  %v3931_v12 = vrot.slane %v3915_v10, %v7904_v31  ;;  %v4305_v13 = vrot.slane %v4297_v32, %v7904_v31 }
 0x45d   : > { %v3541_v58 = vmax.f32 %v3523_v7, 0.0  ;;  %v4298_v15 = vcombine.low %v4289_v17, %v4296_v45  ;;  %v3938_v6 = vrot.slane %v3916_v59, %v7904_v31  ;;  %v4567_v26 = vunpack.c.l.bf16 %v6209_v49 }
 0x45e   : > { %v3945_v61 = vrot.slane %v3917_v60, %v7904_v31  ;;  %v4565_v54 = vunpack.c.l.bf16 %v6210_v50  ;;  %v4568_v7 = vunpack.c.h.bf16 %v6209_v49  ;;  %v4566_v17 = vunpack.c.h.bf16 %v6210_v50 }
 0x45f   : > { %v3550_v19 = vpack.c.bf16 %v3541_v58, %v3540_v1  ;;  %v5033_v57 = vpack.c.bf16 %v3541_v58, %v3541_v58  ;;  %v4312_v39 = vrot.slane %v4298_v15, %v7904_v31  ;;  %v4315_v3 = vcombine.low %v3924_v55, %v3938_v6 }
 0x460   : > { %v5042_v21 = vcombine.high %v3924_v55, %v3938_v6  ;;  %v4317_v63 = vcombine.low %v3931_v12, %v3945_v61  ;;  %v3948_v22 = vcombine.high %v3945_v61, %v3945_v61 }
 0x461   : > { %v3956_v33 = vrot.slane %v3550_v19, %v7904_v31  ;;  %v3963_v2 = vrot.slane %v5033_v57, %v7904_v31  ;;  %v4313_v56 = vcombine.low %v4305_v13, %v4312_v39  ;;  %v4331_v40 = vrot.slane %v4315_v3, %v7904_v31  ;;  %v6211_v39 = vld [vmem:[%s6882_s30 + $0x18] sm:$0xff]  }
 0x462   : > { %v4338_v37 = vrot.slane %v5042_v21, %v7904_v31  ;;  %v4345_v16 = vrot.slane %v4317_v63, %v7904_v31  ;;  %v4571_v3 = vunpack.c.l.bf16 %v6211_v39  ;;  %v6212_v63 = vld [vmem:[%s6882_s30 + $0x10] sm:$0xff]  }
 0x463   : > { %v3964_v51 = vcombine.high %v3956_v33, %v3956_v33  ;;  %v3965_v9 = vcombine.high %v3963_v2, %v3963_v2  ;;  %v3972_v5 = vrot.slane %v3956_v33, %v7904_v31  ;;  %v3979_v24 = vrot.slane %v3963_v2, %v7904_v31  ;;  %5900 = vmatmul.mubr.bf16.gmra.mrb[168].mxu1 %v4313_v56 }
 0x464   : > { %v4346_v25 = vcombine.low %v4324_v4, %v4331_v40  ;;  %v4347_v35 = vcombine.low %v4338_v37, %v4345_v16  ;;  %v4569_v33 = vunpack.c.l.bf16 %v6212_v63  ;;  %v4572_v4 = vunpack.c.h.bf16 %v6211_v39 }
 0x465   : > { %v3986_v29 = vrot.slane %v3964_v51, %v7904_v31  ;;  %v3993_v41 = vrot.slane %v3965_v9, %v7904_v31  ;;  %v3994_v43 = vcombine.high %v3972_v5, %v3972_v5  ;;  %v3995_v11 = vcombine.high %v3979_v24, %v3979_v24 }
 0x466   : > { %v4363_v53 = vcombine.low %v3948_v22, %v3972_v5  ;;  %v4354_v48 = vrot.slane %v4346_v25, %v7904_v31  ;;  %v4361_v8 = vrot.slane %v4347_v35, %v7904_v31  ;;  %v4570_v16 = vunpack.c.h.bf16 %v6212_v63 }
 0x467   : > { %v3996_v38 = vcombine.high %v3986_v29, %v3986_v29  ;;  %v4364_v62 = vcombine.low %v3986_v29, %v3994_v43  ;;  %v4366_v23 = vcombine.low %v3993_v41, %v3995_v11 }
 0x468   : > { %v4362_v18 = vcombine.low %v4354_v48, %v4361_v8  ;;  %v4373_v44 = vrot.slane %v4363_v53, %v7904_v31  ;;  %v6213_v8 = vld [vmem:[%s6882_s30 + $0x28] sm:$0xff]  }
 0x469   : > { %v4365_v20 = vcombine.low %v3996_v38, %v3979_v24  ;;  %v4380_v36 = vrot.slane %v4364_v62, %v7904_v31  ;;  %v4394_v28 = vrot.slane %v4366_v23, %v7904_v31  ;;  %v4575_v38 = vunpack.c.l.bf16 %v6213_v8  ;;  %v6214_v23 = vld [vmem:[%s6882_s30 + $0x20] sm:$0xff]  }
 0x46a   : > { %5903 = vmatprep.mubr.bf16.mxu1 %v4362_v18  ;;  %v4573_v18 = vunpack.c.l.bf16 %v6214_v23 }
 0x46b   : > { %v4387_v30 = vrot.slane %v4365_v20, %v7904_v31  ;;  %v4395_v34 = vcombine.low %v4373_v44, %v4380_v36  ;;  %v4576_v36 = vunpack.c.h.bf16 %v6213_v8 }
 0x46d   : > { %v4396_v0 = vcombine.low %v4387_v30, %v4394_v28  ;;  %v4403_v27 = vrot.slane %v4395_v34, %v7904_v31  ;;  %v4574_v34 = vunpack.c.h.bf16 %v6214_v23 }
 0x46f   : > { %v4410_v42 = vrot.slane %v4396_v0, %v7904_v31 }
 0x471   : > { %v4411_v52 = vcombine.low %v4403_v27, %v4410_v42 }
 0x473   : > { %5904 = vmatmul.mubr.bf16.gmra.mrb[172].mxu1 %v4411_v52 }
 0x512   : > { %v5893_v46 = vpop.f32.mrb[180].mxu0 }
 0x513   : > { %v4511_v10 = vadd.f32 %v5893_v46, %v8043_v47  ;;  %v4502_v32 = vpop.f32.mrb[181].mxu0 }
 0x514   : > { %v4503_v31 = vadd.f32 %v8043_v47, %v4502_v32  ;;  %v5894_v45 = vpop.f32.mrb[182].mxu0 }
 0x515   : > { %v4583_v59 = vadd.f32 %v4567_v26, %v4511_v10  ;;  %v4514_v60 = vadd.f32 %v5894_v45, %v8043_v47  ;;  %v4505_v14 = vpop.f32.mrb[183].mxu0 }
 0x516   : > { %v4581_v1 = vadd.f32 %v4565_v54, %v4503_v31  ;;  %v4506_v58 = vadd.f32 %v8043_v47, %v4505_v14  ;;  %v6215_v31 = vld [vmem:[%s6882_s30 + $0x38] sm:$0xff]  }
 0x517   : > { %v4584_v15 = vadd.f32 %v4568_v7, %v4514_v60  ;;  %v4599_v12 = vmax.f32 %v4583_v59, 0.0  ;;  %v4579_v45 = vunpack.c.l.bf16 %v6215_v31  ;;  %v6216_v60 = vld [vmem:[%s6882_s30 + $0x30] sm:$0xff]   ;;  %s4707_s30 = sadd.s32 %s5112_s12, %s5070_s7 }
 0x518   : > { %v4582_v55 = vadd.f32 %v4566_v17, %v4506_v58  ;;  %v4597_v61 = vmax.f32 %v4581_v1, 0.0  ;;  %v4577_v14 = vunpack.c.l.bf16 %v6216_v60  ;;  %s5071_s17 = sshll.u32 %s4707_s30, 6 }
 0x519   : > { %v4600_v6 = vmax.f32 %v4584_v15, 0.0  ;;  %v4580_v15 = vunpack.c.h.bf16 %v6215_v31  ;;  %s8087_s3 = scalar_lea.hbm %s8277_s25, %s5071_s17 }
 0x51a   : > { %v4598_v19 = vmax.f32 %v4582_v55, 0.0 }
 0x51b   : > { %v5121_v57 = vpack.c.bf16 %v4600_v6, %v4599_v12  ;;  %v4578_v6 = vunpack.c.h.bf16 %v6216_v60 }
 0x51c   : > { %v5116_v13 = vpack.c.bf16 %v4598_v19, %v4597_v61 }
 0x51d   : > { %5153 = vst [vmem:[%s8053_s0 + $0x8] sm:$0xff] %v5121_v57  }
 0x51e   : > { %5117 = vst [vmem:[%s8053_s0] sm:$0xff] %v5116_v13  }
 0x524   : > { %v5897_v21 = vpop.f32.mrb[164].mxu1 }
 0x525   : > { %v4527_v2 = vadd.f32 %v5897_v21, %v8043_v47  ;;  %v4518_v56 = vpop.f32.mrb[165].mxu1 }
 0x526   : > { %v4519_v40 = vadd.f32 %v8043_v47, %v4518_v56  ;;  %v5898_v37 = vpop.f32.mrb[166].mxu1 }
 0x527   : > { %v4587_v51 = vadd.f32 %v4571_v3, %v4527_v2  ;;  %v4530_v9 = vadd.f32 %v5898_v37, %v8043_v47  ;;  %v4521_v5 = vpop.f32.mrb[167].mxu1 }
 0x528   : > { %v4585_v24 = vadd.f32 %v4569_v33, %v4519_v40  ;;  %v4522_v22 = vadd.f32 %v8043_v47, %v4521_v5 }
 0x529   : > { %v4588_v25 = vadd.f32 %v4572_v4, %v4530_v9  ;;  %v4603_v29 = vmax.f32 %v4587_v51, 0.0 }
 0x52a   : > { %v4586_v35 = vadd.f32 %v4570_v16, %v4522_v22  ;;  %v4601_v43 = vmax.f32 %v4585_v24, 0.0 }
 0x52b   : > { %v4604_v41 = vmax.f32 %v4588_v25, 0.0 }
 0x52c   : > { %v4602_v11 = vmax.f32 %v4586_v35, 0.0 }
 0x52d   : > { %v5131_v53 = vpack.c.bf16 %v4604_v41, %v4603_v29 }
 0x52e   : > { %v5126_v48 = vpack.c.bf16 %v4602_v11, %v4601_v43 }
 0x52f   : > { %5155 = vst [vmem:[%s8053_s0 + $0x18] sm:$0xff] %v5131_v53  }
 0x530   : > { %5154 = vst [vmem:[%s8053_s0 + $0x10] sm:$0xff] %v5126_v48  }
 0x536   : > { %v5901_v62 = vpop.f32.mrb[168].mxu1 }
 0x537   : > { %v4543_v20 = vadd.f32 %v5901_v62, %v8043_v47  ;;  %v4534_v44 = vpop.f32.mrb[169].mxu1 }
 0x538   : > { %v4535_v30 = vadd.f32 %v8043_v47, %v4534_v44  ;;  %v5902_v28 = vpop.f32.mrb[170].mxu1 }
 0x539   : > { %v4591_v0 = vadd.f32 %v4575_v38, %v4543_v20  ;;  %v4546_v27 = vadd.f32 %v5902_v28, %v8043_v47  ;;  %v4537_v42 = vpop.f32.mrb[171].mxu1 }
 0x53a   : > { %v4589_v52 = vadd.f32 %v4573_v18, %v4535_v30  ;;  %v4538_v49 = vadd.f32 %v8043_v47, %v4537_v42 }
 0x53b   : > { %v4592_v26 = vadd.f32 %v4576_v36, %v4546_v27  ;;  %v4607_v54 = vmax.f32 %v4591_v0, 0.0 }
 0x53c   : > { %v4590_v50 = vadd.f32 %v4574_v34, %v4538_v49  ;;  %v4605_v10 = vmax.f32 %v4589_v52, 0.0 }
 0x53d   : > { %v4608_v46 = vmax.f32 %v4592_v26, 0.0 }
 0x53e   : > { %v4606_v32 = vmax.f32 %v4590_v50, 0.0 }
 0x53f   : > { %v5141_v7 = vpack.c.bf16 %v4608_v46, %v4607_v54 }
 0x540   : > { %v5136_v17 = vpack.c.bf16 %v4606_v32, %v4605_v10 }
 0x541   : > { %5157 = vst [vmem:[%s8053_s0 + $0x28] sm:$0xff] %v5141_v7  }
 0x542   : > { %5156 = vst [vmem:[%s8053_s0 + $0x20] sm:$0xff] %v5136_v17  }
 0x546   : > { %v5905_v59 = vpop.f32.mrb[172].mxu1 }
 0x547   : > { %v4559_v1 = vadd.f32 %v5905_v59, %v8043_v47  ;;  %v4550_v58 = vpop.f32.mrb[173].mxu1 }
 0x548   : > { %v4551_v55 = vadd.f32 %v8043_v47, %v4550_v58  ;;  %v5906_v12 = vpop.f32.mrb[174].mxu1 }
 0x549   : > { %v4595_v61 = vadd.f32 %v4579_v45, %v4559_v1  ;;  %v4562_v19 = vadd.f32 %v5906_v12, %v8043_v47  ;;  %v4553_v57 = vpop.f32.mrb[175].mxu1 }
 0x54a   : > { %v4593_v13 = vadd.f32 %v4577_v14, %v4551_v55  ;;  %v4554_v39 = vadd.f32 %v8043_v47, %v4553_v57 }
 0x54b   : > { %v4596_v3 = vadd.f32 %v4580_v15, %v4562_v19  ;;  %v4611_v63 = vmax.f32 %v4595_v61, 0.0 }
 0x54c   : > { %v4594_v21 = vadd.f32 %v4578_v6, %v4554_v39  ;;  %v4609_v2 = vmax.f32 %v4593_v13, 0.0 }
 0x54d   : > { %v4612_v33 = vmax.f32 %v4596_v3, 0.0 }
 0x54e   : > { %v4610_v56 = vmax.f32 %v4594_v21, 0.0 }
 0x54f   : > { %v5151_v4 = vpack.c.bf16 %v4612_v33, %v4611_v63 }
 0x550   : > { %v5146_v40 = vpack.c.bf16 %v4610_v56, %v4609_v2 }
 0x551   : > { %5159 = vst [vmem:[%s8053_s0 + $0x38] sm:$0xff] %v5151_v4  }
 0x552   : > { %5158 = vst [vmem:[%s8053_s0 + $0x30] sm:$0xff] %v5146_v40  }
 0x553   : > { %6374 = shalt.err (!%p6371_p7)
}
 0x554   : > { %s6375_s5 = scalar_lea.hbm %s8087_s3, 1024  ;;  %s6379_s6 = scalar_lea.hbm %s8277_s25, 4096 }
 0x555   : > { %p6376_p12 = scmp.ne.s32.totalorder %s8087_s3, %s6375_s5  ;;  %p6380_p6 = scmp.lt.u32.totalorder %s8087_s3, %s8277_s25 }
 0x556   : > { %p6381_p8 = scmp.lt.u32.totalorder %s6379_s6, %s6375_s5  ;;  %p6383_p1 = scmp.lt.u32.totalorder %s6375_s5, %s8087_s3 }
 0x557   : > { %p6377_p13 = pnand %p6376_p12, %p6743_p5 }
 0x558   : > { %p6382_p11 = por %p6381_p8, %p6380_p6 }
 0x559   : > { %p6378_p10 = pneg %p6377_p13 }
 0x55a   : > { %p6384_p4 = por %p6383_p1, %p6382_p11 }
 0x55c   : > { %p6385_p0 = pnand %p6384_p4, %p6378_p10 }
 0x55e   : > { %6388 = shalt.err (!%p6385_p0)
}
 0x55f   : > { %s6508_s30 = smov 64   ;;  %s6509_s17 = smov 4  }
 0x560   : > { %5939 = dma.vmem_to_hbm [thread:$0]  (%p6743_p5), %s8082_s16, 1024, %s8087_s3, %s4694_s11, %s6508_s30, %s6508_s30, %s6509_s17  }
 0x561 PF: > { %s8278_s23 = sld [smem:[#allocation18_spill]]  ;;  %s8279_s26 = sld [smem:[#allocation23_spill]] }
 0x562   : > { %p5969_p9 = scmp.ge.s32.totalorder %s6495_s15, 2 }
 0x567   : > { %s4725_s22 = sand.u32 1, %s8278_s23   ;;  %p8280_p2 = scmp.ne.s32.totalorder %s8279_s26, 0 }
 0x568   : > { %s4726_s27 = scalar_lea.sflag [#allocation5], %s4725_s22 }
 0x569   : > { %p5959_p3 = pnand %p5969_p9, %p8280_p2 }
 0x56b   : > { %6450 = dma.done.wait (!%p5959_p3), %s4726_s27, 1024  }
 0x56c   : > { %6452 = vsyncadd (!%p5959_p3), %s4726_s27, 4294966272  ;;  %s28_s15 = sadd.s32 1, %s6495_s15   ;;  %s8281_s11 = sld [smem:[#allocation21_spill]] }
 0x56d   : > { %p25_p7 = scmp.ge.s32.totalorder %s28_s15, 6   ;;  %s8282_s27 = smov %s6459_s28 }
 0x56e   : > { %s8283_s28 = smov %s6463_s29  ;;  %s8284_s29 = smov %s6825_s4 }
 0x56f   : > { %s8285_s30 = smov %s6471_s9  ;;  %s8286_s9 = smov %s6475_s10 }
 0x570   : > { %s8287_s10 = smov %s6822_s2  ;;  %s8288_s12 = smov %s6491_s14 }
 0x571   : > { %s8289_s13 = smov %s8292_s8  ;;  %s8290_s14 = smov %s8296_s19 }
 0x572   :  { %27 = sbr.rel (!%p25_p7) target bundleno = 21 (0x15), region = 130 }
 0x579   :  { %4731 = vsyncpa [#allocation4], 1 }
 0x57a   :  { %4733 = vsyncpa [#allocation4 + $0x1], 1 }
 0x57b   :  { %4734 = vsyncpa [#allocation7], 1 }
 0x57c   :  { %4736 = vsyncpa [#allocation7 + $0x1], 1 }
 0x57d   :  { %4737 = vsyncpa [#allocation10], 1 }
 0x57e   :  { %4738 = vsyncpa [#allocation5], 1 }
 0x57f   :  { %4740 = vsyncpa [#allocation5 + $0x1], 1 }

</bundles_post_ra>
